<compile_context>
chip_gen: v7x
topology: tpu7x:2x2x1
jax: 0.10.0
libtpu: 0.0.40
codegen_flags: <defaults>
</compile_context>

<pallas_src>
import functools

import jax
import jax.numpy as jnp
from jax.experimental import pallas as pl
from jax.experimental.pallas import tpu as pltpu


# ----------------------------- Fused encoder kernel -----------------------------

def _layernorm(x, g, b, eps=1e-5):
    mu = jnp.mean(x, axis=-1, keepdims=True)
    xc = x - mu
    var = jnp.mean(xc * xc, axis=-1, keepdims=True)
    return xc * jax.lax.rsqrt(var + eps) * g + b


def _bf16_dot(x, w):
    # bf16 operands, f32 accumulation on the MXU.
    return jnp.dot(x.astype(jnp.bfloat16), w, preferred_element_type=jnp.float32)


def _encoder_kernel(patches_ref, conv1_w_ref, cls_pos_ref,
                    ln_pre_g_ref, ln_pre_b_ref,
                    ln1_g_ref, ln1_b_ref, in_w_ref, in_b_ref,
                    out_w_ref, out_b_ref,
                    ln2_g_ref, ln2_b_ref, fc_w_ref, fc_b_ref,
                    prj_w_ref, prj_b_ref,
                    ln_post_g_ref, ln_post_b_ref, proj_ref,
                    out_ref, *, layers, heads, head_dim, seq_len, scale, width):
    # Patch embedding (conv1 as matmul; class-token row is a zero patch) + pos emb.
    x = _bf16_dot(patches_ref[0], conv1_w_ref[...]) + cls_pos_ref[...]   # [S_pad, W]
    x = _layernorm(x, ln_pre_g_ref[...], ln_pre_b_ref[...])

    s_pad = x.shape[0]
    key_ids = jax.lax.broadcasted_iota(jnp.int32, (s_pad, s_pad), 1)
    key_mask = key_ids < seq_len            # mask padded key tokens

    for li in range(layers):
        # ---- Multi-head self-attention ----
        h = _layernorm(x, ln1_g_ref[li], ln1_b_ref[li])
        qkv = _bf16_dot(h, in_w_ref[li]) + in_b_ref[li]                  # [S_pad, 3W]
        q = qkv[:, :width]
        k = qkv[:, width:2 * width]
        v = qkv[:, 2 * width:]

        head_outs = []
        for hd in range(heads):
            sl = slice(hd * head_dim, (hd + 1) * head_dim)
            qh, kh, vh = q[:, sl], k[:, sl], v[:, sl]                    # [S_pad, d]
            s = jnp.dot(qh, kh.T, preferred_element_type=jnp.float32) * scale
            s = jnp.where(key_mask, s, -1e30)
            m = jnp.max(s, axis=-1, keepdims=True)
            p = jnp.exp(s - m)
            l = jnp.sum(p, axis=-1, keepdims=True)
            oh = jnp.dot(p, vh, preferred_element_type=jnp.float32)
            head_outs.append(oh * pl.reciprocal(l, approx=True))
        attn = jnp.concatenate(head_outs, axis=-1)                       # [S_pad, W]
        attn = _bf16_dot(attn, out_w_ref[li]) + out_b_ref[li]
        x = x + attn

        # ---- MLP (QuickGELU) ----
        h = _layernorm(x, ln2_g_ref[li], ln2_b_ref[li])
        h = _bf16_dot(h, fc_w_ref[li]) + fc_b_ref[li]                    # [S_pad, 4W]
        h = h * jax.nn.sigmoid(1.702 * h)                                # QuickGELU (f32)
        h = _bf16_dot(h, prj_w_ref[li]) + prj_b_ref[li]
        x = x + h

    # ln_post on class token (row 0), then projection (no bias).
    cls = _layernorm(x[0:1, :], ln_post_g_ref[...], ln_post_b_ref[...])  # [1, W]
    out_ref[0] = _bf16_dot(cls, proj_ref[...])                           # [1, E]


# ----------------------------- Parameter setup -----------------------------

def init_params(key, *, in_ch=3, patch=4, width=32, heads=4, layers=2,
                embed_dim=16, grid_size=4):
    def nrm(k, shape, scale=0.02):
        return scale * jax.random.normal(k, shape, dtype=jnp.float32)

    keys = jax.random.split(key, 8 + layers)
    n_tok = grid_size * grid_size + 1
    params = {
        "patch": patch, "width": width, "heads": heads,
        "head_dim": width // heads, "embed_dim": embed_dim,
        "conv1_w": nrm(keys[0], (in_ch * patch * patch, width)),
        "class_emb": nrm(keys[1], (width,)),
        "pos_emb": nrm(keys[2], (n_tok, width)),
        "ln_pre_g": jnp.ones((width,), jnp.float32),
        "ln_pre_b": jnp.zeros((width,), jnp.float32),
        "ln_post_g": jnp.ones((width,), jnp.float32),
        "ln_post_b": jnp.zeros((width,), jnp.float32),
        "proj": nrm(keys[3], (width, embed_dim)),
    }
    blocks = []
    for li in range(layers):
        bk = jax.random.split(keys[8 + li], 4)
        blocks.append({
            "ln1_g": jnp.ones((width,), jnp.float32),
            "ln1_b": jnp.zeros((width,), jnp.float32),
            "in_w": nrm(bk[0], (width, 3 * width)),
            "in_b": jnp.zeros((3 * width,), jnp.float32),
            "out_w": nrm(bk[1], (width, width)),
            "out_b": jnp.zeros((width,), jnp.float32),
            "ln2_g": jnp.ones((width,), jnp.float32),
            "ln2_b": jnp.zeros((width,), jnp.float32),
            "fc_w": nrm(bk[2], (width, 4 * width)),
            "fc_b": jnp.zeros((4 * width,), jnp.float32),
            "prj_w": nrm(bk[3], (4 * width, width)),
            "prj_b": jnp.zeros((width,), jnp.float32),
        })
    params["blocks"] = blocks
    return params


# ----------------------------- Forward (encode_image) -----------------------------

def encode_image(params, image):
    B, C, H, W_img = image.shape
    p = params["patch"]
    width = params["width"]
    heads = params["heads"]
    d = params["head_dim"]
    E = params["embed_dim"]
    blocks = params["blocks"]
    L = len(blocks)

    gh, gw = H // p, W_img // p
    n_patch = gh * gw
    S = n_patch + 1
    S_pad = ((S + 7) // 8) * 8          # pad token axis to a sublane multiple (17 -> 24)
    Cpp = C * p * p

    # Patchify NCHW -> [B, n_patch, C*p*p] (matches PyTorch conv1 weight flattening).
    # Row 0 is reserved for the class token (zero patch); rows >= S are zero padding.
    patches = image.reshape(B, C, gh, p, gw, p)
    patches = patches.transpose(0, 2, 4, 1, 3, 5).reshape(B, n_patch, Cpp)
    patches_padded = jnp.zeros((B, S_pad, Cpp), jnp.float32)
    patches_padded = patches_padded.at[:, 1:1 + n_patch, :].set(patches)

    # Class token + positional embedding, zero-padded to S_pad rows.
    cls_pos = jnp.zeros((S_pad, width), jnp.float32)
    cls_pos = cls_pos.at[0, :].set(params["class_emb"] + params["pos_emb"][0])
    cls_pos = cls_pos.at[1:S, :].set(params["pos_emb"][1:])

    bf16 = jnp.bfloat16

    def stack_w(name):                       # [L, ., .] matmul weights in bf16
        return jnp.stack([blk[name] for blk in blocks]).astype(bf16)

    def stack_v(name):                       # [L, 1, dim] f32 biases / LN params
        return jnp.stack([blk[name] for blk in blocks])[:, None, :]

    ln1_g, ln1_b = stack_v("ln1_g"), stack_v("ln1_b")
    in_w, in_b = stack_w("in_w"), stack_v("in_b")
    out_w, out_b = stack_w("out_w"), stack_v("out_b")
    ln2_g, ln2_b = stack_v("ln2_g"), stack_v("ln2_b")
    fc_w, fc_b = stack_w("fc_w"), stack_v("fc_b")
    prj_w, prj_b = stack_w("prj_w"), stack_v("prj_b")

    conv1_w = params["conv1_w"].astype(bf16)
    proj = params["proj"].astype(bf16)
    ln_pre_g = params["ln_pre_g"][None, :]
    ln_pre_b = params["ln_pre_b"][None, :]
    ln_post_g = params["ln_post_g"][None, :]
    ln_post_b = params["ln_post_b"][None, :]

    kernel = functools.partial(
        _encoder_kernel, layers=L, heads=heads, head_dim=d,
        seq_len=S, scale=1.0 / (d ** 0.5), width=width)

    def full_spec(shape):
        zeros = (0,) * len(shape)
        return pl.BlockSpec(shape, lambda b: zeros)

    out = pl.pallas_call(
        kernel,
        out_shape=jax.ShapeDtypeStruct((B, 1, E), jnp.float32),
        grid=(B,),
        in_specs=[
            pl.BlockSpec((1, S_pad, Cpp), lambda b: (b, 0, 0)),   # patches (per image)
            full_spec((Cpp, width)),                              # conv1_w
            full_spec((S_pad, width)),                            # cls + pos emb
            full_spec((1, width)), full_spec((1, width)),         # ln_pre g, b
            full_spec((L, 1, width)), full_spec((L, 1, width)),   # ln1 g, b
            full_spec((L, width, 3 * width)), full_spec((L, 1, 3 * width)),   # qkv proj
            full_spec((L, width, width)), full_spec((L, 1, width)),           # out proj
            full_spec((L, 1, width)), full_spec((L, 1, width)),   # ln2 g, b
            full_spec((L, width, 4 * width)), full_spec((L, 1, 4 * width)),   # mlp fc
            full_spec((L, 4 * width, width)), full_spec((L, 1, width)),       # mlp proj
            full_spec((1, width)), full_spec((1, width)),         # ln_post g, b
            full_spec((width, E)),                                # final projection
        ],
        out_specs=pl.BlockSpec((1, 1, E), lambda b: (b, 0, 0)),
        compiler_params=pltpu.CompilerParams(
            dimension_semantics=("parallel",)),
    )(patches_padded, conv1_w, cls_pos,
      ln_pre_g, ln_pre_b,
      ln1_g, ln1_b, in_w, in_b,
      out_w, out_b,
      ln2_g, ln2_b, fc_w, fc_b,
      prj_w, prj_b,
      ln_post_g, ln_post_b, proj)

    return out.reshape(B, E)


# ----------------------------- Main -----------------------------

if __name__ == "__main__":
    key = jax.random.PRNGKey(0)
    k_img, k_par = jax.random.split(key)

    B, C, H, W = 2, 3, 16, 16
    image = jax.random.normal(k_img, (B, C, H, W), dtype=jnp.float32)

    params = init_params(k_par, in_ch=C, patch=4, width=32, heads=4,
                         layers=2, embed_dim=16, grid_size=H // 4)

    out = encode_image(params, image)
    out = jax.block_until_ready(out)
    assert out.shape == (B, params["embed_dim"])
    assert jnp.all(jnp.isfinite(out))
    print("KERNEL_OK")
</pallas_src>

<mosaic_0001>
module attributes {stable_mosaic.version = 11 : i64} {
  func.func @_encoder_kernel(%arg0: i32, %arg1: memref<1x24x48xf32, #tpu.memory_space<vmem>>, %arg2: memref<48x32xbf16, #tpu.memory_space<vmem>>, %arg3: memref<24x32xf32, #tpu.memory_space<vmem>>, %arg4: memref<1x32xf32, #tpu.memory_space<vmem>>, %arg5: memref<1x32xf32, #tpu.memory_space<vmem>>, %arg6: memref<2x1x32xf32, #tpu.memory_space<vmem>>, %arg7: memref<2x1x32xf32, #tpu.memory_space<vmem>>, %arg8: memref<2x32x96xbf16, #tpu.memory_space<vmem>>, %arg9: memref<2x1x96xf32, #tpu.memory_space<vmem>>, %arg10: memref<2x32x32xbf16, #tpu.memory_space<vmem>>, %arg11: memref<2x1x32xf32, #tpu.memory_space<vmem>>, %arg12: memref<2x1x32xf32, #tpu.memory_space<vmem>>, %arg13: memref<2x1x32xf32, #tpu.memory_space<vmem>>, %arg14: memref<2x32x128xbf16, #tpu.memory_space<vmem>>, %arg15: memref<2x1x128xf32, #tpu.memory_space<vmem>>, %arg16: memref<2x128x32xbf16, #tpu.memory_space<vmem>>, %arg17: memref<2x1x32xf32, #tpu.memory_space<vmem>>, %arg18: memref<1x32xf32, #tpu.memory_space<vmem>>, %arg19: memref<1x32xf32, #tpu.memory_space<vmem>>, %arg20: memref<32x16xbf16, #tpu.memory_space<vmem>>, %arg21: memref<1x1x16xf32, #tpu.memory_space<vmem>>) attributes {dimension_semantics = [#tpu.dimension_semantics<parallel>], iteration_bounds = array<i64: 2>, scalar_prefetch = 0 : i64, scratch_operands = 0 : i64, tpu.core_type = #tpu.core_type<tc>, window_params = [{transform_indices = @transform_0, window_bounds = array<i64: 1, 24, 48>}, {pipeline_mode = #tpu.pipeline_mode<synchronous>, transform_indices = @transform_1, window_bounds = array<i64: 48, 32>}, {pipeline_mode = #tpu.pipeline_mode<synchronous>, transform_indices = @transform_2, window_bounds = array<i64: 24, 32>}, {pipeline_mode = #tpu.pipeline_mode<synchronous>, transform_indices = @transform_3, window_bounds = array<i64: 1, 32>}, {pipeline_mode = #tpu.pipeline_mode<synchronous>, transform_indices = @transform_4, window_bounds = array<i64: 1, 32>}, {pipeline_mode = #tpu.pipeline_mode<synchronous>, transform_indices = @transform_5, window_bounds = array<i64: 2, 1, 32>}, {pipeline_mode = #tpu.pipeline_mode<synchronous>, transform_indices = @transform_6, window_bounds = array<i64: 2, 1, 32>}, {pipeline_mode = #tpu.pipeline_mode<synchronous>, transform_indices = @transform_7, window_bounds = array<i64: 2, 32, 96>}, {pipeline_mode = #tpu.pipeline_mode<synchronous>, transform_indices = @transform_8, window_bounds = array<i64: 2, 1, 96>}, {pipeline_mode = #tpu.pipeline_mode<synchronous>, transform_indices = @transform_9, window_bounds = array<i64: 2, 32, 32>}, {pipeline_mode = #tpu.pipeline_mode<synchronous>, transform_indices = @transform_10, window_bounds = array<i64: 2, 1, 32>}, {pipeline_mode = #tpu.pipeline_mode<synchronous>, transform_indices = @transform_11, window_bounds = array<i64: 2, 1, 32>}, {pipeline_mode = #tpu.pipeline_mode<synchronous>, transform_indices = @transform_12, window_bounds = array<i64: 2, 1, 32>}, {pipeline_mode = #tpu.pipeline_mode<synchronous>, transform_indices = @transform_13, window_bounds = array<i64: 2, 32, 128>}, {pipeline_mode = #tpu.pipeline_mode<synchronous>, transform_indices = @transform_14, window_bounds = array<i64: 2, 1, 128>}, {pipeline_mode = #tpu.pipeline_mode<synchronous>, transform_indices = @transform_15, window_bounds = array<i64: 2, 128, 32>}, {pipeline_mode = #tpu.pipeline_mode<synchronous>, transform_indices = @transform_16, window_bounds = array<i64: 2, 1, 32>}, {pipeline_mode = #tpu.pipeline_mode<synchronous>, transform_indices = @transform_17, window_bounds = array<i64: 1, 32>}, {pipeline_mode = #tpu.pipeline_mode<synchronous>, transform_indices = @transform_18, window_bounds = array<i64: 1, 32>}, {pipeline_mode = #tpu.pipeline_mode<synchronous>, transform_indices = @transform_19, window_bounds = array<i64: 32, 16>}, {transform_indices = @transform_20, window_bounds = array<i64: 1, 1, 16>}]} {
    %c0 = arith.constant 0 : index
    %c0_0 = arith.constant 0 : index
    %c0_1 = arith.constant 0 : index
    %0 = vector.load %arg1[%c0, %c0_0, %c0_1] : memref<1x24x48xf32, #tpu.memory_space<vmem>>, vector<1x24x48xf32>
    %1 = vector.shape_cast %0 : vector<1x24x48xf32> to vector<24x48xf32>
    %c0_2 = arith.constant 0 : index
    %c0_3 = arith.constant 0 : index
    %2 = vector.load %arg2[%c0_2, %c0_3] : memref<48x32xbf16, #tpu.memory_space<vmem>>, vector<48x32xbf16>
    %3 = arith.truncf %1 : vector<24x48xf32> to vector<24x48xbf16>
    %cst = arith.constant dense<0.000000e+00> : vector<24x32xf32>
    %4 = tpu.matmul %3, %2, %cst {dimension_numbers = #tpu.dot_dimension_numbers<[1], [0], [0], [1], [0, 0, 1, 1], [], []>} : vector<24x48xbf16>, vector<48x32xbf16>, vector<24x32xf32> -> vector<24x32xf32>
    %c0_4 = arith.constant 0 : index
    %c0_5 = arith.constant 0 : index
    %5 = vector.load %arg3[%c0_4, %c0_5] : memref<24x32xf32, #tpu.memory_space<vmem>>, vector<24x32xf32>
    %6 = arith.addf %4, %5 : vector<24x32xf32>
    %c0_6 = arith.constant 0 : index
    %c0_7 = arith.constant 0 : index
    %7 = vector.load %arg4[%c0_6, %c0_7] : memref<1x32xf32, #tpu.memory_space<vmem>>, vector<1x32xf32>
    %c0_8 = arith.constant 0 : index
    %c0_9 = arith.constant 0 : index
    %8 = vector.load %arg5[%c0_8, %c0_9] : memref<1x32xf32, #tpu.memory_space<vmem>>, vector<1x32xf32>
    %cst_10 = arith.constant dense<0.000000e+00> : vector<24xf32>
    %9 = vector.multi_reduction <add>, %6, %cst_10 [1] : vector<24x32xf32> to vector<24xf32>
    %10 = vector.shape_cast %9 : vector<24xf32> to vector<24x1xf32>
    %cst_11 = arith.constant 3.200000e+01 : f32
    %11 = vector.broadcast %cst_11 : f32 to vector<24x1xf32>
    %12 = arith.divf %10, %11 : vector<24x1xf32>
    %13 = vector.broadcast %12 : vector<24x1xf32> to vector<24x32xf32>
    %14 = arith.subf %6, %13 : vector<24x32xf32>
    %15 = arith.mulf %14, %14 : vector<24x32xf32>
    %cst_12 = arith.constant dense<0.000000e+00> : vector<24xf32>
    %16 = vector.multi_reduction <add>, %15, %cst_12 [1] : vector<24x32xf32> to vector<24xf32>
    %17 = vector.shape_cast %16 : vector<24xf32> to vector<24x1xf32>
    %cst_13 = arith.constant 3.200000e+01 : f32
    %18 = vector.broadcast %cst_13 : f32 to vector<24x1xf32>
    %19 = arith.divf %17, %18 : vector<24x1xf32>
    %cst_14 = arith.constant 9.99999974E-6 : f32
    %20 = vector.broadcast %cst_14 : f32 to vector<24x1xf32>
    %21 = arith.addf %19, %20 : vector<24x1xf32>
    %22 = math.rsqrt %21 : vector<24x1xf32>
    %23 = vector.broadcast %22 : vector<24x1xf32> to vector<24x32xf32>
    %24 = arith.mulf %14, %23 : vector<24x32xf32>
    %25 = vector.broadcast %7 : vector<1x32xf32> to vector<24x32xf32>
    %26 = arith.mulf %24, %25 : vector<24x32xf32>
    %27 = vector.broadcast %8 : vector<1x32xf32> to vector<24x32xf32>
    %28 = arith.addf %26, %27 : vector<24x32xf32>
    %29 = tpu.iota {dimensions = array<i32: 1>} : vector<24x24xi32>
    %c17_i32 = arith.constant 17 : i32
    %30 = vector.broadcast %c17_i32 : i32 to vector<24x24xi32>
    %31 = arith.cmpi slt, %29, %30 : vector<24x24xi32>
    %c0_15 = arith.constant 0 : index
    %c0_16 = arith.constant 0 : index
    %c0_17 = arith.constant 0 : index
    %32 = vector.load %arg6[%c0_15, %c0_16, %c0_17] : memref<2x1x32xf32, #tpu.memory_space<vmem>>, vector<1x1x32xf32>
    %33 = vector.shape_cast %32 : vector<1x1x32xf32> to vector<1x32xf32>
    %c0_18 = arith.constant 0 : index
    %c0_19 = arith.constant 0 : index
    %c0_20 = arith.constant 0 : index
    %34 = vector.load %arg7[%c0_18, %c0_19, %c0_20] : memref<2x1x32xf32, #tpu.memory_space<vmem>>, vector<1x1x32xf32>
    %35 = vector.shape_cast %34 : vector<1x1x32xf32> to vector<1x32xf32>
    %cst_21 = arith.constant dense<0.000000e+00> : vector<24xf32>
    %36 = vector.multi_reduction <add>, %28, %cst_21 [1] : vector<24x32xf32> to vector<24xf32>
    %37 = vector.shape_cast %36 : vector<24xf32> to vector<24x1xf32>
    %cst_22 = arith.constant 3.200000e+01 : f32
    %38 = vector.broadcast %cst_22 : f32 to vector<24x1xf32>
    %39 = arith.divf %37, %38 : vector<24x1xf32>
    %40 = vector.broadcast %39 : vector<24x1xf32> to vector<24x32xf32>
    %41 = arith.subf %28, %40 : vector<24x32xf32>
    %42 = arith.mulf %41, %41 : vector<24x32xf32>
    %cst_23 = arith.constant dense<0.000000e+00> : vector<24xf32>
    %43 = vector.multi_reduction <add>, %42, %cst_23 [1] : vector<24x32xf32> to vector<24xf32>
    %44 = vector.shape_cast %43 : vector<24xf32> to vector<24x1xf32>
    %cst_24 = arith.constant 3.200000e+01 : f32
    %45 = vector.broadcast %cst_24 : f32 to vector<24x1xf32>
    %46 = arith.divf %44, %45 : vector<24x1xf32>
    %cst_25 = arith.constant 9.99999974E-6 : f32
    %47 = vector.broadcast %cst_25 : f32 to vector<24x1xf32>
    %48 = arith.addf %46, %47 : vector<24x1xf32>
    %49 = math.rsqrt %48 : vector<24x1xf32>
    %50 = vector.broadcast %49 : vector<24x1xf32> to vector<24x32xf32>
    %51 = arith.mulf %41, %50 : vector<24x32xf32>
    %52 = vector.broadcast %33 : vector<1x32xf32> to vector<24x32xf32>
    %53 = arith.mulf %51, %52 : vector<24x32xf32>
    %54 = vector.broadcast %35 : vector<1x32xf32> to vector<24x32xf32>
    %55 = arith.addf %53, %54 : vector<24x32xf32>
    %c0_26 = arith.constant 0 : index
    %c0_27 = arith.constant 0 : index
    %c0_28 = arith.constant 0 : index
    %56 = vector.load %arg8[%c0_26, %c0_27, %c0_28] : memref<2x32x96xbf16, #tpu.memory_space<vmem>>, vector<1x32x96xbf16>
    %57 = vector.shape_cast %56 : vector<1x32x96xbf16> to vector<32x96xbf16>
    %58 = arith.truncf %55 : vector<24x32xf32> to vector<24x32xbf16>
    %cst_29 = arith.constant dense<0.000000e+00> : vector<24x96xf32>
    %59 = tpu.matmul %58, %57, %cst_29 {dimension_numbers = #tpu.dot_dimension_numbers<[1], [0], [0], [1], [0, 0, 1, 1], [], []>} : vector<24x32xbf16>, vector<32x96xbf16>, vector<24x96xf32> -> vector<24x96xf32>
    %c0_30 = arith.constant 0 : index
    %c0_31 = arith.constant 0 : index
    %c0_32 = arith.constant 0 : index
    %60 = vector.load %arg9[%c0_30, %c0_31, %c0_32] : memref<2x1x96xf32, #tpu.memory_space<vmem>>, vector<1x1x96xf32>
    %61 = vector.shape_cast %60 : vector<1x1x96xf32> to vector<1x96xf32>
    %62 = vector.broadcast %61 : vector<1x96xf32> to vector<24x96xf32>
    %63 = arith.addf %59, %62 : vector<24x96xf32>
    %64 = vector.extract_strided_slice %63 {offsets = [0, 0], sizes = [24, 32], strides = [1, 1]} : vector<24x96xf32> to vector<24x32xf32>
    %65 = vector.extract_strided_slice %63 {offsets = [0, 32], sizes = [24, 32], strides = [1, 1]} : vector<24x96xf32> to vector<24x32xf32>
    %66 = vector.extract_strided_slice %63 {offsets = [0, 64], sizes = [24, 32], strides = [1, 1]} : vector<24x96xf32> to vector<24x32xf32>
    %67 = vector.extract_strided_slice %64 {offsets = [0, 0], sizes = [24, 8], strides = [1, 1]} : vector<24x32xf32> to vector<24x8xf32>
    %68 = vector.extract_strided_slice %65 {offsets = [0, 0], sizes = [24, 8], strides = [1, 1]} : vector<24x32xf32> to vector<24x8xf32>
    %69 = vector.extract_strided_slice %66 {offsets = [0, 0], sizes = [24, 8], strides = [1, 1]} : vector<24x32xf32> to vector<24x8xf32>
    %70 = tpu.transpose %68, [1, 0] : vector<24x8xf32> -> vector<8x24xf32>
    %cst_33 = arith.constant dense<0.000000e+00> : vector<24x24xf32>
    %71 = tpu.matmul %67, %70, %cst_33 {dimension_numbers = #tpu.dot_dimension_numbers<[1], [0], [0], [1], [0, 0, 1, 1], [], []>} : vector<24x8xf32>, vector<8x24xf32>, vector<24x24xf32> -> vector<24x24xf32>
    %cst_34 = arith.constant 0.353553385 : f32
    %72 = vector.broadcast %cst_34 : f32 to vector<24x24xf32>
    %73 = arith.mulf %71, %72 : vector<24x24xf32>
    %cst_35 = arith.constant -1.000000e+30 : f32
    %74 = vector.broadcast %cst_35 : f32 to vector<24x24xf32>
    %75 = arith.select %31, %73, %74 : vector<24x24xi1>, vector<24x24xf32>
    %cst_36 = arith.constant dense<0xFF800000> : vector<24xf32>
    %76 = vector.multi_reduction <maximumf>, %75, %cst_36 [1] : vector<24x24xf32> to vector<24xf32>
    %77 = vector.shape_cast %76 : vector<24xf32> to vector<24x1xf32>
    %78 = vector.broadcast %77 : vector<24x1xf32> to vector<24x24xf32>
    %79 = arith.subf %75, %78 : vector<24x24xf32>
    %80 = math.exp %79 : vector<24x24xf32>
    %cst_37 = arith.constant dense<0.000000e+00> : vector<24xf32>
    %81 = vector.multi_reduction <add>, %80, %cst_37 [1] : vector<24x24xf32> to vector<24xf32>
    %82 = vector.shape_cast %81 : vector<24xf32> to vector<24x1xf32>
    %cst_38 = arith.constant dense<0.000000e+00> : vector<24x8xf32>
    %83 = tpu.matmul %80, %69, %cst_38 {dimension_numbers = #tpu.dot_dimension_numbers<[1], [0], [0], [1], [0, 0, 1, 1], [], []>} : vector<24x24xf32>, vector<24x8xf32>, vector<24x8xf32> -> vector<24x8xf32>
    %84 = tpu.reciprocal %82 {approx = true} : vector<24x1xf32> -> vector<24x1xf32>
    %85 = vector.broadcast %84 : vector<24x1xf32> to vector<24x8xf32>
    %86 = arith.mulf %83, %85 : vector<24x8xf32>
    %87 = vector.extract_strided_slice %64 {offsets = [0, 8], sizes = [24, 8], strides = [1, 1]} : vector<24x32xf32> to vector<24x8xf32>
    %88 = vector.extract_strided_slice %65 {offsets = [0, 8], sizes = [24, 8], strides = [1, 1]} : vector<24x32xf32> to vector<24x8xf32>
    %89 = vector.extract_strided_slice %66 {offsets = [0, 8], sizes = [24, 8], strides = [1, 1]} : vector<24x32xf32> to vector<24x8xf32>
    %90 = tpu.transpose %88, [1, 0] : vector<24x8xf32> -> vector<8x24xf32>
    %cst_39 = arith.constant dense<0.000000e+00> : vector<24x24xf32>
    %91 = tpu.matmul %87, %90, %cst_39 {dimension_numbers = #tpu.dot_dimension_numbers<[1], [0], [0], [1], [0, 0, 1, 1], [], []>} : vector<24x8xf32>, vector<8x24xf32>, vector<24x24xf32> -> vector<24x24xf32>
    %cst_40 = arith.constant 0.353553385 : f32
    %92 = vector.broadcast %cst_40 : f32 to vector<24x24xf32>
    %93 = arith.mulf %91, %92 : vector<24x24xf32>
    %cst_41 = arith.constant -1.000000e+30 : f32
    %94 = vector.broadcast %cst_41 : f32 to vector<24x24xf32>
    %95 = arith.select %31, %93, %94 : vector<24x24xi1>, vector<24x24xf32>
    %cst_42 = arith.constant dense<0xFF800000> : vector<24xf32>
    %96 = vector.multi_reduction <maximumf>, %95, %cst_42 [1] : vector<24x24xf32> to vector<24xf32>
    %97 = vector.shape_cast %96 : vector<24xf32> to vector<24x1xf32>
    %98 = vector.broadcast %97 : vector<24x1xf32> to vector<24x24xf32>
    %99 = arith.subf %95, %98 : vector<24x24xf32>
    %100 = math.exp %99 : vector<24x24xf32>
    %cst_43 = arith.constant dense<0.000000e+00> : vector<24xf32>
    %101 = vector.multi_reduction <add>, %100, %cst_43 [1] : vector<24x24xf32> to vector<24xf32>
    %102 = vector.shape_cast %101 : vector<24xf32> to vector<24x1xf32>
    %cst_44 = arith.constant dense<0.000000e+00> : vector<24x8xf32>
    %103 = tpu.matmul %100, %89, %cst_44 {dimension_numbers = #tpu.dot_dimension_numbers<[1], [0], [0], [1], [0, 0, 1, 1], [], []>} : vector<24x24xf32>, vector<24x8xf32>, vector<24x8xf32> -> vector<24x8xf32>
    %104 = tpu.reciprocal %102 {approx = true} : vector<24x1xf32> -> vector<24x1xf32>
    %105 = vector.broadcast %104 : vector<24x1xf32> to vector<24x8xf32>
    %106 = arith.mulf %103, %105 : vector<24x8xf32>
    %107 = vector.extract_strided_slice %64 {offsets = [0, 16], sizes = [24, 8], strides = [1, 1]} : vector<24x32xf32> to vector<24x8xf32>
    %108 = vector.extract_strided_slice %65 {offsets = [0, 16], sizes = [24, 8], strides = [1, 1]} : vector<24x32xf32> to vector<24x8xf32>
    %109 = vector.extract_strided_slice %66 {offsets = [0, 16], sizes = [24, 8], strides = [1, 1]} : vector<24x32xf32> to vector<24x8xf32>
    %110 = tpu.transpose %108, [1, 0] : vector<24x8xf32> -> vector<8x24xf32>
    %cst_45 = arith.constant dense<0.000000e+00> : vector<24x24xf32>
    %111 = tpu.matmul %107, %110, %cst_45 {dimension_numbers = #tpu.dot_dimension_numbers<[1], [0], [0], [1], [0, 0, 1, 1], [], []>} : vector<24x8xf32>, vector<8x24xf32>, vector<24x24xf32> -> vector<24x24xf32>
    %cst_46 = arith.constant 0.353553385 : f32
    %112 = vector.broadcast %cst_46 : f32 to vector<24x24xf32>
    %113 = arith.mulf %111, %112 : vector<24x24xf32>
    %cst_47 = arith.constant -1.000000e+30 : f32
    %114 = vector.broadcast %cst_47 : f32 to vector<24x24xf32>
    %115 = arith.select %31, %113, %114 : vector<24x24xi1>, vector<24x24xf32>
    %cst_48 = arith.constant dense<0xFF800000> : vector<24xf32>
    %116 = vector.multi_reduction <maximumf>, %115, %cst_48 [1] : vector<24x24xf32> to vector<24xf32>
    %117 = vector.shape_cast %116 : vector<24xf32> to vector<24x1xf32>
    %118 = vector.broadcast %117 : vector<24x1xf32> to vector<24x24xf32>
    %119 = arith.subf %115, %118 : vector<24x24xf32>
    %120 = math.exp %119 : vector<24x24xf32>
    %cst_49 = arith.constant dense<0.000000e+00> : vector<24xf32>
    %121 = vector.multi_reduction <add>, %120, %cst_49 [1] : vector<24x24xf32> to vector<24xf32>
    %122 = vector.shape_cast %121 : vector<24xf32> to vector<24x1xf32>
    %cst_50 = arith.constant dense<0.000000e+00> : vector<24x8xf32>
    %123 = tpu.matmul %120, %109, %cst_50 {dimension_numbers = #tpu.dot_dimension_numbers<[1], [0], [0], [1], [0, 0, 1, 1], [], []>} : vector<24x24xf32>, vector<24x8xf32>, vector<24x8xf32> -> vector<24x8xf32>
    %124 = tpu.reciprocal %122 {approx = true} : vector<24x1xf32> -> vector<24x1xf32>
    %125 = vector.broadcast %124 : vector<24x1xf32> to vector<24x8xf32>
    %126 = arith.mulf %123, %125 : vector<24x8xf32>
    %127 = vector.extract_strided_slice %64 {offsets = [0, 24], sizes = [24, 8], strides = [1, 1]} : vector<24x32xf32> to vector<24x8xf32>
    %128 = vector.extract_strided_slice %65 {offsets = [0, 24], sizes = [24, 8], strides = [1, 1]} : vector<24x32xf32> to vector<24x8xf32>
    %129 = vector.extract_strided_slice %66 {offsets = [0, 24], sizes = [24, 8], strides = [1, 1]} : vector<24x32xf32> to vector<24x8xf32>
    %130 = tpu.transpose %128, [1, 0] : vector<24x8xf32> -> vector<8x24xf32>
    %cst_51 = arith.constant dense<0.000000e+00> : vector<24x24xf32>
    %131 = tpu.matmul %127, %130, %cst_51 {dimension_numbers = #tpu.dot_dimension_numbers<[1], [0], [0], [1], [0, 0, 1, 1], [], []>} : vector<24x8xf32>, vector<8x24xf32>, vector<24x24xf32> -> vector<24x24xf32>
    %cst_52 = arith.constant 0.353553385 : f32
    %132 = vector.broadcast %cst_52 : f32 to vector<24x24xf32>
    %133 = arith.mulf %131, %132 : vector<24x24xf32>
    %cst_53 = arith.constant -1.000000e+30 : f32
    %134 = vector.broadcast %cst_53 : f32 to vector<24x24xf32>
    %135 = arith.select %31, %133, %134 : vector<24x24xi1>, vector<24x24xf32>
    %cst_54 = arith.constant dense<0xFF800000> : vector<24xf32>
    %136 = vector.multi_reduction <maximumf>, %135, %cst_54 [1] : vector<24x24xf32> to vector<24xf32>
    %137 = vector.shape_cast %136 : vector<24xf32> to vector<24x1xf32>
    %138 = vector.broadcast %137 : vector<24x1xf32> to vector<24x24xf32>
    %139 = arith.subf %135, %138 : vector<24x24xf32>
    %140 = math.exp %139 : vector<24x24xf32>
    %cst_55 = arith.constant dense<0.000000e+00> : vector<24xf32>
    %141 = vector.multi_reduction <add>, %140, %cst_55 [1] : vector<24x24xf32> to vector<24xf32>
    %142 = vector.shape_cast %141 : vector<24xf32> to vector<24x1xf32>
    %cst_56 = arith.constant dense<0.000000e+00> : vector<24x8xf32>
    %143 = tpu.matmul %140, %129, %cst_56 {dimension_numbers = #tpu.dot_dimension_numbers<[1], [0], [0], [1], [0, 0, 1, 1], [], []>} : vector<24x24xf32>, vector<24x8xf32>, vector<24x8xf32> -> vector<24x8xf32>
    %144 = tpu.reciprocal %142 {approx = true} : vector<24x1xf32> -> vector<24x1xf32>
    %145 = vector.broadcast %144 : vector<24x1xf32> to vector<24x8xf32>
    %146 = arith.mulf %143, %145 : vector<24x8xf32>
    %147 = tpu.concatenate %86, %106, %126, %146 in 1 : vector<24x8xf32>, vector<24x8xf32>, vector<24x8xf32>, vector<24x8xf32> -> vector<24x32xf32>
    %c0_57 = arith.constant 0 : index
    %c0_58 = arith.constant 0 : index
    %c0_59 = arith.constant 0 : index
    %148 = vector.load %arg10[%c0_57, %c0_58, %c0_59] : memref<2x32x32xbf16, #tpu.memory_space<vmem>>, vector<1x32x32xbf16>
    %149 = vector.shape_cast %148 : vector<1x32x32xbf16> to vector<32x32xbf16>
    %150 = arith.truncf %147 : vector<24x32xf32> to vector<24x32xbf16>
    %cst_60 = arith.constant dense<0.000000e+00> : vector<24x32xf32>
    %151 = tpu.matmul %150, %149, %cst_60 {dimension_numbers = #tpu.dot_dimension_numbers<[1], [0], [0], [1], [0, 0, 1, 1], [], []>} : vector<24x32xbf16>, vector<32x32xbf16>, vector<24x32xf32> -> vector<24x32xf32>
    %c0_61 = arith.constant 0 : index
    %c0_62 = arith.constant 0 : index
    %c0_63 = arith.constant 0 : index
    %152 = vector.load %arg11[%c0_61, %c0_62, %c0_63] : memref<2x1x32xf32, #tpu.memory_space<vmem>>, vector<1x1x32xf32>
    %153 = vector.shape_cast %152 : vector<1x1x32xf32> to vector<1x32xf32>
    %154 = vector.broadcast %153 : vector<1x32xf32> to vector<24x32xf32>
    %155 = arith.addf %151, %154 : vector<24x32xf32>
    %156 = arith.addf %28, %155 : vector<24x32xf32>
    %c0_64 = arith.constant 0 : index
    %c0_65 = arith.constant 0 : index
    %c0_66 = arith.constant 0 : index
    %157 = vector.load %arg12[%c0_64, %c0_65, %c0_66] : memref<2x1x32xf32, #tpu.memory_space<vmem>>, vector<1x1x32xf32>
    %158 = vector.shape_cast %157 : vector<1x1x32xf32> to vector<1x32xf32>
    %c0_67 = arith.constant 0 : index
    %c0_68 = arith.constant 0 : index
    %c0_69 = arith.constant 0 : index
    %159 = vector.load %arg13[%c0_67, %c0_68, %c0_69] : memref<2x1x32xf32, #tpu.memory_space<vmem>>, vector<1x1x32xf32>
    %160 = vector.shape_cast %159 : vector<1x1x32xf32> to vector<1x32xf32>
    %cst_70 = arith.constant dense<0.000000e+00> : vector<24xf32>
    %161 = vector.multi_reduction <add>, %156, %cst_70 [1] : vector<24x32xf32> to vector<24xf32>
    %162 = vector.shape_cast %161 : vector<24xf32> to vector<24x1xf32>
    %cst_71 = arith.constant 3.200000e+01 : f32
    %163 = vector.broadcast %cst_71 : f32 to vector<24x1xf32>
    %164 = arith.divf %162, %163 : vector<24x1xf32>
    %165 = vector.broadcast %164 : vector<24x1xf32> to vector<24x32xf32>
    %166 = arith.subf %156, %165 : vector<24x32xf32>
    %167 = arith.mulf %166, %166 : vector<24x32xf32>
    %cst_72 = arith.constant dense<0.000000e+00> : vector<24xf32>
    %168 = vector.multi_reduction <add>, %167, %cst_72 [1] : vector<24x32xf32> to vector<24xf32>
    %169 = vector.shape_cast %168 : vector<24xf32> to vector<24x1xf32>
    %cst_73 = arith.constant 3.200000e+01 : f32
    %170 = vector.broadcast %cst_73 : f32 to vector<24x1xf32>
    %171 = arith.divf %169, %170 : vector<24x1xf32>
    %cst_74 = arith.constant 9.99999974E-6 : f32
    %172 = vector.broadcast %cst_74 : f32 to vector<24x1xf32>
    %173 = arith.addf %171, %172 : vector<24x1xf32>
    %174 = math.rsqrt %173 : vector<24x1xf32>
    %175 = vector.broadcast %174 : vector<24x1xf32> to vector<24x32xf32>
    %176 = arith.mulf %166, %175 : vector<24x32xf32>
    %177 = vector.broadcast %158 : vector<1x32xf32> to vector<24x32xf32>
    %178 = arith.mulf %176, %177 : vector<24x32xf32>
    %179 = vector.broadcast %160 : vector<1x32xf32> to vector<24x32xf32>
    %180 = arith.addf %178, %179 : vector<24x32xf32>
    %c0_75 = arith.constant 0 : index
    %c0_76 = arith.constant 0 : index
    %c0_77 = arith.constant 0 : index
    %181 = vector.load %arg14[%c0_75, %c0_76, %c0_77] : memref<2x32x128xbf16, #tpu.memory_space<vmem>>, vector<1x32x128xbf16>
    %182 = vector.shape_cast %181 : vector<1x32x128xbf16> to vector<32x128xbf16>
    %183 = arith.truncf %180 : vector<24x32xf32> to vector<24x32xbf16>
    %cst_78 = arith.constant dense<0.000000e+00> : vector<24x128xf32>
    %184 = tpu.matmul %183, %182, %cst_78 {dimension_numbers = #tpu.dot_dimension_numbers<[1], [0], [0], [1], [0, 0, 1, 1], [], []>} : vector<24x32xbf16>, vector<32x128xbf16>, vector<24x128xf32> -> vector<24x128xf32>
    %c0_79 = arith.constant 0 : index
    %c0_80 = arith.constant 0 : index
    %c0_81 = arith.constant 0 : index
    %185 = vector.load %arg15[%c0_79, %c0_80, %c0_81] : memref<2x1x128xf32, #tpu.memory_space<vmem>>, vector<1x1x128xf32>
    %186 = vector.shape_cast %185 : vector<1x1x128xf32> to vector<1x128xf32>
    %187 = vector.broadcast %186 : vector<1x128xf32> to vector<24x128xf32>
    %188 = arith.addf %184, %187 : vector<24x128xf32>
    %cst_82 = arith.constant 1.702000e+00 : f32
    %189 = vector.broadcast %cst_82 : f32 to vector<24x128xf32>
    %190 = arith.mulf %189, %188 : vector<24x128xf32>
    %191 = arith.negf %190 : vector<24x128xf32>
    %192 = math.exp %191 : vector<24x128xf32>
    %cst_83 = arith.constant 1.000000e+00 : f32
    %193 = vector.broadcast %cst_83 : f32 to vector<24x128xf32>
    %194 = arith.addf %193, %192 : vector<24x128xf32>
    %195 = arith.divf %193, %194 : vector<24x128xf32>
    %196 = arith.mulf %188, %195 : vector<24x128xf32>
    %c0_84 = arith.constant 0 : index
    %c0_85 = arith.constant 0 : index
    %c0_86 = arith.constant 0 : index
    %197 = vector.load %arg16[%c0_84, %c0_85, %c0_86] : memref<2x128x32xbf16, #tpu.memory_space<vmem>>, vector<1x128x32xbf16>
    %198 = vector.shape_cast %197 : vector<1x128x32xbf16> to vector<128x32xbf16>
    %199 = arith.truncf %196 : vector<24x128xf32> to vector<24x128xbf16>
    %cst_87 = arith.constant dense<0.000000e+00> : vector<24x32xf32>
    %200 = tpu.matmul %199, %198, %cst_87 {dimension_numbers = #tpu.dot_dimension_numbers<[1], [0], [0], [1], [0, 0, 1, 1], [], []>} : vector<24x128xbf16>, vector<128x32xbf16>, vector<24x32xf32> -> vector<24x32xf32>
    %c0_88 = arith.constant 0 : index
    %c0_89 = arith.constant 0 : index
    %c0_90 = arith.constant 0 : index
    %201 = vector.load %arg17[%c0_88, %c0_89, %c0_90] : memref<2x1x32xf32, #tpu.memory_space<vmem>>, vector<1x1x32xf32>
    %202 = vector.shape_cast %201 : vector<1x1x32xf32> to vector<1x32xf32>
    %203 = vector.broadcast %202 : vector<1x32xf32> to vector<24x32xf32>
    %204 = arith.addf %200, %203 : vector<24x32xf32>
    %205 = arith.addf %156, %204 : vector<24x32xf32>
    %c1 = arith.constant 1 : index
    %c0_91 = arith.constant 0 : index
    %c0_92 = arith.constant 0 : index
    %206 = vector.load %arg6[%c1, %c0_91, %c0_92] : memref<2x1x32xf32, #tpu.memory_space<vmem>>, vector<1x1x32xf32>
    %207 = vector.shape_cast %206 : vector<1x1x32xf32> to vector<1x32xf32>
    %c1_93 = arith.constant 1 : index
    %c0_94 = arith.constant 0 : index
    %c0_95 = arith.constant 0 : index
    %208 = vector.load %arg7[%c1_93, %c0_94, %c0_95] : memref<2x1x32xf32, #tpu.memory_space<vmem>>, vector<1x1x32xf32>
    %209 = vector.shape_cast %208 : vector<1x1x32xf32> to vector<1x32xf32>
    %cst_96 = arith.constant dense<0.000000e+00> : vector<24xf32>
    %210 = vector.multi_reduction <add>, %205, %cst_96 [1] : vector<24x32xf32> to vector<24xf32>
    %211 = vector.shape_cast %210 : vector<24xf32> to vector<24x1xf32>
    %cst_97 = arith.constant 3.200000e+01 : f32
    %212 = vector.broadcast %cst_97 : f32 to vector<24x1xf32>
    %213 = arith.divf %211, %212 : vector<24x1xf32>
    %214 = vector.broadcast %213 : vector<24x1xf32> to vector<24x32xf32>
    %215 = arith.subf %205, %214 : vector<24x32xf32>
    %216 = arith.mulf %215, %215 : vector<24x32xf32>
    %cst_98 = arith.constant dense<0.000000e+00> : vector<24xf32>
    %217 = vector.multi_reduction <add>, %216, %cst_98 [1] : vector<24x32xf32> to vector<24xf32>
    %218 = vector.shape_cast %217 : vector<24xf32> to vector<24x1xf32>
    %cst_99 = arith.constant 3.200000e+01 : f32
    %219 = vector.broadcast %cst_99 : f32 to vector<24x1xf32>
    %220 = arith.divf %218, %219 : vector<24x1xf32>
    %cst_100 = arith.constant 9.99999974E-6 : f32
    %221 = vector.broadcast %cst_100 : f32 to vector<24x1xf32>
    %222 = arith.addf %220, %221 : vector<24x1xf32>
    %223 = math.rsqrt %222 : vector<24x1xf32>
    %224 = vector.broadcast %223 : vector<24x1xf32> to vector<24x32xf32>
    %225 = arith.mulf %215, %224 : vector<24x32xf32>
    %226 = vector.broadcast %207 : vector<1x32xf32> to vector<24x32xf32>
    %227 = arith.mulf %225, %226 : vector<24x32xf32>
    %228 = vector.broadcast %209 : vector<1x32xf32> to vector<24x32xf32>
    %229 = arith.addf %227, %228 : vector<24x32xf32>
    %c1_101 = arith.constant 1 : index
    %c0_102 = arith.constant 0 : index
    %c0_103 = arith.constant 0 : index
    %230 = vector.load %arg8[%c1_101, %c0_102, %c0_103] : memref<2x32x96xbf16, #tpu.memory_space<vmem>>, vector<1x32x96xbf16>
    %231 = vector.shape_cast %230 : vector<1x32x96xbf16> to vector<32x96xbf16>
    %232 = arith.truncf %229 : vector<24x32xf32> to vector<24x32xbf16>
    %cst_104 = arith.constant dense<0.000000e+00> : vector<24x96xf32>
    %233 = tpu.matmul %232, %231, %cst_104 {dimension_numbers = #tpu.dot_dimension_numbers<[1], [0], [0], [1], [0, 0, 1, 1], [], []>} : vector<24x32xbf16>, vector<32x96xbf16>, vector<24x96xf32> -> vector<24x96xf32>
    %c1_105 = arith.constant 1 : index
    %c0_106 = arith.constant 0 : index
    %c0_107 = arith.constant 0 : index
    %234 = vector.load %arg9[%c1_105, %c0_106, %c0_107] : memref<2x1x96xf32, #tpu.memory_space<vmem>>, vector<1x1x96xf32>
    %235 = vector.shape_cast %234 : vector<1x1x96xf32> to vector<1x96xf32>
    %236 = vector.broadcast %235 : vector<1x96xf32> to vector<24x96xf32>
    %237 = arith.addf %233, %236 : vector<24x96xf32>
    %238 = vector.extract_strided_slice %237 {offsets = [0, 0], sizes = [24, 32], strides = [1, 1]} : vector<24x96xf32> to vector<24x32xf32>
    %239 = vector.extract_strided_slice %237 {offsets = [0, 32], sizes = [24, 32], strides = [1, 1]} : vector<24x96xf32> to vector<24x32xf32>
    %240 = vector.extract_strided_slice %237 {offsets = [0, 64], sizes = [24, 32], strides = [1, 1]} : vector<24x96xf32> to vector<24x32xf32>
    %241 = vector.extract_strided_slice %238 {offsets = [0, 0], sizes = [24, 8], strides = [1, 1]} : vector<24x32xf32> to vector<24x8xf32>
    %242 = vector.extract_strided_slice %239 {offsets = [0, 0], sizes = [24, 8], strides = [1, 1]} : vector<24x32xf32> to vector<24x8xf32>
    %243 = vector.extract_strided_slice %240 {offsets = [0, 0], sizes = [24, 8], strides = [1, 1]} : vector<24x32xf32> to vector<24x8xf32>
    %244 = tpu.transpose %242, [1, 0] : vector<24x8xf32> -> vector<8x24xf32>
    %cst_108 = arith.constant dense<0.000000e+00> : vector<24x24xf32>
    %245 = tpu.matmul %241, %244, %cst_108 {dimension_numbers = #tpu.dot_dimension_numbers<[1], [0], [0], [1], [0, 0, 1, 1], [], []>} : vector<24x8xf32>, vector<8x24xf32>, vector<24x24xf32> -> vector<24x24xf32>
    %cst_109 = arith.constant 0.353553385 : f32
    %246 = vector.broadcast %cst_109 : f32 to vector<24x24xf32>
    %247 = arith.mulf %245, %246 : vector<24x24xf32>
    %cst_110 = arith.constant -1.000000e+30 : f32
    %248 = vector.broadcast %cst_110 : f32 to vector<24x24xf32>
    %249 = arith.select %31, %247, %248 : vector<24x24xi1>, vector<24x24xf32>
    %cst_111 = arith.constant dense<0xFF800000> : vector<24xf32>
    %250 = vector.multi_reduction <maximumf>, %249, %cst_111 [1] : vector<24x24xf32> to vector<24xf32>
    %251 = vector.shape_cast %250 : vector<24xf32> to vector<24x1xf32>
    %252 = vector.broadcast %251 : vector<24x1xf32> to vector<24x24xf32>
    %253 = arith.subf %249, %252 : vector<24x24xf32>
    %254 = math.exp %253 : vector<24x24xf32>
    %cst_112 = arith.constant dense<0.000000e+00> : vector<24xf32>
    %255 = vector.multi_reduction <add>, %254, %cst_112 [1] : vector<24x24xf32> to vector<24xf32>
    %256 = vector.shape_cast %255 : vector<24xf32> to vector<24x1xf32>
    %cst_113 = arith.constant dense<0.000000e+00> : vector<24x8xf32>
    %257 = tpu.matmul %254, %243, %cst_113 {dimension_numbers = #tpu.dot_dimension_numbers<[1], [0], [0], [1], [0, 0, 1, 1], [], []>} : vector<24x24xf32>, vector<24x8xf32>, vector<24x8xf32> -> vector<24x8xf32>
    %258 = tpu.reciprocal %256 {approx = true} : vector<24x1xf32> -> vector<24x1xf32>
    %259 = vector.broadcast %258 : vector<24x1xf32> to vector<24x8xf32>
    %260 = arith.mulf %257, %259 : vector<24x8xf32>
    %261 = vector.extract_strided_slice %238 {offsets = [0, 8], sizes = [24, 8], strides = [1, 1]} : vector<24x32xf32> to vector<24x8xf32>
    %262 = vector.extract_strided_slice %239 {offsets = [0, 8], sizes = [24, 8], strides = [1, 1]} : vector<24x32xf32> to vector<24x8xf32>
    %263 = vector.extract_strided_slice %240 {offsets = [0, 8], sizes = [24, 8], strides = [1, 1]} : vector<24x32xf32> to vector<24x8xf32>
    %264 = tpu.transpose %262, [1, 0] : vector<24x8xf32> -> vector<8x24xf32>
    %cst_114 = arith.constant dense<0.000000e+00> : vector<24x24xf32>
    %265 = tpu.matmul %261, %264, %cst_114 {dimension_numbers = #tpu.dot_dimension_numbers<[1], [0], [0], [1], [0, 0, 1, 1], [], []>} : vector<24x8xf32>, vector<8x24xf32>, vector<24x24xf32> -> vector<24x24xf32>
    %cst_115 = arith.constant 0.353553385 : f32
    %266 = vector.broadcast %cst_115 : f32 to vector<24x24xf32>
    %267 = arith.mulf %265, %266 : vector<24x24xf32>
    %cst_116 = arith.constant -1.000000e+30 : f32
    %268 = vector.broadcast %cst_116 : f32 to vector<24x24xf32>
    %269 = arith.select %31, %267, %268 : vector<24x24xi1>, vector<24x24xf32>
    %cst_117 = arith.constant dense<0xFF800000> : vector<24xf32>
    %270 = vector.multi_reduction <maximumf>, %269, %cst_117 [1] : vector<24x24xf32> to vector<24xf32>
    %271 = vector.shape_cast %270 : vector<24xf32> to vector<24x1xf32>
    %272 = vector.broadcast %271 : vector<24x1xf32> to vector<24x24xf32>
    %273 = arith.subf %269, %272 : vector<24x24xf32>
    %274 = math.exp %273 : vector<24x24xf32>
    %cst_118 = arith.constant dense<0.000000e+00> : vector<24xf32>
    %275 = vector.multi_reduction <add>, %274, %cst_118 [1] : vector<24x24xf32> to vector<24xf32>
    %276 = vector.shape_cast %275 : vector<24xf32> to vector<24x1xf32>
    %cst_119 = arith.constant dense<0.000000e+00> : vector<24x8xf32>
    %277 = tpu.matmul %274, %263, %cst_119 {dimension_numbers = #tpu.dot_dimension_numbers<[1], [0], [0], [1], [0, 0, 1, 1], [], []>} : vector<24x24xf32>, vector<24x8xf32>, vector<24x8xf32> -> vector<24x8xf32>
    %278 = tpu.reciprocal %276 {approx = true} : vector<24x1xf32> -> vector<24x1xf32>
    %279 = vector.broadcast %278 : vector<24x1xf32> to vector<24x8xf32>
    %280 = arith.mulf %277, %279 : vector<24x8xf32>
    %281 = vector.extract_strided_slice %238 {offsets = [0, 16], sizes = [24, 8], strides = [1, 1]} : vector<24x32xf32> to vector<24x8xf32>
    %282 = vector.extract_strided_slice %239 {offsets = [0, 16], sizes = [24, 8], strides = [1, 1]} : vector<24x32xf32> to vector<24x8xf32>
    %283 = vector.extract_strided_slice %240 {offsets = [0, 16], sizes = [24, 8], strides = [1, 1]} : vector<24x32xf32> to vector<24x8xf32>
    %284 = tpu.transpose %282, [1, 0] : vector<24x8xf32> -> vector<8x24xf32>
    %cst_120 = arith.constant dense<0.000000e+00> : vector<24x24xf32>
    %285 = tpu.matmul %281, %284, %cst_120 {dimension_numbers = #tpu.dot_dimension_numbers<[1], [0], [0], [1], [0, 0, 1, 1], [], []>} : vector<24x8xf32>, vector<8x24xf32>, vector<24x24xf32> -> vector<24x24xf32>
    %cst_121 = arith.constant 0.353553385 : f32
    %286 = vector.broadcast %cst_121 : f32 to vector<24x24xf32>
    %287 = arith.mulf %285, %286 : vector<24x24xf32>
    %cst_122 = arith.constant -1.000000e+30 : f32
    %288 = vector.broadcast %cst_122 : f32 to vector<24x24xf32>
    %289 = arith.select %31, %287, %288 : vector<24x24xi1>, vector<24x24xf32>
    %cst_123 = arith.constant dense<0xFF800000> : vector<24xf32>
    %290 = vector.multi_reduction <maximumf>, %289, %cst_123 [1] : vector<24x24xf32> to vector<24xf32>
    %291 = vector.shape_cast %290 : vector<24xf32> to vector<24x1xf32>
    %292 = vector.broadcast %291 : vector<24x1xf32> to vector<24x24xf32>
    %293 = arith.subf %289, %292 : vector<24x24xf32>
    %294 = math.exp %293 : vector<24x24xf32>
    %cst_124 = arith.constant dense<0.000000e+00> : vector<24xf32>
    %295 = vector.multi_reduction <add>, %294, %cst_124 [1] : vector<24x24xf32> to vector<24xf32>
    %296 = vector.shape_cast %295 : vector<24xf32> to vector<24x1xf32>
    %cst_125 = arith.constant dense<0.000000e+00> : vector<24x8xf32>
    %297 = tpu.matmul %294, %283, %cst_125 {dimension_numbers = #tpu.dot_dimension_numbers<[1], [0], [0], [1], [0, 0, 1, 1], [], []>} : vector<24x24xf32>, vector<24x8xf32>, vector<24x8xf32> -> vector<24x8xf32>
    %298 = tpu.reciprocal %296 {approx = true} : vector<24x1xf32> -> vector<24x1xf32>
    %299 = vector.broadcast %298 : vector<24x1xf32> to vector<24x8xf32>
    %300 = arith.mulf %297, %299 : vector<24x8xf32>
    %301 = vector.extract_strided_slice %238 {offsets = [0, 24], sizes = [24, 8], strides = [1, 1]} : vector<24x32xf32> to vector<24x8xf32>
    %302 = vector.extract_strided_slice %239 {offsets = [0, 24], sizes = [24, 8], strides = [1, 1]} : vector<24x32xf32> to vector<24x8xf32>
    %303 = vector.extract_strided_slice %240 {offsets = [0, 24], sizes = [24, 8], strides = [1, 1]} : vector<24x32xf32> to vector<24x8xf32>
    %304 = tpu.transpose %302, [1, 0] : vector<24x8xf32> -> vector<8x24xf32>
    %cst_126 = arith.constant dense<0.000000e+00> : vector<24x24xf32>
    %305 = tpu.matmul %301, %304, %cst_126 {dimension_numbers = #tpu.dot_dimension_numbers<[1], [0], [0], [1], [0, 0, 1, 1], [], []>} : vector<24x8xf32>, vector<8x24xf32>, vector<24x24xf32> -> vector<24x24xf32>
    %cst_127 = arith.constant 0.353553385 : f32
    %306 = vector.broadcast %cst_127 : f32 to vector<24x24xf32>
    %307 = arith.mulf %305, %306 : vector<24x24xf32>
    %cst_128 = arith.constant -1.000000e+30 : f32
    %308 = vector.broadcast %cst_128 : f32 to vector<24x24xf32>
    %309 = arith.select %31, %307, %308 : vector<24x24xi1>, vector<24x24xf32>
    %cst_129 = arith.constant dense<0xFF800000> : vector<24xf32>
    %310 = vector.multi_reduction <maximumf>, %309, %cst_129 [1] : vector<24x24xf32> to vector<24xf32>
    %311 = vector.shape_cast %310 : vector<24xf32> to vector<24x1xf32>
    %312 = vector.broadcast %311 : vector<24x1xf32> to vector<24x24xf32>
    %313 = arith.subf %309, %312 : vector<24x24xf32>
    %314 = math.exp %313 : vector<24x24xf32>
    %cst_130 = arith.constant dense<0.000000e+00> : vector<24xf32>
    %315 = vector.multi_reduction <add>, %314, %cst_130 [1] : vector<24x24xf32> to vector<24xf32>
    %316 = vector.shape_cast %315 : vector<24xf32> to vector<24x1xf32>
    %cst_131 = arith.constant dense<0.000000e+00> : vector<24x8xf32>
    %317 = tpu.matmul %314, %303, %cst_131 {dimension_numbers = #tpu.dot_dimension_numbers<[1], [0], [0], [1], [0, 0, 1, 1], [], []>} : vector<24x24xf32>, vector<24x8xf32>, vector<24x8xf32> -> vector<24x8xf32>
    %318 = tpu.reciprocal %316 {approx = true} : vector<24x1xf32> -> vector<24x1xf32>
    %319 = vector.broadcast %318 : vector<24x1xf32> to vector<24x8xf32>
    %320 = arith.mulf %317, %319 : vector<24x8xf32>
    %321 = tpu.concatenate %260, %280, %300, %320 in 1 : vector<24x8xf32>, vector<24x8xf32>, vector<24x8xf32>, vector<24x8xf32> -> vector<24x32xf32>
    %c1_132 = arith.constant 1 : index
    %c0_133 = arith.constant 0 : index
    %c0_134 = arith.constant 0 : index
    %322 = vector.load %arg10[%c1_132, %c0_133, %c0_134] : memref<2x32x32xbf16, #tpu.memory_space<vmem>>, vector<1x32x32xbf16>
    %323 = vector.shape_cast %322 : vector<1x32x32xbf16> to vector<32x32xbf16>
    %324 = arith.truncf %321 : vector<24x32xf32> to vector<24x32xbf16>
    %cst_135 = arith.constant dense<0.000000e+00> : vector<24x32xf32>
    %325 = tpu.matmul %324, %323, %cst_135 {dimension_numbers = #tpu.dot_dimension_numbers<[1], [0], [0], [1], [0, 0, 1, 1], [], []>} : vector<24x32xbf16>, vector<32x32xbf16>, vector<24x32xf32> -> vector<24x32xf32>
    %c1_136 = arith.constant 1 : index
    %c0_137 = arith.constant 0 : index
    %c0_138 = arith.constant 0 : index
    %326 = vector.load %arg11[%c1_136, %c0_137, %c0_138] : memref<2x1x32xf32, #tpu.memory_space<vmem>>, vector<1x1x32xf32>
    %327 = vector.shape_cast %326 : vector<1x1x32xf32> to vector<1x32xf32>
    %328 = vector.broadcast %327 : vector<1x32xf32> to vector<24x32xf32>
    %329 = arith.addf %325, %328 : vector<24x32xf32>
    %330 = arith.addf %205, %329 : vector<24x32xf32>
    %c1_139 = arith.constant 1 : index
    %c0_140 = arith.constant 0 : index
    %c0_141 = arith.constant 0 : index
    %331 = vector.load %arg12[%c1_139, %c0_140, %c0_141] : memref<2x1x32xf32, #tpu.memory_space<vmem>>, vector<1x1x32xf32>
    %332 = vector.shape_cast %331 : vector<1x1x32xf32> to vector<1x32xf32>
    %c1_142 = arith.constant 1 : index
    %c0_143 = arith.constant 0 : index
    %c0_144 = arith.constant 0 : index
    %333 = vector.load %arg13[%c1_142, %c0_143, %c0_144] : memref<2x1x32xf32, #tpu.memory_space<vmem>>, vector<1x1x32xf32>
    %334 = vector.shape_cast %333 : vector<1x1x32xf32> to vector<1x32xf32>
    %cst_145 = arith.constant dense<0.000000e+00> : vector<24xf32>
    %335 = vector.multi_reduction <add>, %330, %cst_145 [1] : vector<24x32xf32> to vector<24xf32>
    %336 = vector.shape_cast %335 : vector<24xf32> to vector<24x1xf32>
    %cst_146 = arith.constant 3.200000e+01 : f32
    %337 = vector.broadcast %cst_146 : f32 to vector<24x1xf32>
    %338 = arith.divf %336, %337 : vector<24x1xf32>
    %339 = vector.broadcast %338 : vector<24x1xf32> to vector<24x32xf32>
    %340 = arith.subf %330, %339 : vector<24x32xf32>
    %341 = arith.mulf %340, %340 : vector<24x32xf32>
    %cst_147 = arith.constant dense<0.000000e+00> : vector<24xf32>
    %342 = vector.multi_reduction <add>, %341, %cst_147 [1] : vector<24x32xf32> to vector<24xf32>
    %343 = vector.shape_cast %342 : vector<24xf32> to vector<24x1xf32>
    %cst_148 = arith.constant 3.200000e+01 : f32
    %344 = vector.broadcast %cst_148 : f32 to vector<24x1xf32>
    %345 = arith.divf %343, %344 : vector<24x1xf32>
    %cst_149 = arith.constant 9.99999974E-6 : f32
    %346 = vector.broadcast %cst_149 : f32 to vector<24x1xf32>
    %347 = arith.addf %345, %346 : vector<24x1xf32>
    %348 = math.rsqrt %347 : vector<24x1xf32>
    %349 = vector.broadcast %348 : vector<24x1xf32> to vector<24x32xf32>
    %350 = arith.mulf %340, %349 : vector<24x32xf32>
    %351 = vector.broadcast %332 : vector<1x32xf32> to vector<24x32xf32>
    %352 = arith.mulf %350, %351 : vector<24x32xf32>
    %353 = vector.broadcast %334 : vector<1x32xf32> to vector<24x32xf32>
    %354 = arith.addf %352, %353 : vector<24x32xf32>
    %c1_150 = arith.constant 1 : index
    %c0_151 = arith.constant 0 : index
    %c0_152 = arith.constant 0 : index
    %355 = vector.load %arg14[%c1_150, %c0_151, %c0_152] : memref<2x32x128xbf16, #tpu.memory_space<vmem>>, vector<1x32x128xbf16>
    %356 = vector.shape_cast %355 : vector<1x32x128xbf16> to vector<32x128xbf16>
    %357 = arith.truncf %354 : vector<24x32xf32> to vector<24x32xbf16>
    %cst_153 = arith.constant dense<0.000000e+00> : vector<24x128xf32>
    %358 = tpu.matmul %357, %356, %cst_153 {dimension_numbers = #tpu.dot_dimension_numbers<[1], [0], [0], [1], [0, 0, 1, 1], [], []>} : vector<24x32xbf16>, vector<32x128xbf16>, vector<24x128xf32> -> vector<24x128xf32>
    %c1_154 = arith.constant 1 : index
    %c0_155 = arith.constant 0 : index
    %c0_156 = arith.constant 0 : index
    %359 = vector.load %arg15[%c1_154, %c0_155, %c0_156] : memref<2x1x128xf32, #tpu.memory_space<vmem>>, vector<1x1x128xf32>
    %360 = vector.shape_cast %359 : vector<1x1x128xf32> to vector<1x128xf32>
    %361 = vector.broadcast %360 : vector<1x128xf32> to vector<24x128xf32>
    %362 = arith.addf %358, %361 : vector<24x128xf32>
    %cst_157 = arith.constant 1.702000e+00 : f32
    %363 = vector.broadcast %cst_157 : f32 to vector<24x128xf32>
    %364 = arith.mulf %363, %362 : vector<24x128xf32>
    %365 = arith.negf %364 : vector<24x128xf32>
    %366 = math.exp %365 : vector<24x128xf32>
    %cst_158 = arith.constant 1.000000e+00 : f32
    %367 = vector.broadcast %cst_158 : f32 to vector<24x128xf32>
    %368 = arith.addf %367, %366 : vector<24x128xf32>
    %369 = arith.divf %367, %368 : vector<24x128xf32>
    %370 = arith.mulf %362, %369 : vector<24x128xf32>
    %c1_159 = arith.constant 1 : index
    %c0_160 = arith.constant 0 : index
    %c0_161 = arith.constant 0 : index
    %371 = vector.load %arg16[%c1_159, %c0_160, %c0_161] : memref<2x128x32xbf16, #tpu.memory_space<vmem>>, vector<1x128x32xbf16>
    %372 = vector.shape_cast %371 : vector<1x128x32xbf16> to vector<128x32xbf16>
    %373 = arith.truncf %370 : vector<24x128xf32> to vector<24x128xbf16>
    %cst_162 = arith.constant dense<0.000000e+00> : vector<24x32xf32>
    %374 = tpu.matmul %373, %372, %cst_162 {dimension_numbers = #tpu.dot_dimension_numbers<[1], [0], [0], [1], [0, 0, 1, 1], [], []>} : vector<24x128xbf16>, vector<128x32xbf16>, vector<24x32xf32> -> vector<24x32xf32>
    %c1_163 = arith.constant 1 : index
    %c0_164 = arith.constant 0 : index
    %c0_165 = arith.constant 0 : index
    %375 = vector.load %arg17[%c1_163, %c0_164, %c0_165] : memref<2x1x32xf32, #tpu.memory_space<vmem>>, vector<1x1x32xf32>
    %376 = vector.shape_cast %375 : vector<1x1x32xf32> to vector<1x32xf32>
    %377 = vector.broadcast %376 : vector<1x32xf32> to vector<24x32xf32>
    %378 = arith.addf %374, %377 : vector<24x32xf32>
    %379 = arith.addf %330, %378 : vector<24x32xf32>
    %380 = vector.extract_strided_slice %379 {offsets = [0, 0], sizes = [1, 32], strides = [1, 1]} : vector<24x32xf32> to vector<1x32xf32>
    %c0_166 = arith.constant 0 : index
    %c0_167 = arith.constant 0 : index
    %381 = vector.load %arg18[%c0_166, %c0_167] : memref<1x32xf32, #tpu.memory_space<vmem>>, vector<1x32xf32>
    %c0_168 = arith.constant 0 : index
    %c0_169 = arith.constant 0 : index
    %382 = vector.load %arg19[%c0_168, %c0_169] : memref<1x32xf32, #tpu.memory_space<vmem>>, vector<1x32xf32>
    %cst_170 = arith.constant dense<0.000000e+00> : vector<1xf32>
    %383 = vector.multi_reduction <add>, %380, %cst_170 [1] : vector<1x32xf32> to vector<1xf32>
    %384 = vector.shape_cast %383 : vector<1xf32> to vector<1x1xf32>
    %cst_171 = arith.constant 3.200000e+01 : f32
    %385 = vector.broadcast %cst_171 : f32 to vector<1x1xf32>
    %386 = arith.divf %384, %385 : vector<1x1xf32>
    %387 = vector.broadcast %386 : vector<1x1xf32> to vector<1x32xf32>
    %388 = arith.subf %380, %387 : vector<1x32xf32>
    %389 = arith.mulf %388, %388 : vector<1x32xf32>
    %cst_172 = arith.constant dense<0.000000e+00> : vector<1xf32>
    %390 = vector.multi_reduction <add>, %389, %cst_172 [1] : vector<1x32xf32> to vector<1xf32>
    %391 = vector.shape_cast %390 : vector<1xf32> to vector<1x1xf32>
    %cst_173 = arith.constant 3.200000e+01 : f32
    %392 = vector.broadcast %cst_173 : f32 to vector<1x1xf32>
    %393 = arith.divf %391, %392 : vector<1x1xf32>
    %cst_174 = arith.constant 9.99999974E-6 : f32
    %394 = vector.broadcast %cst_174 : f32 to vector<1x1xf32>
    %395 = arith.addf %393, %394 : vector<1x1xf32>
    %396 = math.rsqrt %395 : vector<1x1xf32>
    %397 = vector.broadcast %396 : vector<1x1xf32> to vector<1x32xf32>
    %398 = arith.mulf %388, %397 : vector<1x32xf32>
    %399 = arith.mulf %398, %381 : vector<1x32xf32>
    %400 = arith.addf %399, %382 : vector<1x32xf32>
    %c0_175 = arith.constant 0 : index
    %c0_176 = arith.constant 0 : index
    %401 = vector.load %arg20[%c0_175, %c0_176] : memref<32x16xbf16, #tpu.memory_space<vmem>>, vector<32x16xbf16>
    %402 = arith.truncf %400 : vector<1x32xf32> to vector<1x32xbf16>
    %cst_177 = arith.constant dense<0.000000e+00> : vector<1x16xf32>
    %403 = tpu.matmul %402, %401, %cst_177 {dimension_numbers = #tpu.dot_dimension_numbers<[1], [0], [0], [1], [0, 0, 1, 1], [], []>} : vector<1x32xbf16>, vector<32x16xbf16>, vector<1x16xf32> -> vector<1x16xf32>
    %c0_178 = arith.constant 0 : index
    %c0_179 = arith.constant 0 : index
    %c0_180 = arith.constant 0 : index
    %404 = vector.load %arg21[%c0_178, %c0_179, %c0_180] : memref<1x1x16xf32, #tpu.memory_space<vmem>>, vector<1x1x16xf32>
    %405 = vector.shape_cast %404 : vector<1x1x16xf32> to vector<1x16xf32>
    %406 = vector.shape_cast %403 : vector<1x16xf32> to vector<1x1x16xf32>
    tpu.vector_store %arg21[%c0_178, %c0_179, %c0_180], %406 {strides = array<i32>} : memref<1x1x16xf32, #tpu.memory_space<vmem>>, vector<1x1x16xf32>,
    return
  }
  func.func @transform_0(%arg0: i32) -> (i32, i32, i32) {
    %c0_i32 = arith.constant 0 : i32
    %c0_i32_0 = arith.constant 0 : i32
    %c0_i32_1 = arith.constant 0 : i32
    return %arg0, %c0_i32, %c0_i32_0 : i32, i32, i32
  }
  func.func @transform_1(%arg0: i32) -> (i32, i32) {
    %c0_i32 = arith.constant 0 : i32
    %c0_i32_0 = arith.constant 0 : i32
    %c0_i32_1 = arith.constant 0 : i32
    return %c0_i32, %c0_i32_0 : i32, i32
  }
  func.func @transform_2(%arg0: i32) -> (i32, i32) {
    %c0_i32 = arith.constant 0 : i32
    %c0_i32_0 = arith.constant 0 : i32
    %c0_i32_1 = arith.constant 0 : i32
    return %c0_i32, %c0_i32_0 : i32, i32
  }
  func.func @transform_3(%arg0: i32) -> (i32, i32) {
    %c0_i32 = arith.constant 0 : i32
    %c0_i32_0 = arith.constant 0 : i32
    %c0_i32_1 = arith.constant 0 : i32
    return %c0_i32, %c0_i32_0 : i32, i32
  }
  func.func @transform_4(%arg0: i32) -> (i32, i32) {
    %c0_i32 = arith.constant 0 : i32
    %c0_i32_0 = arith.constant 0 : i32
    %c0_i32_1 = arith.constant 0 : i32
    return %c0_i32, %c0_i32_0 : i32, i32
  }
  func.func @transform_5(%arg0: i32) -> (i32, i32, i32) {
    %c0_i32 = arith.constant 0 : i32
    %c0_i32_0 = arith.constant 0 : i32
    %c0_i32_1 = arith.constant 0 : i32
    %c0_i32_2 = arith.constant 0 : i32
    return %c0_i32, %c0_i32_0, %c0_i32_1 : i32, i32, i32
  }
  func.func @transform_6(%arg0: i32) -> (i32, i32, i32) {
    %c0_i32 = arith.constant 0 : i32
    %c0_i32_0 = arith.constant 0 : i32
    %c0_i32_1 = arith.constant 0 : i32
    %c0_i32_2 = arith.constant 0 : i32
    return %c0_i32, %c0_i32_0, %c0_i32_1 : i32, i32, i32
  }
  func.func @transform_7(%arg0: i32) -> (i32, i32, i32) {
    %c0_i32 = arith.constant 0 : i32
    %c0_i32_0 = arith.constant 0 : i32
    %c0_i32_1 = arith.constant 0 : i32
    %c0_i32_2 = arith.constant 0 : i32
    return %c0_i32, %c0_i32_0, %c0_i32_1 : i32, i32, i32
  }
  func.func @transform_8(%arg0: i32) -> (i32, i32, i32) {
    %c0_i32 = arith.constant 0 : i32
    %c0_i32_0 = arith.constant 0 : i32
    %c0_i32_1 = arith.constant 0 : i32
    %c0_i32_2 = arith.constant 0 : i32
    return %c0_i32, %c0_i32_0, %c0_i32_1 : i32, i32, i32
  }
  func.func @transform_9(%arg0: i32) -> (i32, i32, i32) {
    %c0_i32 = arith.constant 0 : i32
    %c0_i32_0 = arith.constant 0 : i32
    %c0_i32_1 = arith.constant 0 : i32
    %c0_i32_2 = arith.constant 0 : i32
    return %c0_i32, %c0_i32_0, %c0_i32_1 : i32, i32, i32
  }
  func.func @transform_10(%arg0: i32) -> (i32, i32, i32) {
    %c0_i32 = arith.constant 0 : i32
    %c0_i32_0 = arith.constant 0 : i32
    %c0_i32_1 = arith.constant 0 : i32
    %c0_i32_2 = arith.constant 0 : i32
    return %c0_i32, %c0_i32_0, %c0_i32_1 : i32, i32, i32
  }
  func.func @transform_11(%arg0: i32) -> (i32, i32, i32) {
    %c0_i32 = arith.constant 0 : i32
    %c0_i32_0 = arith.constant 0 : i32
    %c0_i32_1 = arith.constant 0 : i32
    %c0_i32_2 = arith.constant 0 : i32
    return %c0_i32, %c0_i32_0, %c0_i32_1 : i32, i32, i32
  }
  func.func @transform_12(%arg0: i32) -> (i32, i32, i32) {
    %c0_i32 = arith.constant 0 : i32
    %c0_i32_0 = arith.constant 0 : i32
    %c0_i32_1 = arith.constant 0 : i32
    %c0_i32_2 = arith.constant 0 : i32
    return %c0_i32, %c0_i32_0, %c0_i32_1 : i32, i32, i32
  }
  func.func @transform_13(%arg0: i32) -> (i32, i32, i32) {
    %c0_i32 = arith.constant 0 : i32
    %c0_i32_0 = arith.constant 0 : i32
    %c0_i32_1 = arith.constant 0 : i32
    %c0_i32_2 = arith.constant 0 : i32
    return %c0_i32, %c0_i32_0, %c0_i32_1 : i32, i32, i32
  }
  func.func @transform_14(%arg0: i32) -> (i32, i32, i32) {
    %c0_i32 = arith.constant 0 : i32
    %c0_i32_0 = arith.constant 0 : i32
    %c0_i32_1 = arith.constant 0 : i32
    %c0_i32_2 = arith.constant 0 : i32
    return %c0_i32, %c0_i32_0, %c0_i32_1 : i32, i32, i32
  }
  func.func @transform_15(%arg0: i32) -> (i32, i32, i32) {
    %c0_i32 = arith.constant 0 : i32
    %c0_i32_0 = arith.constant 0 : i32
    %c0_i32_1 = arith.constant 0 : i32
    %c0_i32_2 = arith.constant 0 : i32
    return %c0_i32, %c0_i32_0, %c0_i32_1 : i32, i32, i32
  }
  func.func @transform_16(%arg0: i32) -> (i32, i32, i32) {
    %c0_i32 = arith.constant 0 : i32
    %c0_i32_0 = arith.constant 0 : i32
    %c0_i32_1 = arith.constant 0 : i32
    %c0_i32_2 = arith.constant 0 : i32
    return %c0_i32, %c0_i32_0, %c0_i32_1 : i32, i32, i32
  }
  func.func @transform_17(%arg0: i32) -> (i32, i32) {
    %c0_i32 = arith.constant 0 : i32
    %c0_i32_0 = arith.constant 0 : i32
    %c0_i32_1 = arith.constant 0 : i32
    return %c0_i32, %c0_i32_0 : i32, i32
  }
  func.func @transform_18(%arg0: i32) -> (i32, i32) {
    %c0_i32 = arith.constant 0 : i32
    %c0_i32_0 = arith.constant 0 : i32
    %c0_i32_1 = arith.constant 0 : i32
    return %c0_i32, %c0_i32_0 : i32, i32
  }
  func.func @transform_19(%arg0: i32) -> (i32, i32) {
    %c0_i32 = arith.constant 0 : i32
    %c0_i32_0 = arith.constant 0 : i32
    %c0_i32_1 = arith.constant 0 : i32
    return %c0_i32, %c0_i32_0 : i32, i32
  }
  func.func @transform_20(%arg0: i32) -> (i32, i32, i32) {
    %c0_i32 = arith.constant 0 : i32
    %c0_i32_0 = arith.constant 0 : i32
    %c0_i32_1 = arith.constant 0 : i32
    return %arg0, %c0_i32, %c0_i32_0 : i32, i32, i32
  }
}

</mosaic_0001>

<bundles_post_ra>
// kernel: tpu_custom_call.1
= control target key start
LH: loop header
LB: loop body
LE: loop exit
PB: predicated region body
PF: predicated region fallthrough
CT: control target
= control target key end

     0   :  { %s6260_s0 = inlined_call_operand.vmem [shape: f32[2,24,48], index: 0, kind: input, shape index: {}]   ;;  %s6261_s1 = inlined_call_operand.vmem [shape: bf16[48,32], index: 1, kind: input, shape index: {}]   ;;  %s6262_s2 = inlined_call_operand.vmem [shape: f32[24,32], index: 2, kind: input, shape index: {}]   ;;  %s6263_s3 = inlined_call_operand.vmem [shape: f32[1,32], index: 3, kind: input, shape index: {}]   ;;  %s6264_s4 = inlined_call_operand.hbm [shape: f32[1,32], index: 4, kind: input, shape index: {}]   ;;  %s6265_s5 = inlined_call_operand.vmem [shape: f32[2,1,32], index: 5, kind: input, shape index: {}]   ;;  %s6266_s6 = inlined_call_operand.vmem [shape: f32[2,1,32], index: 6, kind: input, shape index: {}]   ;;  %s6267_s7 = inlined_call_operand.vmem [shape: bf16[2,32,96], index: 7, kind: input, shape index: {}]   ;;  %s6268_s8 = inlined_call_operand.vmem [shape: f32[2,1,96], index: 8, kind: input, shape index: {}]   ;;  %s6269_s9 = inlined_call_operand.vmem [shape: bf16[2,32,32], index: 9, kind: input, shape index: {}]   ;;  %s6270_s10 = inlined_call_operand.vmem [shape: f32[2,1,32], index: 10, kind: input, shape index: {}]   ;;  %s6271_s11 = inlined_call_operand.vmem [shape: f32[2,1,32], index: 11, kind: input, shape index: {}]   ;;  %s6272_s12 = inlined_call_operand.vmem [shape: f32[2,1,32], index: 12, kind: input, shape index: {}]   ;;  %s6273_s13 = inlined_call_operand.vmem [shape: bf16[2,32,128], index: 13, kind: input, shape index: {}]   ;;  %s6274_s14 = inlined_call_operand.vmem [shape: f32[2,1,128], index: 14, kind: input, shape index: {}]   ;;  %s6275_s15 = inlined_call_operand.vmem [shape: bf16[2,128,32], index: 15, kind: input, shape index: {}]   ;;  %s6276_s16 = inlined_call_operand.vmem [shape: f32[2,1,32], index: 16, kind: input, shape index: {}]   ;;  %s6277_s17 = inlined_call_operand.vmem [shape: f32[1,32], index: 17, kind: input, shape index: {}]   ;;  %s6278_s18 = inlined_call_operand.vmem [shape: f32[1,32], index: 18, kind: input, shape index: {}]   ;;  %s6279_s19 = inlined_call_operand.vmem [shape: bf16[32,16], index: 19, kind: input, shape index: {}]   ;;  %s6280_s20 = inlined_call_operand.hbm [shape: f32[2,1,16], index: 20, kind: output, shape index: {}]  }
   0x1   :  { %6318 = sst [smem:[#allocation14_spill]] %s6260_s0 }
   0x2   :  { %6319 = sst [smem:[#allocation15_spill]] %s6261_s1 }
   0x3   :  { %6320 = sst [smem:[#allocation16_spill]] %s6262_s2 }
   0x4   :  { %6321 = sst [smem:[#allocation17_spill]] %s6263_s3 }
   0x5   :  { %6322 = sst [smem:[#allocation18_spill]] %s6264_s4 }
   0x6   :  { %25 = vsyncpa [#allocation3], 0 }
   0x7   :  { %26 = vsyncpa [#allocation4], 0 }
   0x8   :  { %28 = vsyncpa [#allocation4 + $0x1], 0  ;;  %s5310_s1 = smov 0   ;;  %s5312_s22 = smov 0  }
   0x9   :  { %s5314_s23 = smov 0   ;;  %s5316_s24 = smov 0  }
   0xa LB: > { %6323 = sst [smem:[#allocation8_spill]] %s5172_s1  ;;  %s5331_s2 = sadd.s32 4294967295, %s5184_s24   ;;  %s5184_s24 = sphi %s5316_s24, %s6360_s24   ;;  %s5180_s23 = sphi %s5314_s23, %s6362_s23   ;;  %s5176_s22 = sphi %s5312_s22, %s6364_s22   ;;  %s5172_s1 = sphi %s5310_s1, %s6363_s1  }
   0xb   : > { %6324 = sst [smem:[#allocation9_spill]] %s5180_s23  ;;  %s3987_s25 = sadd.s32 4294967294, %s5184_s24  }
   0xc   : > { %6325 = sst [smem:[#allocation10_spill]] %s5184_s24  ;;  %s5335_s3 = sadd.s32 1, %s5184_s24  }
   0xd   : > { %6326 = sst [smem:[#allocation11_spill]] %s5335_s3  ;;  %s466_s26 = sadd.s32 1, %s5180_s23 }
   0xe   : > { %s463_s27 = ssub.s32 %s5184_s24, %s5335_s3  ;;  %p476_p0 = scmp.ne.s32.totalorder %s5180_s23, %s5176_s22 }
   0xf   : > { %p464_p1 = scmp.eq.s32.totalorder %s463_s27, 0  ;;  %p477_p2 = scmp.eq.s32.totalorder %s5331_s2, 1 }
  0x10   : > { %p482_p3 = scmp.ne.s32.totalorder %s5176_s22, %s5172_s1  ;;  %p483_p4 = scmp.eq.s32.totalorder %s3987_s25, 1 }
  0x11   : > { %s5346_s28 = scalar_select %p464_p1, %s5180_s23, %s466_s26  }
  0x12   : > { %p5348_p5 = por %p477_p2, %p476_p0  ;;  %p5352_p6 = por %p483_p4, %p482_p3 }
  0x13   : > { %6327 = sst [smem:[#allocation12_spill]] %s5346_s28  ;;  %p3988_p7 = scmp.ge.s32.totalorder %s5184_s24, 1 }
  0x14   : > { %s6328_s4 = scalar_select %p5348_p5, 1, 0 }
  0x15   : > { %s6329_s29 = scalar_select %p5352_p6, 1, 0 }
  0x16   : > { %p490_p8 = scmp.lt.s32.totalorder %s5184_s24, 3  ;;  %p6290_p9 = scmp.eq.s32.totalorder %s5331_s2, 0 }
  0x17   : > { %6330 = sst [smem:[#allocation13_spill]] %s6329_s29  ;;  %s5186_s0 = smov [#allocation2]  }
  0x18   : > { %p5359_p10 = pnand %p3988_p7, %p490_p8  ;;  %s512_s21 = sshll.u32 %s5186_s0, 4  ;;  %s513_s21 = int_to_ptr.vmem [resolvable:$true] %s512_s21 }
  0x19   : > { %s6333_s28 = sld [smem:[#allocation18_spill]] }
  0x1a   : > { %s6331_s30 = scalar_select %p5359_p10, 1, 0 }
  0x1b   : > { %p4734_p11 = pneg %p5359_p10 }
  0x1d   : > { %p5367_p12 = pnand %p6290_p9, %p4734_p11 }
  0x1f   : > { %s5090_s23 = scalar_lea.hbm %s6333_s28, 16  ;;  %p5092_p0 = pneg %p5367_p12 }
  0x20   : > { %p5091_p13 = scmp.ne.s32.totalorder %s6333_s28, %s5090_s23  ;;  %p5097_p3 = scmp.lt.u32.totalorder %s5090_s23, %s6333_s28 }
  0x22   : > { %p5093_p1 = pnand %p5092_p0, %p5091_p13 }
  0x24   : > { %p5094_p2 = pneg %p5093_p1 }
  0x26   : > { %p5099_p4 = pnand %p5097_p3, %p5094_p2 }
  0x28   : > { %5102 = shalt.err (!%p5099_p4)
}
  0x29   : > { %s5103_s24 = scalar_lea.vmem %s513_s21, 16  ;;  %s5110_s26 = scalar_lea.vmem %s513_s21, 32 }
  0x2a   : > { %p5104_p7 = scmp.ne.s32.totalorder %s513_s21, %s5103_s24  ;;  %p5111_p9 = scmp.lt.s32.totalorder %s513_s21, %s513_s21 }
  0x2b   : > { %p5112_p6 = scmp.lt.s32.totalorder %s5110_s26, %s5103_s24 }
  0x2c   : > { %p5106_p8 = pnand %p5104_p7, %p5092_p0 }
  0x2d   : > { %p5113_p5 = por %p5112_p6, %p5111_p9 }
  0x2e   : > { %p5107_p11 = pneg %p5106_p8 }
  0x30   : > { %p5114_p10 = pnand %p5113_p5, %p5107_p11 }
  0x32   : > { %5117 = shalt.err (!%p5114_p10)
}
  0x33   : > { %4737 = dma.hbm_to_vmem [thread:$0]  (!%p5367_p12), %s6333_s28, 16, %s513_s21, [#allocation3]  }
  0x34   : > { %p6334_p13 = scmp.ne.s32.totalorder %s6331_s30, 0 }
  0x35   : > { %p6335_p1 = scmp.eq.s32.totalorder (!%p6334_p13), %s5331_s2, 0 }
  0x36   : > { %578 = sbr.rel (%p6334_p13) target bundleno = 6452 (0x1934), region = 100 }
  0x3d   : > { %5163 = dma.done.wait (%p6335_p1), [#allocation3], 16   ;;  %p6336_p0 = pmov %p6335_p1 }
  0x3e   : > { %p635_p6 = scmp.lt.s32.totalorder %s5331_s2, 1  ;;  %s6337_s27 = sld [smem:[#allocation15_spill]]  ;;  %vm673_vm0 = vcmask 392192   ;;  %vm730_vm1 = vcmask 261120   ;;  %v4000_v48 = vld [vmem:[#allocation2] ss:$0 sm:$0xff] }
  0x3f   : > { %5165 = vsyncadd (%p6336_p0), [#allocation3], 4294967280  ;;  %s6338_s26 = sld [smem:[#allocation14_spill]]  ;;  %s6339_s25 = sld [smem:[#allocation16_spill]]  ;;  %vm5190_vm2 = vmmov 0   ;;  %vm939_vm3 = vcmask 64512  }
  0x40   : > { %s636_s1 = scalar_select %p635_p6, %s5331_s2, 1  ;;  %vm5484_vm4 = vmpackc.low %vm939_vm3, %vm939_vm3  ;;  %vm1038_vm6 = vcmask 195584   ;;  %vm1932_vm7 = vcmask 130048   ;;  %vm3829_vm8 = vcmask 253952   ;;  %vm3905_vm9 = vcmask 122880  }
  0x41   : > { %s6340_s29 = sld [smem:[#allocation17_spill]]  ;;  %s6316_s24 = smov 88  }
  0x42   : > { %s4727_s23 = smul.u32 24, %s636_s1  ;;  %s5188_s1 = smov 96  }
  0x43   : > { %s6306_s0 = smov 80   ;;  %s5194_s21 = smov 120  }
  0x44   : > { %v4905_v0 = vld [vmem:[%s6337_s27] sm:$0xff]   ;;  %v4906_v1 = vld [vmem:[%s6337_s27 + $0x8] sm:$0xff]   ;;  %v4907_v4 = vld [vmem:[%s6337_s27 + $0x10] sm:$0xff]   ;;  %s6312_s28 = smov 112   ;;  %s6298_s3 = smov 56  }
  0x45   : > { %s639_s30 = scalar_lea.vmem %s6338_s26, %s4727_s23  ;;  %4325 = vmatprep.subr.bf16.mxu1 %v4905_v0  ;;  %v654_v8 = vld [vmem:[%s6339_s25 + $0x10] sm:$0xff]  ;;  %v652_v9 = vld [vmem:[%s6339_s25] sm:$0xff]  ;;  %v653_v13 = vld [vmem:[%s6339_s25 + $0x8] sm:$0xff]  ;;  %s6300_s23 = smov 64  }
  0x46   : > { %4326 = vmatpush3.bf16.msra.mxu1 %v4905_v0  ;;  %v641_v2 = vld [vmem:[%s639_s30] sm:$0xff]  ;;  %v642_v3 = vld [vmem:[%s639_s30 + $0x8] sm:$0xff]  ;;  %v643_v6 = vld [vmem:[%s639_s30 + $0x10] sm:$0xff]  ;;  %s6314_s26 = smov 72   ;;  %s6302_s30 = smov 104  }
  0x47   : > { %4327 = vmatprep.subr.bf16.mxu1 %v4906_v1  ;;  %v650_v5 = vpack.c.bf16 %v642_v3, %v641_v2  ;;  %v651_v7 = vpack.c.bf16 %v643_v6, %v643_v6  ;;  %v3999_v46 = vld [vmem:[%s6340_s29] ss:$0 sm:$0xff]  ;;  %s6294_s29 = smov 48   ;;  %p6355_p9 = scmp.ne.s32.totalorder %s6328_s4, 0 }
  0x49   : > { %4331 = vmatprep.mubr.msk.bf16.mxu1 %vm673_vm0, %v650_v5 }
  0x4a   : > { %4328 = vmatpush3.bf16.msra.mxu1 %v4906_v1 }
  0x4b   : > { %4329 = vmatprep.subr.bf16.mxu1 %v4907_v4 }
  0x4e   : > { %4330 = vmatpush3.bf16.msra.mxu1 %v4907_v4 }
  0x51   : > { %4332 = vmatmul.mubr.msk.bf16.vlgmr.msra.gmra.mrb[0].mxu1 %vm673_vm0, %v651_v7 }
 0x124   : > { %v4333_v10 = vpop.f32.mrb[0].mxu1 }
 0x125   : > { %v723_v11 = vadd.f32 %v4333_v10, %v654_v8  ;;  %v714_v12 = vpop.f32.mrb[1].mxu1 }
 0x126   : > { %v715_v14 = vadd.f32 %v714_v12, %v652_v9  ;;  %v4334_v15 = vpop.f32.mrb[2].mxu1 }
 0x127   : > { %v717_v16 = vpop.f32.mrb[3].mxu1  ;;  %v737_v17 = vsel %vm730_vm1, %v723_v11, 0.0 }
 0x128   : > { %v718_v18 = vadd.f32 %v717_v16, %v653_v13  ;;  %738 = vadd.xlane.f32.xlu1 %v737_v17  ;;  %v731_v19 = vsel %vm730_vm1, %v715_v14, 0.0  ;;  %v4908_v13 = vld [vmem:[%s6267_s7] sm:$0xff]  }
 0x129   : > { %732 = vadd.xlane.f32.xlu0 %v731_v19  ;;  %4335 = vmatprep.subr.bf16.mxu1 %v4908_v13 }
 0x12a   : > { %v734_v20 = vsel %vm730_vm1, %v718_v18, 0.0  ;;  %4336 = vmatpush3.bf16.msra.mxu1 %v4908_v13 }
 0x12d   : > { %735 = vadd.xlane.f32.xlu0 %v734_v20 }
 0x1b5   : > { %v739_v21 = vpop.xlane.xlu1 %738 }
 0x1b6   : > { %v743_v22 = vmul.f32 0.03125, %v739_v21  ;;  %v733_v23 = vpop.xlane.xlu0 %732 }
 0x1b7   : > { %v741_v24 = vmul.f32 0.03125, %v733_v23 }
 0x1b8   : > { %v746_v25 = vsub.f32 %v723_v11, %v743_v22 }
 0x1b9   : > { %v744_v26 = vsub.f32 %v715_v14, %v741_v24  ;;  %v4909_v14 = vld [vmem:[%s6267_s7 + $0x8] sm:$0xff]  }
 0x1ba   : > { %v736_v27 = vpop.xlane.xlu0 %735  ;;  %v749_v32 = vmul.f32 %v746_v25, %v746_v25  ;;  %4337 = vmatprep.subr.bf16.mxu1 %v4909_v14 }
 0x1bb   : > { %v742_v28 = vmul.f32 0.03125, %v736_v27  ;;  %v747_v29 = vmul.f32 %v744_v26, %v744_v26  ;;  %4338 = vmatpush3.bf16.msra.mxu1 %v4909_v14 }
 0x1bc   : > { %v756_v34 = vsel %vm730_vm1, %v749_v32, 0.0  ;;  %v4002_v32 = vld [vmem:[%s6266_s6] ss:$0 sm:$0xff] }
 0x1bd   : > { %v745_v30 = vsub.f32 %v718_v18, %v742_v28  ;;  %v750_v31 = vsel %vm730_vm1, %v747_v29, 0.0 }
 0x1be   : > { %751 = vadd.xlane.f32.xlu1 %v750_v31 }
 0x1bf   : > { %v748_v33 = vmul.f32 %v745_v30, %v745_v30 }
 0x1c1   : > { %v753_v35 = vsel %vm730_vm1, %v748_v33, 0.0 }
 0x1c2   : > { %757 = vadd.xlane.f32.xlu1 %v756_v34  ;;  %754 = vadd.xlane.f32.xlu0 %v753_v35 }
 0x24b   : > { %v752_v36 = vpop.xlane.xlu1 %751 }
 0x24c   : > { %v759_v37 = vmul.f32 0.03125, %v752_v36 }
 0x24e   : > { %v762_v38 = vadd.f32 1e-05, %v759_v37 }
 0x24f   : > { %v758_v39 = vpop.xlane.xlu1 %757  ;;  %v755_v40 = vpop.xlane.xlu0 %754 }
 0x250   : > { %4938 = vrsqrt.f32 %v762_v38  ;;  %v761_v41 = vmul.f32 0.03125, %v758_v39  ;;  %v760_v42 = vmul.f32 0.03125, %v755_v40  ;;  %v4003_v40 = vld [vmem:[%s6268_s8] ss:$0 sm:$0xff] }
 0x252   : > { %v764_v43 = vadd.f32 1e-05, %v761_v41  ;;  %v763_v44 = vadd.f32 1e-05, %v760_v42  ;;  %v5187_v41 = vmov 0.0|0.0  }
 0x253   : > { %4671 = vmatprep.subr.bf16.mxu1 %v5187_v41  ;;  %4675 = vmatprep.subr.bf16.mxu0 %v5187_v41 }
 0x254   : > { %4940 = vrsqrt.f32 %v764_v43 }
 0x255   : > { %4942 = vrsqrt.f32 %v763_v44 }
 0x25a   : > { %v4939_v45 = vpop.eup %4938 }
 0x25b   : > { %v768_v47 = vmul.f32 %v4939_v45, %v744_v26  ;;  %v4001_v26 = vld [vmem:[%s6265_s5] ss:$0 sm:$0xff] }
 0x25d   : > { %v777_v49 = vmul.f32 %v3999_v46, %v768_v47 }
 0x25e   : > { %v4941_v50 = vpop.eup %4940 }
 0x25f   : > { %v4943_v51 = vpop.eup %4942  ;;  %v5425_v52 = vadd.f32 %v4000_v48, %v777_v49  ;;  %v770_v53 = vmul.f32 %v4941_v50, %v746_v25  ;;  %v5191_v50 = vmov 0.0  }
 0x260   : > { %v769_v54 = vmul.f32 %v4943_v51, %v745_v30  ;;  %4364 = vmatprep.mubr.msk.f32.mxu0 %vm5190_vm2, %v5191_v50 }
 0x261   : > { %v794_v55 = vsel %vm730_vm1, %v5425_v52, 0.0  ;;  %v779_v56 = vmul.f32 %v3999_v46, %v770_v53 }
 0x262   : > { %795 = vadd.xlane.f32.xlu0 %v794_v55  ;;  %v778_v57 = vmul.f32 %v3999_v46, %v769_v54 }
 0x263   : > { %v5429_v58 = vadd.f32 %v4000_v48, %v779_v56 }
 0x264   : > { %v5431_v59 = vadd.f32 %v4000_v48, %v778_v57 }
 0x265   : > { %v800_v60 = vsel %vm730_vm1, %v5429_v58, 0.0 }
 0x266   : > { %801 = vadd.xlane.f32.xlu0 %v800_v60  ;;  %v797_v61 = vsel %vm730_vm1, %v5431_v59, 0.0 }
 0x267   : > { %798 = vadd.xlane.f32.xlu1 %v797_v61 }
 0x2ef   : > { %v796_v62 = vpop.xlane.xlu0 %795 }
 0x2f0   : > { %v803_v63 = vmul.f32 0.03125, %v796_v62 }
 0x2f2   : > { %v806_v0 = vsub.f32 %v5425_v52, %v803_v63 }
 0x2f3   : > { %v802_v1 = vpop.xlane.xlu0 %801 }
 0x2f4   : > { %v799_v2 = vpop.xlane.xlu1 %798  ;;  %v805_v3 = vmul.f32 0.03125, %v802_v1  ;;  %v809_v4 = vmul.f32 %v806_v0, %v806_v0 }
 0x2f5   : > { %v804_v5 = vmul.f32 0.03125, %v799_v2 }
 0x2f6   : > { %v808_v6 = vsub.f32 %v5429_v58, %v805_v3  ;;  %v812_v7 = vsel %vm730_vm1, %v809_v4, 0.0 }
 0x2f7   : > { %v807_v8 = vsub.f32 %v5431_v59, %v804_v5  ;;  %813 = vadd.xlane.f32.xlu1 %v812_v7 }
 0x2f8   : > { %v811_v9 = vmul.f32 %v808_v6, %v808_v6 }
 0x2f9   : > { %v810_v10 = vmul.f32 %v807_v8, %v807_v8 }
 0x2fa   : > { %v818_v11 = vsel %vm730_vm1, %v811_v9, 0.0 }
 0x2fb   : > { %v815_v12 = vsel %vm730_vm1, %v810_v10, 0.0  ;;  %819 = vadd.xlane.f32.xlu1 %v818_v11 }
 0x2fc   : > { %816 = vadd.xlane.f32.xlu0 %v815_v12 }
 0x384   : > { %v814_v15 = vpop.xlane.xlu1 %813 }
 0x385   : > { %v821_v16 = vmul.f32 0.03125, %v814_v15 }
 0x387   : > { %v824_v17 = vadd.f32 1e-05, %v821_v16 }
 0x388   : > { %v820_v18 = vpop.xlane.xlu1 %819 }
 0x389   : > { %4944 = vrsqrt.f32 %v824_v17  ;;  %v823_v19 = vmul.f32 0.03125, %v820_v18  ;;  %v817_v20 = vpop.xlane.xlu0 %816 }
 0x38a   : > { %v822_v21 = vmul.f32 0.03125, %v817_v20 }
 0x38b   : > { %v826_v22 = vadd.f32 1e-05, %v823_v19 }
 0x38c   : > { %v825_v23 = vadd.f32 1e-05, %v822_v21 }
 0x38d   : > { %4946 = vrsqrt.f32 %v826_v22 }
 0x38e   : > { %4948 = vrsqrt.f32 %v825_v23 }
 0x393   : > { %v4945_v24 = vpop.eup %4944 }
 0x394   : > { %v830_v25 = vmul.f32 %v4945_v24, %v806_v0  ;;  %v789_v0 = vlaneseq }
 0x396   : > { %v839_v31 = vmul.f32 %v4001_v26, %v830_v25  ;;  %v5506_v1 = vand.u32 127, %v789_v0 }
 0x397   : > { %v4947_v27 = vpop.eup %4946 }
 0x398   : > { %v4949_v28 = vpop.eup %4948  ;;  %v832_v29 = vmul.f32 %v4947_v27, %v808_v6  ;;  %v848_v36 = vadd.f32 %v4002_v32, %v839_v31  ;;  %vm791_vm5 = vcmp.lt.s32.totalorder %v5506_v1, 17 }
 0x399   : > { %v831_v30 = vmul.f32 %v4949_v28, %v807_v8 }
 0x39a   : > { %v841_v33 = vmul.f32 %v4001_v26, %v832_v29 }
 0x39b   : > { %v840_v34 = vmul.f32 %v4001_v26, %v831_v30 }
 0x39c   : > { %v850_v35 = vadd.f32 %v4002_v32, %v841_v33 }
 0x39d   : > { %v849_v37 = vadd.f32 %v4002_v32, %v840_v34 }
 0x39e   : > { %v856_v38 = vpack.c.bf16 %v850_v35, %v850_v35 }
 0x39f   : > { %v855_v39 = vpack.c.bf16 %v849_v37, %v848_v36 }
 0x3a1   : > { %4339 = vmatprep.mubr.msk.bf16.mxu1 %vm730_vm1, %v855_v39 }
 0x3a2   : > { %4340 = vmatmul.mubr.msk.bf16.vlgmr.msra.gmra.mrb[4].mxu1 %vm730_vm1, %v856_v38 }
 0x3a3   : > { %4349 = vmatprep.mubr.msk.f32.mxu1 %vm5190_vm2, %v5191_v50 }
 0x475   : > { %v4341_v42 = vpop.f32.mrb[4].mxu1 }
 0x476   : > { %v5462_v43 = vadd.f32 %v4341_v42, %v4003_v40  ;;  %v916_v44 = vpop.f32.mrb[5].mxu1 }
 0x477   : > { %v4342_v45 = vpop.f32.mrb[6].mxu1  ;;  %v5466_v47 = vadd.f32 %v4003_v40, %v916_v44 }
 0x478   : > { %937 = vrot.lane.b32.xlu1 %v5462_v43, %s5188_s1  ;;  %v919_v46 = vpop.f32.mrb[7].mxu1 }
 0x479   : > { %v5468_v48 = vadd.f32 %v4003_v40, %v919_v46 }
 0x47b   : > { %v5472_v49 = vpack.i.bf16 %v5468_v48, %v5466_v47 }
 0x47d   : > { %4801 = vrot.lane.b32.xlu1 %v5472_v49, %s6300_s23  ;;  %4796 = vrot.lane.b32.xlu0 %v5472_v49, %s5188_s1 }
 0x4ea   : > { %v938_v51 = vpop.permute.xlu1 %937 }
 0x4ef   : > { %v4802_v53 = vpop.permute.xlu1 %4801  ;;  %v4797_v54 = vpop.permute.xlu0 %4796 }
 0x4f0   : > { %v4799_v55 = vunpack.i.h.bf16 %v4797_v54  ;;  %v4798_v56 = vunpack.i.l.bf16 %v4797_v54  ;;  %v4804_v57 = vunpack.i.h.bf16 %v4802_v53  ;;  %v4803_v60 = vunpack.i.l.bf16 %v4802_v53 }
 0x4f2   : > { %v4672_v62 = vpack.c.bf16 %v4799_v55, %v4798_v56  ;;  %v4676_v63 = vpack.c.bf16 %v4804_v57, %v4803_v60 }
 0x4f4   : > { %4674 = vmatpush3.bf16.xpose.msk.msra.mxu1 %vm5484_vm4, %v4672_v62  ;;  %4677 = vmatpush3.bf16.msra.mxu0 %v4676_v63 }
 0x4f5   : > { %4347 = vmatprep.subr.mxu1 %v5191_v50  ;;  %4362 = vmatprep.subr.mxu0 %v5191_v50 }
 0x4fc   : > { %4348 = vmatpush3.xpose.msk.msra.mxu1 %vm939_vm3, %v938_v51 }
 0x4fd   : > { %4682 = vmatprep.subr.bf16.mxu1 %v5187_v41 }
 0x4ff   : > { %4350 = vmatmul.mubr.msk.f32.vlgmr.msra.gmra.mrb[8].mxu1 %vm939_vm3, %v5466_v47 }
 0x500   : > { %4352 = vmatprep.mubr.msk.f32.mxu1 %vm5190_vm2, %v5191_v50 }
 0x503   : > { %4353 = vmatmul.mubr.msk.f32.gmra.mrb[10].mxu1 %vm939_vm3, %v5468_v48 }
 0x504   : > { %4355 = vmatprep.mubr.msk.f32.mxu1 %vm5190_vm2, %v5191_v50 }
 0x507   : > { %4356 = vmatmul.mubr.msk.f32.gmra.mrb[12].mxu1 %vm939_vm3, %v5462_v43 }
 0x508   : > { %4394 = vmatprep.mubr.msk.f32.mxu1 %vm5190_vm2, %v5191_v50 }
 0x5d2   : > { %v1018_v2 = vpop.f32.mrb[8].mxu1 }
 0x5d3   : > { %v1032_v3 = vmul.f32 0.35355338, %v1018_v2  ;;  %v4351_v4 = vpop.f32.mrb[9].mxu1 }
 0x5d5   : > { %v1035_v5 = vsel %vm791_vm5, %v1032_v3, -1e+30 }
 0x5d6   : > { %v1023_v6 = vpop.f32.mrb[10].mxu1  ;;  %v1039_v7 = vsel %vm1038_vm6, %v1035_v5, -inf }
 0x5d7   : > { %v1033_v8 = vmul.f32 0.35355338, %v1023_v6  ;;  %1040 = vmax.xlane.f32.xlu1 %v1039_v7  ;;  %v4354_v9 = vpop.f32.mrb[11].mxu1 }
 0x5d9   : > { %v1036_v10 = vsel %vm791_vm5, %v1033_v8, -1e+30 }
 0x5da   : > { %v1028_v11 = vpop.f32.mrb[12].mxu1  ;;  %v1042_v12 = vsel %vm1038_vm6, %v1036_v10, -inf }
 0x5db   : > { %v1034_v13 = vmul.f32 0.35355338, %v1028_v11  ;;  %1043 = vmax.xlane.f32.xlu0 %v1042_v12  ;;  %v4357_v14 = vpop.f32.mrb[13].mxu1 }
 0x5dd   : > { %v1037_v15 = vsel %vm791_vm5, %v1034_v13, -1e+30 }
 0x5de   : > { %v1045_v16 = vsel %vm1038_vm6, %v1037_v15, -inf }
 0x5df   : > { %1046 = vmax.xlane.f32.xlu0 %v1045_v16 }
 0x5e8   : > { %4806 = vrot.lane.b32.xlu1 %v5472_v49, %s6316_s24 }
 0x5ec   : > { %1180 = vrot.lane.b32.xlu1 %v5462_v43, %s6316_s24  ;;  %s6343_s24 = smov 88  }
 0x5f0   : > { %4811 = vrot.lane.b32.xlu1 %v5472_v49, %s6306_s0 }
 0x5f4   : > { %1172 = vrot.lane.b32.xlu1 %v5468_v48, %s5194_s21 }
 0x5f5   : > { %1070 = vrot.lane.b32.xlu0 %v5462_v43, %s6300_s23  ;;  %s6308_s23 = smov 24  }
 0x5f8   : > { %1421 = vrot.lane.b32.xlu1 %v5462_v43, %s6306_s0  ;;  %s6348_s0 = smov 64  }
 0x5f9   : > { %1170 = vrot.lane.b32.xlu0 %v5466_v47, %s5194_s21 }
 0x5fc   : > { %1411 = vrot.lane.b32.xlu1 %v5466_v47, %s6312_s28 }
 0x5fd   : > { %1174 = vrot.lane.b32.xlu0 %v5462_v43, %s5194_s21 }
 0x600   : > { %1415 = vrot.lane.b32.xlu1 %v5462_v43, %s6312_s28 }
 0x601   : > { %4816 = vrot.lane.b32.xlu0 %v5472_v49, %s6314_s26 }
 0x604   : > { %1652 = vrot.lane.b32.xlu1 %v5466_v47, %s6302_s30 }
 0x605   : > { %1413 = vrot.lane.b32.xlu0 %v5468_v48, %s6312_s28  ;;  %s6351_s28 = smov 40  }
 0x608   : > { %1656 = vrot.lane.b32.xlu1 %v5462_v43, %s6302_s30 }
 0x609   : > { %1662 = vrot.lane.b32.xlu0 %v5462_v43, %s6314_s26  ;;  %s6344_s26 = smov 72  }
 0x60c   : > { %1311 = vrot.lane.b32.xlu1 %v5462_v43, %s6298_s3 }
 0x60d   : > { %1654 = vrot.lane.b32.xlu0 %v5468_v48, %s6302_s30  ;;  %s6349_s30 = smov 56  }
 0x611   : > { %4821 = vrot.lane.b32.xlu0 %v5472_v49, %s6298_s3  ;;  %s6310_s3 = smov 16  }
 0x664   : > { %v1041_v17 = vpop.xlane.xlu1 %1040 }
 0x665   : > { %v1048_v18 = vsub.f32 %v1035_v5, %v1041_v17 }
 0x667   : > { %v1051_v19 = vmul.f32 1.442695, %v1048_v18 }
 0x668   : > { %v4807_v20 = vpop.permute.xlu1 %4806  ;;  %v1044_v21 = vpop.xlane.xlu0 %1043 }
 0x669   : > { %4950 = vpow2.f32 %v1051_v19  ;;  %v1049_v22 = vsub.f32 %v1036_v10, %v1044_v21  ;;  %v4809_v31 = vunpack.i.h.bf16 %v4807_v20  ;;  %v4808_v32 = vunpack.i.l.bf16 %v4807_v20 }
 0x66b   : > { %v1053_v23 = vmul.f32 1.442695, %v1049_v22  ;;  %v4679_v36 = vpack.c.bf16 %v4809_v31, %v4808_v32 }
 0x66c   : > { %v1181_v24 = vpop.permute.xlu1 %1180  ;;  %v1047_v25 = vpop.xlane.xlu0 %1046 }
 0x66d   : > { %4952 = vpow2.f32 %v1053_v23  ;;  %v1050_v26 = vsub.f32 %v1037_v15, %v1047_v25 }
 0x66f   : > { %v1055_v27 = vmul.f32 1.442695, %v1050_v26 }
 0x670   : > { %v4812_v28 = vpop.permute.xlu1 %4811  ;;  %v1071_v29 = vpop.permute.xlu0 %1070 }
 0x671   : > { %4954 = vpow2.f32 %v1055_v27  ;;  %4363 = vmatpush3.msra.mxu0 %v1071_v29  ;;  %v4814_v44 = vunpack.i.h.bf16 %v4812_v28  ;;  %v4813_v45 = vunpack.i.l.bf16 %v4812_v28 }
 0x672   : > { %4678 = vmatprep.subr.bf16.mxu0 %v5187_v41 }
 0x673   : > { %v5555_v30 = vpop.eup %4950  ;;  %v4686_v48 = vpack.c.bf16 %v4814_v44, %v4813_v45 }
 0x674   : > { %v1173_v33 = vpop.permute.xlu1 %1172  ;;  %4365 = vmatmul.mubr.msk.f32.vlgmr.msra.gmra.mrb[0].mxu0 %vm1038_vm6, %v5555_v30  ;;  %v1171_v34 = vpop.permute.xlu0 %1170 }
 0x675   : > { %4367 = vmatprep.mubr.msk.f32.mxu0 %vm5190_vm2, %v5191_v50 }
 0x677   : > { %v5561_v35 = vpop.eup %4952 }
 0x678   : > { %v1422_v37 = vpop.permute.xlu1 %1421  ;;  %4368 = vmatmul.mubr.msk.f32.gmra.mrb[2].mxu0 %vm1038_vm6, %v5561_v35  ;;  %v1175_v38 = vpop.permute.xlu0 %1174 }
 0x679   : > { %4681 = vmatpush3.bf16.xpose.msk.msra.mxu0 %vm5484_vm4, %v4679_v36  ;;  %4370 = vmatprep.mubr.msk.f32.mxu0 %vm5190_vm2, %v5191_v50 }
 0x67a   : > { %4377 = vmatprep.subr.mxu0 %v5191_v50 }
 0x67b   : > { %v5570_v39 = vpop.eup %4954 }
 0x67c   : > { %v1412_v40 = vpop.permute.xlu1 %1411  ;;  %4371 = vmatmul.mubr.msk.f32.gmra.mrb[4].mxu0 %vm1038_vm6, %v5570_v39  ;;  %v4817_v42 = vpop.permute.xlu0 %4816 }
 0x67d   : > { %4379 = vmatprep.mubr.msk.f32.mxu0 %vm5190_vm2, %v5191_v50  ;;  %v4819_v55 = vunpack.i.h.bf16 %v4817_v42  ;;  %v4818_v56 = vunpack.i.l.bf16 %v4817_v42 }
 0x67f   : > { %v4693_v0 = vpack.c.bf16 %v4819_v55, %v4818_v56 }
 0x680   : > { %v1414_v46 = vpop.permute.xlu0 %1413  ;;  %v1416_v47 = vpop.permute.xlu1 %1415 }
 0x681   : > { %4378 = vmatpush3.xpose.msk.msra.mxu0 %vm939_vm3, %v1181_v24 }
 0x682   : > { %4685 = vmatprep.subr.bf16.mxu0 %v5187_v41 }
 0x684   : > { %4380 = vmatmul.mubr.msk.f32.vlgmr.msra.gmra.mrb[6].mxu0 %vm939_vm3, %v1171_v34  ;;  %v1663_v51 = vpop.permute.xlu0 %1662  ;;  %v1653_v53 = vpop.permute.xlu1 %1652 }
 0x685   : > { %4688 = vmatpush3.bf16.xpose.msk.msra.mxu0 %vm5484_vm4, %v4686_v48  ;;  %4382 = vmatprep.mubr.msk.f32.mxu0 %vm5190_vm2, %v5191_v50 }
 0x686   : > { %4407 = vmatprep.subr.mxu0 %v5191_v50 }
 0x688   : > { %4383 = vmatmul.mubr.msk.f32.gmra.mrb[8].mxu0 %vm939_vm3, %v1173_v33  ;;  %v1655_v54 = vpop.permute.xlu0 %1654  ;;  %v1657_v63 = vpop.permute.xlu1 %1656 }
 0x689   : > { %4385 = vmatprep.mubr.msk.f32.mxu0 %vm5190_vm2, %v5191_v50 }
 0x68c   : > { %4386 = vmatmul.mubr.msk.f32.gmra.mrb[10].mxu0 %vm939_vm3, %v1175_v38  ;;  %v4822_v57 = vpop.permute.xlu0 %4821  ;;  %v1312_v3 = vpop.permute.xlu1 %1311 }
 0x68d   : > { %4408 = vmatpush3.xpose.msk.msra.mxu0 %vm939_vm3, %v1422_v37  ;;  %v4824_v60 = vunpack.i.h.bf16 %v4822_v57  ;;  %v4823_v62 = vunpack.i.l.bf16 %v4822_v57  ;;  %4409 = vmatprep.mubr.msk.f32.mxu0 %vm5190_vm2, %v5191_v50 }
 0x68e   : > { %4692 = vmatprep.subr.bf16.mxu0 %v5187_v41 }
 0x68f   : > { %v4683_v2 = vpack.c.bf16 %v4824_v60, %v4823_v62 }
 0x690   : > { %4410 = vmatmul.mubr.msk.f32.vlgmr.msra.gmra.mrb[12].mxu0 %vm939_vm3, %v1412_v40 }
 0x691   : > { %4695 = vmatpush3.bf16.xpose.msk.msra.mxu0 %vm5484_vm4, %v4693_v0  ;;  %4684 = vmatpush3.bf16.msra.mxu1 %v4683_v2 }
 0x692   : > { %4412 = vmatprep.mubr.msk.f32.mxu0 %vm5190_vm2, %v5191_v50  ;;  %4392 = vmatprep.subr.mxu1 %v5191_v50 }
 0x693   : > { %4437 = vmatprep.subr.mxu0 %v5191_v50 }
 0x694   : > { %4413 = vmatmul.mubr.msk.f32.gmra.mrb[14].mxu0 %vm939_vm3, %v1414_v46 }
 0x695   : > { %4393 = vmatpush3.msra.mxu1 %v1312_v3  ;;  %4415 = vmatprep.mubr.msk.f32.mxu0 %vm5190_vm2, %v5191_v50 }
 0x696   : > { %4689 = vmatprep.subr.bf16.mxu1 %v5187_v41 }
 0x698   : > { %4416 = vmatmul.mubr.msk.f32.gmra.mrb[16].mxu0 %vm939_vm3, %v1416_v47 }
 0x699   : > { %4438 = vmatpush3.xpose.msk.msra.mxu0 %vm939_vm3, %v1663_v51  ;;  %4439 = vmatprep.mubr.msk.f32.mxu0 %vm5190_vm2, %v5191_v50 }
 0x69c   : > { %4440 = vmatmul.mubr.msk.f32.vlgmr.msra.gmra.mrb[18].mxu0 %vm939_vm3, %v1653_v53 }
 0x69d   : > { %4442 = vmatprep.mubr.msk.f32.mxu0 %vm5190_vm2, %v5191_v50 }
 0x6a0   : > { %4443 = vmatmul.mubr.msk.f32.gmra.mrb[20].mxu0 %vm939_vm3, %v1655_v54 }
 0x6a1   : > { %4445 = vmatprep.mubr.msk.f32.mxu0 %vm5190_vm2, %v5191_v50 }
 0x6a4   : > { %4446 = vmatmul.mubr.msk.f32.gmra.mrb[22].mxu0 %vm939_vm3, %v1657_v63 }
 0x747   : > { %v5614_v4 = vpop.f32.mrb[0].mxu0 }
 0x748   : > { %v4366_v5 = vpop.f32.mrb[1].mxu0 }
 0x74b   : > { %v5616_v6 = vpop.f32.mrb[2].mxu0 }
 0x74c   : > { %v4369_v7 = vpop.f32.mrb[3].mxu0 }
 0x74f   : > { %v5618_v8 = vpop.f32.mrb[4].mxu0 }
 0x750   : > { %v4372_v9 = vpop.f32.mrb[5].mxu0 }
 0x757   : > { %v1260_v10 = vpop.f32.mrb[6].mxu0 }
 0x758   : > { %v1274_v11 = vmul.f32 0.35355338, %v1260_v10  ;;  %v4381_v12 = vpop.f32.mrb[7].mxu0 }
 0x75a   : > { %v1277_v13 = vsel %vm791_vm5, %v1274_v11, -1e+30 }
 0x75b   : > { %v1265_v14 = vpop.f32.mrb[8].mxu0  ;;  %v1280_v15 = vsel %vm1038_vm6, %v1277_v13, -inf }
 0x75c   : > { %v1275_v16 = vmul.f32 0.35355338, %v1265_v14  ;;  %1281 = vmax.xlane.f32.xlu0 %v1280_v15  ;;  %v4384_v17 = vpop.f32.mrb[9].mxu0 }
 0x75e   : > { %v1278_v18 = vsel %vm791_vm5, %v1275_v16, -1e+30 }
 0x75f   : > { %v1270_v19 = vpop.f32.mrb[10].mxu0  ;;  %v1283_v20 = vsel %vm1038_vm6, %v1278_v18, -inf }
 0x760   : > { %v1276_v21 = vmul.f32 0.35355338, %v1270_v19  ;;  %1284 = vmax.xlane.f32.xlu1 %v1283_v20  ;;  %v4387_v22 = vpop.f32.mrb[11].mxu0 }
 0x762   : > { %v1279_v23 = vsel %vm791_vm5, %v1276_v21, -1e+30 }
 0x763   : > { %v1501_v24 = vpop.f32.mrb[12].mxu0  ;;  %v1286_v25 = vsel %vm1038_vm6, %v1279_v23, -inf }
 0x764   : > { %v1515_v26 = vmul.f32 0.35355338, %v1501_v24  ;;  %1287 = vmax.xlane.f32.xlu0 %v1286_v25  ;;  %v4411_v27 = vpop.f32.mrb[13].mxu0 }
 0x766   : > { %v1518_v28 = vsel %vm791_vm5, %v1515_v26, -1e+30 }
 0x767   : > { %v1506_v29 = vpop.f32.mrb[14].mxu0  ;;  %v1521_v31 = vsel %vm1038_vm6, %v1518_v28, -inf }
 0x768   : > { %v1516_v32 = vmul.f32 0.35355338, %v1506_v29  ;;  %1522 = vmax.xlane.f32.xlu0 %v1521_v31  ;;  %v4414_v33 = vpop.f32.mrb[15].mxu0 }
 0x76a   : > { %v1519_v34 = vsel %vm791_vm5, %v1516_v32, -1e+30 }
 0x76b   : > { %v1511_v36 = vpop.f32.mrb[16].mxu0  ;;  %v1524_v37 = vsel %vm1038_vm6, %v1519_v34, -inf }
 0x76c   : > { %1525 = vmax.xlane.f32.xlu0 %v1524_v37  ;;  %v4417_v38 = vpop.f32.mrb[17].mxu0  ;;  %v1517_v48 = vmul.f32 0.35355338, %v1511_v36 }
 0x76e   : > { %v5641_v53 = vsel %vm791_vm5, %v1517_v48, -1e+30 }
 0x76f   : > { %v1742_v40 = vpop.f32.mrb[18].mxu0  ;;  %v1527_v54 = vsel %vm1038_vm6, %v5641_v53, -inf }
 0x770   : > { %v4441_v42 = vpop.f32.mrb[19].mxu0  ;;  %v1756_v51 = vmul.f32 0.35355338, %v1742_v40 }
 0x771   : > { %1552 = vrot.lane.b32.xlu1 %v5462_v43, %s6294_s29 }
 0x772   : > { %v5647_v56 = vsel %vm791_vm5, %v1756_v51, -1e+30 }
 0x773   : > { %v1747_v44 = vpop.f32.mrb[20].mxu0  ;;  %v1762_v57 = vsel %vm1038_vm6, %v5647_v56, -inf }
 0x774   : > { %v4444_v45 = vpop.f32.mrb[21].mxu0  ;;  %v1757_v55 = vmul.f32 0.35355338, %v1747_v44 }
 0x776   : > { %v5653_v62 = vsel %vm791_vm5, %v1757_v55, -1e+30 }
 0x777   : > { %v1752_v46 = vpop.f32.mrb[22].mxu0  ;;  %v1765_v63 = vsel %vm1038_vm6, %v5653_v62, -inf }
 0x778   : > { %v4447_v47 = vpop.f32.mrb[23].mxu0  ;;  %v1758_v60 = vmul.f32 0.35355338, %v1752_v46 }
 0x77a   : > { %v5659_v0 = vsel %vm791_vm5, %v1758_v60, -1e+30 }
 0x77b   : > { %v1768_v2 = vsel %vm1038_vm6, %v5659_v0, -inf }
 0x782   : > { %4826 = vrot.lane.b32.xlu0 %v5472_v49, %s6294_s29  ;;  %s6296_s29 = smov 40  }
 0x795   : > { %1528 = vmax.xlane.f32.xlu1 %v1527_v54 }
 0x799   : > { %1763 = vmax.xlane.f32.xlu1 %v1762_v57 }
 0x79d   : > { %1766 = vmax.xlane.f32.xlu1 %v1765_v63 }
 0x7a1   : > { %1769 = vmax.xlane.f32.xlu0 %v1768_v2 }
 0x7ae   : > { %4831 = vrot.lane.b32.xlu1 %v5472_v49, %s6296_s29 }
 0x7b7   : > { %1793 = vrot.lane.b32.xlu0 %v5462_v43, %s6296_s29  ;;  %s6304_s29 = smov 8  }
 0x7e9   : > { %v1282_v3 = vpop.xlane.xlu0 %1281 }
 0x7ea   : > { %v1289_v5 = vsub.f32 %v1277_v13, %v1282_v3 }
 0x7ec   : > { %v1292_v7 = vmul.f32 1.442695, %v1289_v5 }
 0x7ed   : > { %v1285_v9 = vpop.xlane.xlu1 %1284 }
 0x7ee   : > { %4956 = vpow2.f32 %v1292_v7  ;;  %v1290_v10 = vsub.f32 %v1278_v18, %v1285_v9  ;;  %v1057_v9 = vsel %vm1038_vm6, %v5555_v30, 0.0 }
 0x7f0   : > { %v1294_v11 = vmul.f32 1.442695, %v1290_v10 }
 0x7f1   : > { %v1288_v12 = vpop.xlane.xlu0 %1287  ;;  %v1553_v31 = vpop.permute.xlu1 %1552 }
 0x7f2   : > { %4958 = vpow2.f32 %v1294_v11  ;;  %v1291_v14 = vsub.f32 %v1279_v23, %v1288_v12  ;;  %v1063_v11 = vsel %vm1038_vm6, %v5570_v39, 0.0  ;;  %v1060_v12 = vsel %vm1038_vm6, %v5561_v35, 0.0 }
 0x7f4   : > { %v1296_v15 = vmul.f32 1.442695, %v1291_v14 }
 0x7f5   : > { %v1523_v16 = vpop.xlane.xlu0 %1522 }
 0x7f6   : > { %4960 = vpow2.f32 %v1296_v15  ;;  %v1530_v17 = vsub.f32 %v1518_v28, %v1523_v16 }
 0x7f8   : > { %v4957_v19 = vpop.eup %4956  ;;  %v1533_v20 = vmul.f32 1.442695, %v1530_v17 }
 0x7f9   : > { %v1526_v49 = vpop.xlane.xlu0 %1525  ;;  %4395 = vmatmul.mubr.msk.f32.vlgmr.msra.gmra.mrb[14].mxu1 %vm1038_vm6, %v4957_v19  ;;  %v1298_v43 = vsel %vm1038_vm6, %v4957_v19, 0.0 }
 0x7fa   : > { %4962 = vpow2.f32 %v1533_v20  ;;  %v1531_v13 = vsub.f32 %v1519_v34, %v1526_v49  ;;  %1299 = vadd.xlane.f32.xlu1 %v1298_v43  ;;  %4397 = vmatprep.mubr.msk.f32.mxu1 %vm5190_vm2, %v5191_v50 }
 0x7fc   : > { %v4959_v18 = vpop.eup %4958  ;;  %v1535_v21 = vmul.f32 1.442695, %v1531_v13 }
 0x7fd   : > { %v4827_v22 = vpop.permute.xlu0 %4826  ;;  %4398 = vmatmul.mubr.msk.f32.gmra.mrb[16].mxu1 %vm1038_vm6, %v4959_v18  ;;  %v1301_v23 = vsel %vm1038_vm6, %v4959_v18, 0.0 }
 0x7fe   : > { %4964 = vpow2.f32 %v1535_v21  ;;  %v4829_v24 = vunpack.i.h.bf16 %v4827_v22  ;;  %v4828_v25 = vunpack.i.l.bf16 %v4827_v22  ;;  %1302 = vadd.xlane.f32.xlu0 %v1301_v23  ;;  %4400 = vmatprep.mubr.msk.f32.mxu1 %vm5190_vm2, %v5191_v50 }
 0x800   : > { %v4961_v26 = vpop.eup %4960  ;;  %v4690_v27 = vpack.c.bf16 %v4829_v24, %v4828_v25 }
 0x801   : > { %4401 = vmatmul.mubr.msk.f32.gmra.mrb[18].mxu1 %vm1038_vm6, %v4961_v26  ;;  %v1304_v28 = vsel %vm1038_vm6, %v4961_v26, 0.0 }
 0x802   : > { %4691 = vmatpush3.bf16.msra.mxu1 %v4690_v27  ;;  %1305 = vadd.xlane.f32.xlu0 %v1304_v28 }
 0x803   : > { %4422 = vmatprep.subr.mxu1 %v5191_v50  ;;  %4424 = vmatprep.mubr.msk.f32.mxu1 %vm5190_vm2, %v5191_v50 }
 0x804   : > { %v4963_v29 = vpop.eup %4962 }
 0x805   : > { %v1539_v32 = vsel %vm1038_vm6, %v4963_v29, 0.0 }
 0x806   : > { %4423 = vmatpush3.msra.mxu1 %v1553_v31  ;;  %1540 = vadd.xlane.f32.xlu0 %v1539_v32 }
 0x807   : > { %4425 = vmatmul.mubr.msk.f32.vlgmr.msra.gmra.mrb[20].mxu1 %vm1038_vm6, %v4963_v29  ;;  %4696 = vmatprep.subr.bf16.mxu1 %v5187_v41 }
 0x808   : > { %v4965_v33 = vpop.eup %4964  ;;  %4427 = vmatprep.mubr.msk.f32.mxu1 %vm5190_vm2, %v5191_v50 }
 0x809   : > { %v1542_v34 = vsel %vm1038_vm6, %v4965_v33, 0.0 }
 0x80a   : > { %1543 = vadd.xlane.f32.xlu1 %v1542_v34 }
 0x80b   : > { %4428 = vmatmul.mubr.msk.f32.gmra.mrb[22].mxu1 %vm1038_vm6, %v4965_v33 }
 0x80c   : > { %4430 = vmatprep.mubr.msk.f32.mxu1 %vm5190_vm2, %v5191_v50 }
 0x822   : > { %v1529_v36 = vpop.xlane.xlu1 %1528 }
 0x823   : > { %v1532_v37 = vsub.f32 %v5641_v53, %v1529_v36 }
 0x825   : > { %v1537_v38 = vmul.f32 1.442695, %v1532_v37 }
 0x826   : > { %v1764_v40 = vpop.xlane.xlu1 %1763 }
 0x827   : > { %4966 = vpow2.f32 %v1537_v38  ;;  %v1771_v42 = vsub.f32 %v5647_v56, %v1764_v40  ;;  %v4910_v38 = vld [vmem:[%s6269_s9] sm:$0xff]  }
 0x828   : > { %4463 = vmatprep.subr.bf16.mxu0 %v4910_v38 }
 0x829   : > { %v1774_v44 = vmul.f32 1.442695, %v1771_v42  ;;  %4464 = vmatpush3.bf16.msra.mxu0 %v4910_v38 }
 0x82a   : > { %v1767_v45 = vpop.xlane.xlu1 %1766 }
 0x82b   : > { %4968 = vpow2.f32 %v1774_v44  ;;  %v1772_v46 = vsub.f32 %v5653_v62, %v1767_v45 }
 0x82d   : > { %v1776_v47 = vmul.f32 1.442695, %v1772_v46 }
 0x82e   : > { %v4832_v48 = vpop.permute.xlu1 %4831  ;;  %v1770_v51 = vpop.xlane.xlu0 %1769 }
 0x82f   : > { %4970 = vpow2.f32 %v1776_v47  ;;  %v4834_v54 = vunpack.i.h.bf16 %v4832_v48  ;;  %v4833_v55 = vunpack.i.l.bf16 %v4832_v48  ;;  %v1773_v57 = vsub.f32 %v5659_v0, %v1770_v51  ;;  %v4911_v51 = vld [vmem:[%s6269_s9 + $0x8] sm:$0xff]  }
 0x830   : > { %4465 = vmatprep.subr.bf16.mxu0 %v4911_v51 }
 0x831   : > { %v4967_v60 = vpop.eup %4966  ;;  %v4697_v53 = vpack.c.bf16 %v4834_v54, %v4833_v55  ;;  %v1778_v63 = vmul.f32 1.442695, %v1773_v57  ;;  %4466 = vmatpush3.bf16.msra.mxu0 %v4911_v51 }
 0x832   : > { %4431 = vmatmul.mubr.msk.f32.gmra.mrb[24].mxu1 %vm1038_vm6, %v4967_v60  ;;  %v1545_v56 = vsel %vm1038_vm6, %v4967_v60, 0.0  ;;  %v1794_v2 = vpop.permute.xlu0 %1793 }
 0x833   : > { %4972 = vpow2.f32 %v1778_v63  ;;  %4698 = vmatpush3.bf16.msra.mxu1 %v4697_v53  ;;  %1546 = vadd.xlane.f32.xlu0 %v1545_v56 }
 0x834   : > { %4452 = vmatprep.subr.mxu1 %v5191_v50  ;;  %4454 = vmatprep.mubr.msk.f32.mxu1 %vm5190_vm2, %v5191_v50 }
 0x835   : > { %v4969_v62 = vpop.eup %4968 }
 0x836   : > { %v1780_v3 = vsel %vm1038_vm6, %v4969_v62, 0.0 }
 0x837   : > { %1781 = vadd.xlane.f32.xlu1 %v1780_v3  ;;  %4453 = vmatpush3.msra.mxu1 %v1794_v2 }
 0x838   : > { %4455 = vmatmul.mubr.msk.f32.vlgmr.msra.gmra.mrb[26].mxu1 %vm1038_vm6, %v4969_v62 }
 0x839   : > { %v4971_v0 = vpop.eup %4970  ;;  %4457 = vmatprep.mubr.msk.f32.mxu1 %vm5190_vm2, %v5191_v50 }
 0x83a   : > { %v1783_v5 = vsel %vm1038_vm6, %v4971_v0, 0.0 }
 0x83b   : > { %1784 = vadd.xlane.f32.xlu0 %v1783_v5 }
 0x83c   : > { %4458 = vmatmul.mubr.msk.f32.gmra.mrb[28].mxu1 %vm1038_vm6, %v4971_v0 }
 0x83d   : > { %v4973_v7 = vpop.eup %4972  ;;  %4460 = vmatprep.mubr.msk.f32.mxu1 %vm5190_vm2, %v5191_v50 }
 0x83e   : > { %v1786_v10 = vsel %vm1038_vm6, %v4973_v7, 0.0 }
 0x83f   : > { %1058 = vadd.xlane.f32.xlu0 %v1057_v9  ;;  %1787 = vadd.xlane.f32.xlu1 %v1786_v10 }
 0x840   : > { %4461 = vmatmul.mubr.msk.f32.gmra.mrb[30].mxu1 %vm1038_vm6, %v4973_v7 }
 0x843   : > { %1064 = vadd.xlane.f32.xlu0 %v1063_v11  ;;  %1061 = vadd.xlane.f32.xlu1 %v1060_v12 }
 0x887   : > { %v1300_v15 = vpop.xlane.xlu1 %1299 }
 0x888   : > { %4974 = vrcp.f32 %v1300_v15 }
 0x88b   : > { %v1303_v14 = vpop.xlane.xlu0 %1302 }
 0x88c   : > { %4976 = vrcp.f32 %v1303_v14 }
 0x88f   : > { %v1306_v16 = vpop.xlane.xlu0 %1305 }
 0x890   : > { %4978 = vrcp.f32 %v1306_v16 }
 0x892   : > { %v4975_v19 = vpop.eup %4974 }
 0x893   : > { %v1541_v20 = vpop.xlane.xlu0 %1540 }
 0x894   : > { %4980 = vrcp.f32 %v1541_v20 }
 0x896   : > { %v4977_v49 = vpop.eup %4976 }
 0x897   : > { %v1544_v43 = vpop.xlane.xlu1 %1543 }
 0x898   : > { %4982 = vrcp.f32 %v1544_v43 }
 0x89a   : > { %v4979_v35 = vpop.eup %4978 }
 0x89e   : > { %v4981_v28 = vpop.eup %4980 }
 0x8a2   : > { %v4983_v29 = vpop.eup %4982 }
 0x8c0   : > { %v1547_v37 = vpop.xlane.xlu0 %1546 }
 0x8c1   : > { %4984 = vrcp.f32 %v1547_v37 }
 0x8c4   : > { %v1782_v40 = vpop.xlane.xlu1 %1781 }
 0x8c5   : > { %4986 = vrcp.f32 %v1782_v40 }
 0x8c8   : > { %v1785_v42 = vpop.xlane.xlu0 %1784 }
 0x8c9   : > { %4988 = vrcp.f32 %v1785_v42 }
 0x8cb   : > { %v4985_v44 = vpop.eup %4984 }
 0x8cc   : > { %v1391_v30 = vpop.f32.mrb[14].mxu1  ;;  %v1788_v46 = vpop.xlane.xlu1 %1787 }
 0x8cd   : > { %v4396_v17 = vpop.f32.mrb[15].mxu1  ;;  %v1408_v18 = vmul.f32 %v4975_v19, %v1391_v30  ;;  %4990 = vrcp.f32 %v1788_v46  ;;  %v1059_v9 = vpop.xlane.xlu0 %1058 }
 0x8ce   : > { %4992 = vrcp.f32 %v1059_v9 }
 0x8cf   : > { %v4987_v57 = vpop.eup %4986 }
 0x8d0   : > { %v1396_v13 = vpop.f32.mrb[16].mxu1  ;;  %v1062_v11 = vpop.xlane.xlu1 %1061 }
 0x8d1   : > { %v1409_v39 = vmul.f32 %v4977_v49, %v1396_v13  ;;  %v4399_v21 = vpop.f32.mrb[17].mxu1  ;;  %v1065_v10 = vpop.xlane.xlu0 %1064 }
 0x8d2   : > { %4994 = vrcp.f32 %v1065_v10  ;;  %v4912_v10 = vld [vmem:[%s6273_s13] sm:$0xff]  }
 0x8d3   : > { %v4835_v22 = vpack.i.bf16 %v1409_v39, %v1408_v18  ;;  %v4989_v60 = vpop.eup %4988  ;;  %4996 = vrcp.f32 %v1062_v11  ;;  %v4913_v11 = vld [vmem:[%s6273_s13 + $0x8] sm:$0xff]   ;;  %4471 = vmatprep.subr.bf16.mxu1 %v4912_v10 }
 0x8d4   : > { %v1401_v23 = vpop.f32.mrb[18].mxu1  ;;  %4472 = vmatpush3.bf16.msra.mxu1 %v4912_v10 }
 0x8d5   : > { %v1410_v24 = vmul.f32 %v4979_v35, %v1401_v23  ;;  %v4402_v25 = vpop.f32.mrb[19].mxu1  ;;  %4836 = vrot.lane.b32.xlu1 %v4835_v22, %s6304_s29  ;;  %4473 = vmatprep.subr.bf16.mxu1 %v4913_v11 }
 0x8d7   : > { %1900 = vrot.lane.b32.xlu0 %v1410_v24, %s6304_s29  ;;  %v4991_v3 = vpop.eup %4990  ;;  %s6345_s29 = smov 112  }
 0x8d8   : > { %v4993_v15 = vpop.eup %4992  ;;  %4474 = vmatpush3.bf16.msra.mxu1 %v4913_v11 }
 0x8d9   : > { %v1167_v39 = vmul.f32 %v4993_v15, %v5614_v4 }
 0x8da   : > { %v1632_v26 = vpop.f32.mrb[20].mxu1 }
 0x8db   : > { %v4426_v27 = vpop.f32.mrb[21].mxu1  ;;  %v1649_v32 = vmul.f32 %v4981_v28, %v1632_v26 }
 0x8dc   : > { %v4995_v16 = vpop.eup %4994 }
 0x8dd   : > { %v4997_v30 = vpop.eup %4996  ;;  %v1169_v43 = vmul.f32 %v4995_v16, %v5618_v8 }
 0x8de   : > { %v1637_v31 = vpop.f32.mrb[22].mxu1  ;;  %v1168_v21 = vmul.f32 %v4997_v30, %v5616_v6 }
 0x8df   : > { %v1650_v33 = vmul.f32 %v4983_v29, %v1637_v31  ;;  %v4429_v34 = vpop.f32.mrb[23].mxu1 }
 0x8e0   : > { %v4044_v34 = vld [vmem:[%s6270_s10] ss:$0 sm:$0xff] }
 0x8e1   : > { %v4840_v36 = vpack.i.bf16 %v1650_v33, %v1649_v32 }
 0x8e3   : > { %4841 = vrot.lane.b32.xlu1 %v4840_v36, %s6310_s3 }
 0x905   : > { %v1642_v45 = vpop.f32.mrb[24].mxu1 }
 0x906   : > { %v1651_v47 = vmul.f32 %v4985_v44, %v1642_v45  ;;  %v4432_v48 = vpop.f32.mrb[25].mxu1 }
 0x908   : > { %1912 = vrot.lane.b32.xlu1 %v1651_v47, %s6310_s3  ;;  %s6352_s3 = smov 8  }
 0x90b   : > { %v1873_v54 = vpop.f32.mrb[26].mxu1 }
 0x90c   : > { %v4456_v55 = vpop.f32.mrb[27].mxu1  ;;  %v1890_v63 = vmul.f32 %v4987_v57, %v1873_v54 }
 0x90f   : > { %v1878_v53 = vpop.f32.mrb[28].mxu1 }
 0x910   : > { %v1891_v56 = vmul.f32 %v4989_v60, %v1878_v53  ;;  %v4459_v62 = vpop.f32.mrb[29].mxu1 }
 0x912   : > { %v4845_v2 = vpack.i.bf16 %v1891_v56, %v1890_v63 }
 0x913   : > { %v1883_v0 = vpop.f32.mrb[30].mxu1 }
 0x914   : > { %v1892_v5 = vmul.f32 %v4991_v3, %v1883_v0  ;;  %4846 = vrot.lane.b32.xlu1 %v4845_v2, %s6308_s23  ;;  %v4462_v7 = vpop.f32.mrb[31].mxu1 }
 0x916   : > { %1924 = vrot.lane.b32.xlu0 %v1892_v5, %s6308_s23  ;;  %s6346_s23 = smov 80  }
 0x947   : > { %v4837_v12 = vpop.permute.xlu1 %4836 }
 0x948   : > { %v4839_v19 = vunpack.i.h.bf16 %v4837_v12  ;;  %v4838_v20 = vunpack.i.l.bf16 %v4837_v12 }
 0x949   : > { %v1901_v49 = vpop.permute.xlu0 %1900 }
 0x94a   : > { %v1931_v35 = vsel %vm939_vm3, %v1169_v43, %v1901_v49  ;;  %v1930_v23 = vsel %vm939_vm3, %v1168_v21, %v4839_v19  ;;  %v1929_v24 = vsel %vm939_vm3, %v1167_v39, %v4838_v20 }
 0x955   : > { %v4842_v14 = vpop.permute.xlu1 %4841 }
 0x956   : > { %v4844_v13 = vunpack.i.h.bf16 %v4842_v14  ;;  %v4843_v18 = vunpack.i.l.bf16 %v4842_v14 }
 0x958   : > { %v1934_v27 = vsel %vm1932_vm7, %v1930_v23, %v4844_v13  ;;  %v1933_v8 = vsel %vm1932_vm7, %v1929_v24, %v4843_v18  ;;  %v4049_v13 = vld [vmem:[%s6271_s11] ss:$0 sm:$0xff] }
 0x97a   : > { %v1913_v17 = vpop.permute.xlu1 %1912 }
 0x97b   : > { %v1935_v28 = vsel %vm1932_vm7, %v1931_v35, %v1913_v17 }
 0x986   : > { %v4847_v22 = vpop.permute.xlu1 %4846 }
 0x987   : > { %v4849_v25 = vunpack.i.h.bf16 %v4847_v22  ;;  %v4848_v26 = vunpack.i.l.bf16 %v4847_v22  ;;  %v4050_v22 = vld [vmem:[%s6272_s12] ss:$0 sm:$0xff] }
 0x988   : > { %v1925_v29 = vpop.permute.xlu0 %1924 }
 0x989   : > { %v1937_v4 = vsel %vm1038_vm6, %v1934_v27, %v4849_v25  ;;  %v1936_v6 = vsel %vm1038_vm6, %v1933_v8, %v4848_v26  ;;  %v1938_v31 = vsel %vm1038_vm6, %v1935_v28, %v1925_v29 }
 0x98a   : > { %v1943_v32 = vpack.c.bf16 %v1937_v4, %v1936_v6  ;;  %v1944_v33 = vpack.c.bf16 %v1938_v31, %v1938_v31  ;;  %v4914_v6 = vld [vmem:[%s6275_s15] sm:$0xff]   ;;  %v4915_v31 = vld [vmem:[%s6275_s15 + $0x8] sm:$0xff]  }
 0x98b   : > { %4479 = vmatprep.subr.bf16.mxu0 %v4914_v6 }
 0x98c   : > { %4467 = vmatprep.mubr.msk.bf16.mxu0 %vm730_vm1, %v1943_v32  ;;  %v4916_v32 = vld [vmem:[%s6275_s15 + $0x10] sm:$0xff]  }
 0x98d   : > { %4468 = vmatmul.mubr.msk.bf16.vlgmr.msra.gmra.mrb[24].mxu0 %vm730_vm1, %v1944_v33  ;;  %v4917_v33 = vld [vmem:[%s6275_s15 + $0x18] sm:$0xff]  }
 0x98e   : > { %4480 = vmatpush3.bf16.msra.mxu0 %v4914_v6 }
 0x98f   : > { %4481 = vmatprep.subr.bf16.mxu0 %v4915_v31 }
 0x992   : > { %4482 = vmatpush3.bf16.msra.mxu0 %v4915_v31 }
 0x993   : > { %4483 = vmatprep.subr.bf16.mxu0 %v4916_v32 }
 0x996   : > { %4484 = vmatpush3.bf16.msra.mxu0 %v4916_v32 }
 0x997   : > { %4485 = vmatprep.subr.bf16.mxu0 %v4917_v33 }
 0x99a   : > { %4486 = vmatpush3.bf16.msra.mxu0 %v4917_v33 }
 0xa60   : > { %v4469_v36 = vpop.f32.mrb[24].mxu0 }
 0xa61   : > { %v2004_v37 = vpop.f32.mrb[25].mxu0  ;;  %v2013_v44 = vadd.f32 %v4469_v36, %v4044_v34  ;;  %v4919_v36 = vld [vmem:[%s6275_s15 + $0x28] sm:$0xff]  }
 0xa62   : > { %v2005_v38 = vadd.f32 %v4044_v34, %v2004_v37  ;;  %v4470_v40 = vpop.f32.mrb[26].mxu0  ;;  %v4920_v37 = vld [vmem:[%s6275_s15 + $0x30] sm:$0xff]  }
 0xa63   : > { %v2007_v42 = vpop.f32.mrb[27].mxu0  ;;  %v5752_v51 = vadd.f32 %v2013_v44, %v5429_v58  ;;  %v4051_v40 = vld [vmem:[%s6274_s14] ss:$0 sm:$0xff] }
 0xa64   : > { %v5744_v45 = vadd.f32 %v2005_v38, %v5425_v52  ;;  %v2008_v46 = vadd.f32 %v4044_v34, %v2007_v42  ;;  %v4918_v34 = vld [vmem:[%s6275_s15 + $0x20] sm:$0xff]   ;;  %v4921_v38 = vld [vmem:[%s6275_s15 + $0x38] sm:$0xff]  }
 0xa65   : > { %v2029_v55 = vsel %vm730_vm1, %v5752_v51, 0.0  ;;  %4487 = vmatprep.subr.bf16.mxu0 %v4918_v34 }
 0xa66   : > { %v5747_v47 = vadd.f32 %v2008_v46, %v5431_v59  ;;  %v2023_v48 = vsel %vm730_vm1, %v5744_v45, 0.0  ;;  %4488 = vmatpush3.bf16.msra.mxu0 %v4918_v34 }
 0xa67   : > { %2024 = vadd.xlane.f32.xlu1 %v2023_v48  ;;  %4489 = vmatprep.subr.bf16.mxu0 %v4919_v36 }
 0xa68   : > { %v2026_v54 = vsel %vm730_vm1, %v5747_v47, 0.0 }
 0xa69   : > { %2027 = vadd.xlane.f32.xlu0 %v2026_v54 }
 0xa6a   : > { %4490 = vmatpush3.bf16.msra.mxu0 %v4919_v36  ;;  %v4922_v36 = vld [vmem:[%s6267_s7 + $0x10] sm:$0xff]  }
 0xa6b   : > { %4491 = vmatprep.subr.bf16.mxu0 %v4920_v37  ;;  %4499 = vmatprep.subr.bf16.mxu1 %v4922_v36 }
 0xa6d   : > { %2030 = vadd.xlane.f32.xlu0 %v2029_v55 }
 0xa6e   : > { %4492 = vmatpush3.bf16.msra.mxu0 %v4920_v37  ;;  %v4923_v37 = vld [vmem:[%s6267_s7 + $0x18] sm:$0xff]  }
 0xa6f   : > { %4493 = vmatprep.subr.bf16.mxu0 %v4921_v38 }
 0xa72   : > { %4494 = vmatpush3.bf16.msra.mxu0 %v4921_v38 }
 0xa73   : > { %4706 = vmatprep.subr.bf16.mxu0 %v5187_v41 }
 0xaf4   : > { %v2025_v52 = vpop.xlane.xlu1 %2024 }
 0xaf5   : > { %v2032_v57 = vmul.f32 0.03125, %v2025_v52 }
 0xaf6   : > { %v2028_v60 = vpop.xlane.xlu0 %2027 }
 0xaf7   : > { %v2035_v59 = vsub.f32 %v5744_v45, %v2032_v57  ;;  %v2033_v53 = vmul.f32 0.03125, %v2028_v60 }
 0xaf9   : > { %v2036_v63 = vsub.f32 %v5747_v47, %v2033_v53  ;;  %v2038_v56 = vmul.f32 %v2035_v59, %v2035_v59 }
 0xafa   : > { %v2031_v62 = vpop.xlane.xlu0 %2030 }
 0xafb   : > { %v2034_v58 = vmul.f32 0.03125, %v2031_v62  ;;  %v2041_v2 = vsel %vm730_vm1, %v2038_v56, 0.0  ;;  %v2039_v3 = vmul.f32 %v2036_v63, %v2036_v63 }
 0xafc   : > { %2042 = vadd.xlane.f32.xlu0 %v2041_v2 }
 0xafd   : > { %v2037_v0 = vsub.f32 %v5752_v51, %v2034_v58  ;;  %v2044_v5 = vsel %vm730_vm1, %v2039_v3, 0.0 }
 0xafe   : > { %2045 = vadd.xlane.f32.xlu1 %v2044_v5 }
 0xaff   : > { %v2040_v7 = vmul.f32 %v2037_v0, %v2037_v0 }
 0xb01   : > { %v2047_v9 = vsel %vm730_vm1, %v2040_v7, 0.0 }
 0xb02   : > { %2048 = vadd.xlane.f32.xlu0 %v2047_v9 }
 0xb89   : > { %v2043_v12 = vpop.xlane.xlu0 %2042 }
 0xb8a   : > { %v2050_v14 = vmul.f32 0.03125, %v2043_v12 }
 0xb8b   : > { %v2046_v15 = vpop.xlane.xlu1 %2045 }
 0xb8c   : > { %v2053_v16 = vadd.f32 1e-05, %v2050_v14  ;;  %v2051_v30 = vmul.f32 0.03125, %v2046_v15 }
 0xb8e   : > { %4998 = vrsqrt.f32 %v2053_v16  ;;  %v2054_v17 = vadd.f32 1e-05, %v2051_v30  ;;  %v4059_v30 = vld [vmem:[%s6276_s16] ss:$0 sm:$0xff] }
 0xb8f   : > { %v2049_v19 = vpop.xlane.xlu0 %2048 }
 0xb90   : > { %5000 = vrsqrt.f32 %v2054_v17  ;;  %v2052_v20 = vmul.f32 0.03125, %v2049_v19 }
 0xb92   : > { %v2055_v49 = vadd.f32 1e-05, %v2052_v20 }
 0xb94   : > { %5002 = vrsqrt.f32 %v2055_v49 }
 0xb98   : > { %v4999_v43 = vpop.eup %4998 }
 0xb99   : > { %v2059_v18 = vmul.f32 %v4999_v43, %v2035_v59 }
 0xb9a   : > { %v5001_v39 = vpop.eup %5000 }
 0xb9b   : > { %v2060_v21 = vmul.f32 %v5001_v39, %v2036_v63  ;;  %v2068_v35 = vmul.f32 %v4049_v13, %v2059_v18 }
 0xb9d   : > { %v2069_v23 = vmul.f32 %v4049_v13, %v2060_v21  ;;  %v2077_v26 = vadd.f32 %v4050_v22, %v2068_v35 }
 0xb9e   : > { %v5003_v24 = vpop.eup %5002 }
 0xb9f   : > { %v2061_v25 = vmul.f32 %v5003_v24, %v2037_v0  ;;  %v2078_v27 = vadd.f32 %v4050_v22, %v2069_v23 }
 0xba1   : > { %v2070_v8 = vmul.f32 %v4049_v13, %v2061_v25  ;;  %v2084_v28 = vpack.c.bf16 %v2078_v27, %v2077_v26 }
 0xba3   : > { %v2079_v29 = vadd.f32 %v4050_v22, %v2070_v8  ;;  %4475 = vmatprep.mubr.msk.bf16.mxu1 %vm730_vm1, %v2084_v28 }
 0xba5   : > { %v2085_v4 = vpack.c.bf16 %v2079_v29, %v2079_v29 }
 0xba7   : > { %4476 = vmatmul.mubr.msk.bf16.vlgmr.msra.gmra.mrb[32].mxu1 %vm730_vm1, %v2085_v4 }
 0xba8   : > { %4500 = vmatpush3.bf16.msra.mxu1 %v4922_v36 }
 0xba9   : > { %4501 = vmatprep.subr.bf16.mxu1 %v4923_v37 }
 0xbac   : > { %4502 = vmatpush3.bf16.msra.mxu1 %v4923_v37 }
 0xbad   : > { %4699 = vmatprep.subr.bf16.mxu1 %v5187_v41 }
 0xc7a   : > { %v4477_v42 = vpop.f32.mrb[32].mxu1 }
 0xc7b   : > { %v2154_v44 = vadd.f32 %v4477_v42, %v4051_v40  ;;  %v2145_v46 = vpop.f32.mrb[33].mxu1 }
 0xc7c   : > { %v2146_v48 = vadd.f32 %v4051_v40, %v2145_v46  ;;  %v4478_v54 = vpop.f32.mrb[34].mxu1 }
 0xc7d   : > { %v4058_v55 = vmul.f32 -1.702, %v2154_v44  ;;  %v2148_v52 = vpop.f32.mrb[35].mxu1 }
 0xc7e   : > { %v4056_v57 = vmul.f32 -1.702, %v2146_v48  ;;  %v2149_v60 = vadd.f32 %v4051_v40, %v2148_v52 }
 0xc7f   : > { %v2169_v59 = vmul.f32 1.442695, %v4058_v55 }
 0xc80   : > { %v2165_v53 = vmul.f32 1.442695, %v4056_v57  ;;  %v4057_v63 = vmul.f32 -1.702, %v2149_v60 }
 0xc81   : > { %5004 = vpow2.f32 %v2169_v59 }
 0xc82   : > { %5006 = vpow2.f32 %v2165_v53  ;;  %v2167_v56 = vmul.f32 1.442695, %v4057_v63 }
 0xc84   : > { %5008 = vpow2.f32 %v2167_v56 }
 0xc8b   : > { %v5005_v62 = vpop.eup %5004 }
 0xc8c   : > { %v5007_v58 = vpop.eup %5006  ;;  %v2173_v2 = vadd.f32 1.0, %v5005_v62 }
 0xc8d   : > { %v2171_v3 = vadd.f32 1.0, %v5007_v58  ;;  %v4071_v58 = vld [vmem:[%s6266_s6 + $0x1] ss:$0 sm:$0xff] }
 0xc8e   : > { %v5009_v0 = vpop.eup %5008  ;;  %5010 = vrcp.f32 %v2173_v2 }
 0xc8f   : > { %5012 = vrcp.f32 %v2171_v3  ;;  %v2172_v5 = vadd.f32 1.0, %v5009_v0 }
 0xc91   : > { %5014 = vrcp.f32 %v2172_v5 }
 0xc98   : > { %v5011_v7 = vpop.eup %5010 }
 0xc99   : > { %v5013_v9 = vpop.eup %5012  ;;  %v2182_v11 = vmul.f32 %v5011_v7, %v2154_v44 }
 0xc9a   : > { %v2180_v12 = vmul.f32 %v5013_v9, %v2146_v48 }
 0xc9b   : > { %v5015_v10 = vpop.eup %5014  ;;  %v2200_v16 = vpack.c.bf16 %v2182_v11, %v2182_v11 }
 0xc9c   : > { %v2181_v14 = vmul.f32 %v5015_v10, %v2149_v60  ;;  %v4070_v60 = vld [vmem:[%s6265_s5 + $0x1] ss:$0 sm:$0xff] }
 0xc9e   : > { %v2199_v15 = vpack.c.bf16 %v2181_v14, %v2180_v12  ;;  %v4077_v12 = vld [vmem:[%s6268_s8 + $0x1] ss:$0 sm:$0xff] }
 0xca0   : > { %4495 = vmatprep.mubr.bf16.mxu0 %v2199_v15 }
 0xca1   : > { %4496 = vmatmul.mubr.bf16.vlgmr.msra.gmra.mrb[28].mxu0 %v2200_v16 }
 0xca2   : > { %4543 = vmatprep.mubr.msk.f32.mxu0 %vm5190_vm2, %v5191_v50 }
 0xd74   : > { %v4497_v17 = vpop.f32.mrb[28].mxu0 }
 0xd75   : > { %v2290_v19 = vpop.f32.mrb[29].mxu0  ;;  %v2299_v20 = vadd.f32 %v4497_v17, %v4059_v30 }
 0xd76   : > { %v2291_v49 = vadd.f32 %v4059_v30, %v2290_v19  ;;  %v4498_v43 = vpop.f32.mrb[30].mxu0 }
 0xd77   : > { %v2293_v13 = vpop.f32.mrb[31].mxu0  ;;  %v5815_v21 = vadd.f32 %v2299_v20, %v5752_v51 }
 0xd78   : > { %v5812_v18 = vadd.f32 %v2291_v49, %v5744_v45  ;;  %v2294_v39 = vadd.f32 %v4059_v30, %v2293_v13 }
 0xd79   : > { %v2317_v24 = vsel %vm730_vm1, %v5815_v21, 0.0 }
 0xd7a   : > { %v5818_v35 = vadd.f32 %v2294_v39, %v5747_v47  ;;  %v2311_v22 = vsel %vm730_vm1, %v5812_v18, 0.0 }
 0xd7b   : > { %2312 = vadd.xlane.f32.xlu1 %v2311_v22 }
 0xd7c   : > { %v2314_v23 = vsel %vm730_vm1, %v5818_v35, 0.0 }
 0xd7d   : > { %2315 = vadd.xlane.f32.xlu0 %v2314_v23 }
 0xd7f   : > { %2318 = vadd.xlane.f32.xlu1 %v2317_v24 }
 0xe08   : > { %v2313_v45 = vpop.xlane.xlu1 %2312 }
 0xe09   : > { %v2320_v25 = vmul.f32 0.03125, %v2313_v45 }
 0xe0a   : > { %v2316_v26 = vpop.xlane.xlu0 %2315 }
 0xe0b   : > { %v2323_v51 = vsub.f32 %v5812_v18, %v2320_v25  ;;  %v2321_v27 = vmul.f32 0.03125, %v2316_v26 }
 0xe0c   : > { %v2319_v47 = vpop.xlane.xlu1 %2318 }
 0xe0d   : > { %v2324_v8 = vsub.f32 %v5818_v35, %v2321_v27  ;;  %v2322_v28 = vmul.f32 0.03125, %v2319_v47  ;;  %v2326_v29 = vmul.f32 %v2323_v51, %v2323_v51 }
 0xe0f   : > { %v2325_v4 = vsub.f32 %v5815_v21, %v2322_v28  ;;  %v2329_v6 = vsel %vm730_vm1, %v2326_v29, 0.0  ;;  %v2327_v31 = vmul.f32 %v2324_v8, %v2324_v8 }
 0xe10   : > { %2330 = vadd.xlane.f32.xlu0 %v2329_v6 }
 0xe11   : > { %v2332_v32 = vsel %vm730_vm1, %v2327_v31, 0.0  ;;  %v2328_v33 = vmul.f32 %v2325_v4, %v2325_v4 }
 0xe12   : > { %2333 = vadd.xlane.f32.xlu1 %v2332_v32 }
 0xe13   : > { %v2335_v34 = vsel %vm730_vm1, %v2328_v33, 0.0 }
 0xe14   : > { %2336 = vadd.xlane.f32.xlu0 %v2335_v34 }
 0xe9d   : > { %v2331_v38 = vpop.xlane.xlu0 %2330 }
 0xe9e   : > { %v2338_v40 = vmul.f32 0.03125, %v2331_v38 }
 0xe9f   : > { %v2334_v42 = vpop.xlane.xlu1 %2333 }
 0xea0   : > { %v2341_v44 = vadd.f32 1e-05, %v2338_v40  ;;  %v2339_v46 = vmul.f32 0.03125, %v2334_v42 }
 0xea1   : > { %v2337_v48 = vpop.xlane.xlu0 %2336 }
 0xea2   : > { %5016 = vrsqrt.f32 %v2341_v44  ;;  %v2342_v54 = vadd.f32 1e-05, %v2339_v46  ;;  %v2340_v55 = vmul.f32 0.03125, %v2337_v48 }
 0xea4   : > { %5018 = vrsqrt.f32 %v2342_v54  ;;  %v2343_v52 = vadd.f32 1e-05, %v2340_v55 }
 0xea6   : > { %5020 = vrsqrt.f32 %v2343_v52 }
 0xeac   : > { %v5017_v57 = vpop.eup %5016 }
 0xead   : > { %v2347_v59 = vmul.f32 %v5017_v57, %v2323_v51 }
 0xeae   : > { %v5019_v53 = vpop.eup %5018 }
 0xeaf   : > { %v2348_v63 = vmul.f32 %v5019_v53, %v2324_v8  ;;  %v2356_v56 = vmul.f32 %v4070_v60, %v2347_v59 }
 0xeb0   : > { %v5021_v62 = vpop.eup %5020 }
 0xeb1   : > { %v2349_v2 = vmul.f32 %v5021_v62, %v2325_v4  ;;  %v2357_v3 = vmul.f32 %v4070_v60, %v2348_v63  ;;  %v2365_v0 = vadd.f32 %v4071_v58, %v2356_v56 }
 0xeb3   : > { %v2366_v5 = vadd.f32 %v4071_v58, %v2357_v3  ;;  %v2358_v7 = vmul.f32 %v4070_v60, %v2349_v2 }
 0xeb5   : > { %v2373_v9 = vpack.c.bf16 %v2366_v5, %v2365_v0  ;;  %v2367_v10 = vadd.f32 %v4071_v58, %v2358_v7 }
 0xeb7   : > { %4503 = vmatprep.mubr.msk.bf16.mxu1 %vm730_vm1, %v2373_v9  ;;  %v2374_v11 = vpack.c.bf16 %v2367_v10, %v2367_v10 }
 0xeb9   : > { %4504 = vmatmul.mubr.msk.bf16.vlgmr.msra.gmra.mrb[36].mxu1 %vm730_vm1, %v2374_v11 }
 0xeba   : > { %4513 = vmatprep.mubr.msk.f32.mxu1 %vm5190_vm2, %v5191_v50 }
 0xf8c   : > { %v4505_v14 = vpop.f32.mrb[36].mxu1 }
 0xf8d   : > { %v5852_v15 = vadd.f32 %v4505_v14, %v4077_v12  ;;  %v2435_v16 = vpop.f32.mrb[37].mxu1 }
 0xf8e   : > { %v4506_v30 = vpop.f32.mrb[38].mxu1  ;;  %v2436_v19 = vadd.f32 %v4077_v12, %v2435_v16 }
 0xf8f   : > { %2456 = vrot.lane.b32.xlu0 %v5852_v15, %s5188_s1  ;;  %v2438_v17 = vpop.f32.mrb[39].mxu1 }
 0xf90   : > { %v2439_v20 = vadd.f32 %v4077_v12, %v2438_v17 }
 0xf92   : > { %v5856_v49 = vpack.i.bf16 %v2439_v20, %v2436_v19 }
 0xf93   : > { %2687 = vrot.lane.b32.xlu0 %v2436_v19, %s5194_s21 }
 0xf94   : > { %4851 = vrot.lane.b32.xlu1 %v5856_v49, %s5188_s1  ;;  %s6347_s1 = smov 104  }
 0xf97   : > { %2691 = vrot.lane.b32.xlu0 %v5852_v15, %s5194_s21 }
 0xf98   : > { %4856 = vrot.lane.b32.xlu1 %v5856_v49, %s6343_s24 }
 0xf9b   : > { %4866 = vrot.lane.b32.xlu0 %v5856_v49, %s6344_s26 }
 0xf9c   : > { %2697 = vrot.lane.b32.xlu1 %v5852_v15, %s6343_s24 }
 0xf9f   : > { %2930 = vrot.lane.b32.xlu0 %v2439_v20, %s6345_s29 }
 0xfa0   : > { %4861 = vrot.lane.b32.xlu1 %v5856_v49, %s6346_s23 }
 0xfa3   : > { %3179 = vrot.lane.b32.xlu0 %v5852_v15, %s6344_s26 }
 0xfa4   : > { %2689 = vrot.lane.b32.xlu1 %v2439_v20, %s5194_s21  ;;  %s6350_s21 = smov 48  }
 0xfa7   : > { %3171 = vrot.lane.b32.xlu0 %v2439_v20, %s6347_s1 }
 0xfa8   : > { %2938 = vrot.lane.b32.xlu1 %v5852_v15, %s6346_s23 }
 0xfab   : > { %4871 = vrot.lane.b32.xlu0 %v5856_v49, %s6348_s0 }
 0xfac   : > { %2928 = vrot.lane.b32.xlu1 %v2436_v19, %s6345_s29 }
 0xfaf   : > { %4876 = vrot.lane.b32.xlu0 %v5856_v49, %s6349_s30 }
 0xfb0   : > { %2932 = vrot.lane.b32.xlu1 %v5852_v15, %s6345_s29  ;;  %s6353_s29 = smov 16  }
 0xfb4   : > { %3169 = vrot.lane.b32.xlu1 %v2436_v19, %s6347_s1 }
 0xfb8   : > { %3173 = vrot.lane.b32.xlu1 %v5852_v15, %s6347_s1  ;;  %s633_s1 = sand.u32 1, %s5176_s22  }
 0xfb9   : > { %s3908_s26 = scalar_lea.sflag [#allocation4], %s633_s1 }
 0xfbc   : > { %2587 = vrot.lane.b32.xlu1 %v5852_v15, %s6348_s0  ;;  %s6354_s0 = smov 24  }
 0xfc0   : > { %2828 = vrot.lane.b32.xlu1 %v5852_v15, %s6349_s30  ;;  %s634_s30 = scalar_lea.vmem [#allocation5], %s633_s1 }
0x1001   : > { %v2457_v43 = vpop.permute.xlu0 %2456 }
0x1005   : > { %v2688_v13 = vpop.permute.xlu0 %2687 }
0x1006   : > { %v4852_v39 = vpop.permute.xlu1 %4851 }
0x1007   : > { %v4854_v22 = vunpack.i.h.bf16 %v4852_v39  ;;  %v4853_v23 = vunpack.i.l.bf16 %v4852_v39 }
0x1009   : > { %v4700_v24 = vpack.c.bf16 %v4854_v22, %v4853_v23  ;;  %v2692_v45 = vpop.permute.xlu0 %2691 }
0x100a   : > { %v4857_v25 = vpop.permute.xlu1 %4856 }
0x100b   : > { %v4859_v26 = vunpack.i.h.bf16 %v4857_v25  ;;  %v4858_v51 = vunpack.i.l.bf16 %v4857_v25  ;;  %4702 = vmatpush3.bf16.xpose.msk.msra.mxu1 %vm5484_vm4, %v4700_v24 }
0x100c   : > { %4511 = vmatprep.subr.mxu1 %v5191_v50 }
0x100d   : > { %v4707_v27 = vpack.c.bf16 %v4859_v26, %v4858_v51  ;;  %v4867_v47 = vpop.permute.xlu0 %4866 }
0x100e   : > { %v2698_v8 = vpop.permute.xlu1 %2697  ;;  %v4869_v46 = vunpack.i.h.bf16 %v4867_v47  ;;  %v4868_v48 = vunpack.i.l.bf16 %v4867_v47 }
0x100f   : > { %4709 = vmatpush3.bf16.xpose.msk.msra.mxu0 %vm5484_vm4, %v4707_v27 }
0x1010   : > { %4541 = vmatprep.subr.mxu0 %v5191_v50  ;;  %v4721_v55 = vpack.c.bf16 %v4869_v46, %v4868_v48 }
0x1011   : > { %v2931_v28 = vpop.permute.xlu0 %2930 }
0x1012   : > { %v4862_v29 = vpop.permute.xlu1 %4861 }
0x1013   : > { %4512 = vmatpush3.xpose.msk.msra.mxu1 %vm939_vm3, %v2457_v43  ;;  %v4864_v4 = vunpack.i.h.bf16 %v4862_v29  ;;  %v4863_v6 = vunpack.i.l.bf16 %v4862_v29 }
0x1014   : > { %4703 = vmatprep.subr.bf16.mxu1 %v5187_v41 }
0x1015   : > { %v3180_v31 = vpop.permute.xlu0 %3179  ;;  %v4714_v33 = vpack.c.bf16 %v4864_v4, %v4863_v6 }
0x1016   : > { %v2690_v32 = vpop.permute.xlu1 %2689  ;;  %4514 = vmatmul.mubr.msk.f32.vlgmr.msra.gmra.mrb[40].mxu1 %vm939_vm3, %v2436_v19 }
0x1017   : > { %4542 = vmatpush3.xpose.msk.msra.mxu0 %vm939_vm3, %v2698_v8  ;;  %4516 = vmatprep.mubr.msk.f32.mxu1 %vm5190_vm2, %v5191_v50 }
0x1018   : > { %4713 = vmatprep.subr.bf16.mxu0 %v5187_v41 }
0x1019   : > { %v3172_v34 = vpop.permute.xlu0 %3171 }
0x101a   : > { %v2939_v36 = vpop.permute.xlu1 %2938  ;;  %4517 = vmatmul.mubr.msk.f32.gmra.mrb[42].mxu1 %vm939_vm3, %v2439_v20  ;;  %4544 = vmatmul.mubr.msk.f32.vlgmr.msra.gmra.mrb[32].mxu0 %vm939_vm3, %v2688_v13 }
0x101b   : > { %4716 = vmatpush3.bf16.xpose.msk.msra.mxu0 %vm5484_vm4, %v4714_v33  ;;  %4519 = vmatprep.mubr.msk.f32.mxu1 %vm5190_vm2, %v5191_v50 }
0x101c   : > { %4546 = vmatprep.mubr.msk.f32.mxu0 %vm5190_vm2, %v5191_v50  ;;  %4571 = vmatprep.subr.mxu0 %v5191_v50 }
0x101d   : > { %v4872_v37 = vpop.permute.xlu0 %4871 }
0x101e   : > { %v4874_v38 = vunpack.i.h.bf16 %v4872_v37  ;;  %v4873_v40 = vunpack.i.l.bf16 %v4872_v37  ;;  %v2929_v42 = vpop.permute.xlu1 %2928  ;;  %4520 = vmatmul.mubr.msk.f32.gmra.mrb[44].mxu1 %vm939_vm3, %v5852_v15  ;;  %4547 = vmatmul.mubr.msk.f32.gmra.mrb[34].mxu0 %vm939_vm3, %v2690_v32 }
0x101f   : > { %4549 = vmatprep.mubr.msk.f32.mxu0 %vm5190_vm2, %v5191_v50  ;;  %4528 = vmatprep.mubr.msk.f32.mxu1 %vm5190_vm2, %v5191_v50 }
0x1020   : > { %v4704_v44 = vpack.c.bf16 %v4874_v38, %v4873_v40 }
0x1022   : > { %v2933_v54 = vpop.permute.xlu1 %2932  ;;  %4705 = vmatpush3.bf16.msra.mxu1 %v4704_v44  ;;  %4550 = vmatmul.mubr.msk.f32.gmra.mrb[36].mxu0 %vm939_vm3, %v2692_v45 }
0x1023   : > { %4572 = vmatpush3.xpose.msk.msra.mxu0 %vm939_vm3, %v2939_v36  ;;  %4573 = vmatprep.mubr.msk.f32.mxu0 %vm5190_vm2, %v5191_v50 }
0x1024   : > { %4720 = vmatprep.subr.bf16.mxu0 %v5187_v41  ;;  %4526 = vmatprep.subr.mxu1 %v5191_v50 }
0x1026   : > { %v3170_v52 = vpop.permute.xlu1 %3169  ;;  %4574 = vmatmul.mubr.msk.f32.vlgmr.msra.gmra.mrb[38].mxu0 %vm939_vm3, %v2929_v42 }
0x1027   : > { %4723 = vmatpush3.bf16.xpose.msk.msra.mxu0 %vm5484_vm4, %v4721_v55  ;;  %4576 = vmatprep.mubr.msk.f32.mxu0 %vm5190_vm2, %v5191_v50 }
0x1028   : > { %4601 = vmatprep.subr.mxu0 %v5191_v50 }
0x102a   : > { %v3174_v57 = vpop.permute.xlu1 %3173  ;;  %4577 = vmatmul.mubr.msk.f32.gmra.mrb[40].mxu0 %vm939_vm3, %v2931_v28 }
0x102b   : > { %4579 = vmatprep.mubr.msk.f32.mxu0 %vm5190_vm2, %v5191_v50 }
0x102e   : > { %v2588_v60 = vpop.permute.xlu1 %2587  ;;  %4580 = vmatmul.mubr.msk.f32.gmra.mrb[42].mxu0 %vm939_vm3, %v2933_v54 }
0x102f   : > { %4527 = vmatpush3.msra.mxu1 %v2588_v60  ;;  %4602 = vmatpush3.xpose.msk.msra.mxu0 %vm939_vm3, %v3180_v31 }
0x1030   : > { %4603 = vmatprep.mubr.msk.f32.mxu0 %vm5190_vm2, %v5191_v50  ;;  %4710 = vmatprep.subr.bf16.mxu1 %v5187_v41 }
0x1032   : > { %4604 = vmatmul.mubr.msk.f32.vlgmr.msra.gmra.mrb[44].mxu0 %vm939_vm3, %v3170_v52 }
0x1033   : > { %4606 = vmatprep.mubr.msk.f32.mxu0 %vm5190_vm2, %v5191_v50 }
0x1036   : > { %4607 = vmatmul.mubr.msk.f32.gmra.mrb[46].mxu0 %vm939_vm3, %v3172_v34 }
0x1037   : > { %4609 = vmatprep.mubr.msk.f32.mxu0 %vm5190_vm2, %v5191_v50 }
0x103a   : > { %4610 = vmatmul.mubr.msk.f32.gmra.mrb[48].mxu0 %vm939_vm3, %v3174_v57 }
0x10e9   : > { %v2536_v61 = vpop.f32.mrb[40].mxu1 }
0x10ea   : > { %v2550_v59 = vmul.f32 0.35355338, %v2536_v61  ;;  %v4515_v53 = vpop.f32.mrb[41].mxu1 }
0x10ec   : > { %v5950_v63 = vsel %vm791_vm5, %v2550_v59, -1e+30 }
0x10ed   : > { %v2541_v56 = vpop.f32.mrb[42].mxu1  ;;  %v2777_v62 = vpop.f32.mrb[32].mxu0  ;;  %v2556_v58 = vsel %vm1038_vm6, %v5950_v63, -inf }
0x10ee   : > { %v2551_v2 = vmul.f32 0.35355338, %v2541_v56  ;;  %v2791_v3 = vmul.f32 0.35355338, %v2777_v62  ;;  %v4545_v0 = vpop.f32.mrb[33].mxu0  ;;  %2557 = vmax.xlane.f32.xlu0 %v2556_v58  ;;  %v4518_v5 = vpop.f32.mrb[43].mxu1 }
0x10ef   : > { %v4877_v62 = vpop.permute.xlu0 %4876  ;;  %v2829_v58 = vpop.permute.xlu1 %2828 }
0x10f0   : > { %v5956_v7 = vsel %vm791_vm5, %v2551_v2, -1e+30  ;;  %v5960_v9 = vsel %vm791_vm5, %v2791_v3, -1e+30 }
0x10f1   : > { %v2546_v10 = vpop.f32.mrb[44].mxu1  ;;  %v2782_v11 = vpop.f32.mrb[34].mxu0  ;;  %v2797_v12 = vsel %vm1038_vm6, %v5960_v9, -inf  ;;  %v2559_v14 = vsel %vm1038_vm6, %v5956_v7, -inf }
0x10f2   : > { %v2552_v16 = vmul.f32 0.35355338, %v2546_v10  ;;  %v2792_v30 = vmul.f32 0.35355338, %v2782_v11  ;;  %v4548_v17 = vpop.f32.mrb[35].mxu0  ;;  %2798 = vmax.xlane.f32.xlu0 %v2797_v12  ;;  %2560 = vmax.xlane.f32.xlu1 %v2559_v14  ;;  %v4521_v19 = vpop.f32.mrb[45].mxu1 }
0x10f4   : > { %v5968_v20 = vsel %vm791_vm5, %v2792_v30, -1e+30  ;;  %v5974_v39 = vsel %vm791_vm5, %v2552_v16, -1e+30  ;;  %v4878_v30 = vunpack.i.l.bf16 %v4877_v62 }
0x10f5   : > { %v2787_v43 = vpop.f32.mrb[36].mxu0  ;;  %v2800_v13 = vsel %vm1038_vm6, %v5968_v20, -inf  ;;  %v2562_v24 = vsel %vm1038_vm6, %v5974_v39, -inf }
0x10f6   : > { %v4551_v22 = vpop.f32.mrb[37].mxu0  ;;  %2801 = vmax.xlane.f32.xlu0 %v2800_v13  ;;  %v2793_v31 = vmul.f32 0.35355338, %v2787_v43 }
0x10f8   : > { %v5984_v32 = vsel %vm791_vm5, %v2793_v31, -1e+30 }
0x10f9   : > { %v3018_v23 = vpop.f32.mrb[38].mxu0  ;;  %v2803_v36 = vsel %vm1038_vm6, %v5984_v32, -inf }
0x10fa   : > { %v4575_v45 = vpop.f32.mrb[39].mxu0  ;;  %2563 = vmax.xlane.f32.xlu0 %v2562_v24  ;;  %v3032_v33 = vmul.f32 0.35355338, %v3018_v23 }
0x10fc   : > { %v5990_v37 = vsel %vm791_vm5, %v3032_v33, -1e+30 }
0x10fd   : > { %v3023_v25 = vpop.f32.mrb[40].mxu0  ;;  %v3038_v42 = vsel %vm1038_vm6, %v5990_v37, -inf }
0x10fe   : > { %v4578_v26 = vpop.f32.mrb[41].mxu0  ;;  %v3033_v34 = vmul.f32 0.35355338, %v3023_v25 }
0x1100   : > { %v5994_v40 = vsel %vm791_vm5, %v3033_v34, -1e+30 }
0x1101   : > { %v3028_v51 = vpop.f32.mrb[42].mxu0  ;;  %v3041_v54 = vsel %vm1038_vm6, %v5994_v40, -inf }
0x1102   : > { %v4581_v27 = vpop.f32.mrb[43].mxu0  ;;  %v3034_v38 = vmul.f32 0.35355338, %v3028_v51 }
0x1103   : > { %3069 = vrot.lane.b32.xlu1 %v5852_v15, %s6350_s21 }
0x1104   : > { %v6000_v44 = vsel %vm791_vm5, %v3034_v38, -1e+30 }
0x1105   : > { %v3259_v47 = vpop.f32.mrb[44].mxu0  ;;  %v3044_v55 = vsel %vm1038_vm6, %v6000_v44, -inf }
0x1106   : > { %v4605_v8 = vpop.f32.mrb[45].mxu0  ;;  %v3273_v46 = vmul.f32 0.35355338, %v3259_v47 }
0x1108   : > { %v6008_v52 = vsel %vm791_vm5, %v3273_v46, -1e+30 }
0x1109   : > { %v3264_v28 = vpop.f32.mrb[46].mxu0  ;;  %v3279_v61 = vsel %vm1038_vm6, %v6008_v52, -inf }
0x110a   : > { %v4608_v29 = vpop.f32.mrb[47].mxu0  ;;  %v3274_v48 = vmul.f32 0.35355338, %v3264_v28 }
0x110c   : > { %v6012_v57 = vsel %vm791_vm5, %v3274_v48, -1e+30 }
0x110d   : > { %v3269_v4 = vpop.f32.mrb[48].mxu0  ;;  %v3282_v59 = vsel %vm1038_vm6, %v6012_v57, -inf }
0x110e   : > { %v4611_v6 = vpop.f32.mrb[49].mxu0  ;;  %v3275_v60 = vmul.f32 0.35355338, %v3269_v4 }
0x1110   : > { %4881 = vrot.lane.b32.xlu0 %v5856_v49, %s6350_s21  ;;  %v6020_v53 = vsel %vm791_vm5, %v3275_v60, -1e+30  ;;  %s3920_s21 = sshll.u32 %s634_s30, 4  ;;  %s6220_s21 = int_to_ptr.vmem [resolvable:$true] %s3920_s21 }
0x1111   : > { %v3285_v56 = vsel %vm1038_vm6, %v6020_v53, -inf }
0x1127   : > { %2804 = vmax.xlane.f32.xlu1 %v2803_v36 }
0x112b   : > { %3039 = vmax.xlane.f32.xlu1 %v3038_v42 }
0x112f   : > { %3042 = vmax.xlane.f32.xlu1 %v3041_v54  ;;  %3045 = vmax.xlane.f32.xlu0 %v3044_v55 }
0x1133   : > { %3280 = vmax.xlane.f32.xlu1 %v3279_v61  ;;  %3283 = vmax.xlane.f32.xlu0 %v3282_v59 }
0x1137   : > { %3286 = vmax.xlane.f32.xlu1 %v3285_v56 }
0x1148   : > { %3310 = vrot.lane.b32.xlu1 %v5852_v15, %s6351_s28 }
0x1149   : > { %4886 = vrot.lane.b32.xlu0 %v5856_v49, %s6351_s28  ;;  %v4879_v49 = vunpack.i.h.bf16 %v4877_v62 }
0x114b   : > { %v4711_v13 = vpack.c.bf16 %v4879_v49, %v4878_v30 }
0x117b   : > { %v2558_v2 = vpop.xlane.xlu0 %2557 }
0x117c   : > { %v2565_v3 = vsub.f32 %v5950_v63, %v2558_v2 }
0x117e   : > { %v2568_v1 = vmul.f32 1.442695, %v2565_v3 }
0x117f   : > { %v2799_v0 = vpop.xlane.xlu0 %2798  ;;  %v2561_v5 = vpop.xlane.xlu1 %2560 }
0x1180   : > { %5022 = vpow2.f32 %v2568_v1  ;;  %v2806_v10 = vsub.f32 %v5960_v9, %v2799_v0  ;;  %v2566_v11 = vsub.f32 %v5956_v7, %v2561_v5 }
0x1182   : > { %v2809_v12 = vmul.f32 1.442695, %v2806_v10  ;;  %v2570_v14 = vmul.f32 1.442695, %v2566_v11 }
0x1183   : > { %v2802_v16 = vpop.xlane.xlu0 %2801  ;;  %v3070_v27 = vpop.permute.xlu1 %3069 }
0x1184   : > { %5024 = vpow2.f32 %v2809_v12  ;;  %v2807_v15 = vsub.f32 %v5968_v20, %v2802_v16 }
0x1185   : > { %5026 = vpow2.f32 %v2570_v14 }
0x1186   : > { %v2811_v17 = vmul.f32 1.442695, %v2807_v15 }
0x1187   : > { %v2564_v19 = vpop.xlane.xlu0 %2563 }
0x1188   : > { %5028 = vpow2.f32 %v2811_v17  ;;  %v2567_v63 = vsub.f32 %v5974_v39, %v2564_v19 }
0x118a   : > { %v6033_v43 = vpop.eup %5022  ;;  %v2572_v9 = vmul.f32 1.442695, %v2567_v63 }
0x118b   : > { %4529 = vmatmul.mubr.msk.f32.vlgmr.msra.gmra.mrb[46].mxu1 %vm1038_vm6, %v6033_v43  ;;  %v4882_v23 = vpop.permute.xlu0 %4881  ;;  %v2574_v15 = vsel %vm1038_vm6, %v6033_v43, 0.0 }
0x118c   : > { %5030 = vpow2.f32 %v2572_v9  ;;  %4712 = vmatpush3.bf16.msra.mxu1 %v4711_v13  ;;  %4531 = vmatprep.mubr.msk.f32.mxu1 %vm5190_vm2, %v5191_v50  ;;  %v4884_v25 = vunpack.i.h.bf16 %v4882_v23  ;;  %v4883_v26 = vunpack.i.l.bf16 %v4882_v23 }
0x118d   : > { %4556 = vmatprep.subr.mxu1 %v5191_v50 }
0x118e   : > { %v5025_v7 = vpop.eup %5024  ;;  %v4718_v51 = vpack.c.bf16 %v4884_v25, %v4883_v26 }
0x118f   : > { %v6040_v20 = vpop.eup %5026  ;;  %v2815_v22 = vsel %vm1038_vm6, %v5025_v7, 0.0 }
0x1190   : > { %4532 = vmatmul.mubr.msk.f32.gmra.mrb[48].mxu1 %vm1038_vm6, %v6040_v20  ;;  %2816 = vadd.xlane.f32.xlu0 %v2815_v22  ;;  %v2577_v49 = vsel %vm1038_vm6, %v6040_v20, 0.0 }
0x1191   : > { %4557 = vmatpush3.msra.mxu1 %v2829_v58  ;;  %4534 = vmatprep.mubr.msk.f32.mxu1 %vm5190_vm2, %v5191_v50 }
0x1192   : > { %v5029_v39 = vpop.eup %5028  ;;  %4717 = vmatprep.subr.bf16.mxu1 %v5187_v41 }
0x1193   : > { %v2818_v24 = vsel %vm1038_vm6, %v5029_v39, 0.0 }
0x1194   : > { %2819 = vadd.xlane.f32.xlu1 %v2818_v24 }
0x1196   : > { %v6049_v45 = vpop.eup %5030 }
0x1197   : > { %4535 = vmatmul.mubr.msk.f32.gmra.mrb[50].mxu1 %vm1038_vm6, %v6049_v45  ;;  %v2580_v30 = vsel %vm1038_vm6, %v6049_v45, 0.0 }
0x1198   : > { %4558 = vmatprep.mubr.msk.f32.mxu1 %vm5190_vm2, %v5191_v50 }
0x119b   : > { %4559 = vmatmul.mubr.msk.f32.vlgmr.msra.gmra.mrb[52].mxu1 %vm1038_vm6, %v5025_v7 }
0x119c   : > { %4719 = vmatpush3.bf16.msra.mxu1 %v4718_v51  ;;  %4561 = vmatprep.mubr.msk.f32.mxu1 %vm5190_vm2, %v5191_v50 }
0x119d   : > { %4586 = vmatprep.subr.mxu1 %v5191_v50 }
0x119f   : > { %4562 = vmatmul.mubr.msk.f32.gmra.mrb[54].mxu1 %vm1038_vm6, %v5029_v39 }
0x11a0   : > { %4587 = vmatpush3.msra.mxu1 %v3070_v27  ;;  %4564 = vmatprep.mubr.msk.f32.mxu1 %vm5190_vm2, %v5191_v50 }
0x11a1   : > { %4724 = vmatprep.subr.bf16.mxu1 %v5187_v41 }
0x11b4   : > { %v2805_v47 = vpop.xlane.xlu1 %2804 }
0x11b5   : > { %v2808_v8 = vsub.f32 %v5984_v32, %v2805_v47 }
0x11b7   : > { %v2813_v28 = vmul.f32 1.442695, %v2808_v8 }
0x11b8   : > { %v3040_v29 = vpop.xlane.xlu1 %3039 }
0x11b9   : > { %5032 = vpow2.f32 %v2813_v28  ;;  %v3047_v4 = vsub.f32 %v5990_v37, %v3040_v29 }
0x11bb   : > { %v3050_v6 = vmul.f32 1.442695, %v3047_v4 }
0x11bc   : > { %v3043_v31 = vpop.xlane.xlu1 %3042  ;;  %v3046_v33 = vpop.xlane.xlu0 %3045 }
0x11bd   : > { %5034 = vpow2.f32 %v3050_v6  ;;  %v3048_v34 = vsub.f32 %v5994_v40, %v3043_v31  ;;  %v3049_v36 = vsub.f32 %v6000_v44, %v3046_v33 }
0x11bf   : > { %v3052_v38 = vmul.f32 1.442695, %v3048_v34  ;;  %v3054_v42 = vmul.f32 1.442695, %v3049_v36  ;;  %v4924_v36 = vld [vmem:[%s6269_s9 + $0x10] sm:$0xff]  }
0x11c0   : > { %v3281_v46 = vpop.xlane.xlu1 %3280  ;;  %v3284_v41 = vpop.xlane.xlu0 %3283  ;;  %4627 = vmatprep.subr.bf16.mxu0 %v4924_v36 }
0x11c1   : > { %5036 = vpow2.f32 %v3052_v38  ;;  %v3288_v32 = vsub.f32 %v6008_v52, %v3281_v46  ;;  %v3289_v48 = vsub.f32 %v6012_v57, %v3284_v41  ;;  %4628 = vmatpush3.bf16.msra.mxu0 %v4924_v36 }
0x11c2   : > { %5038 = vpow2.f32 %v3054_v42 }
0x11c3   : > { %v5033_v54 = vpop.eup %5032  ;;  %v3291_v37 = vmul.f32 1.442695, %v3288_v32  ;;  %v3293_v55 = vmul.f32 1.442695, %v3289_v48 }
0x11c4   : > { %v3287_v60 = vpop.xlane.xlu1 %3286  ;;  %4565 = vmatmul.mubr.msk.f32.gmra.mrb[56].mxu1 %vm1038_vm6, %v5033_v54  ;;  %v4887_v61 = vpop.permute.xlu0 %4886  ;;  %v2821_v40 = vsel %vm1038_vm6, %v5033_v54, 0.0 }
0x11c5   : > { %5040 = vpow2.f32 %v3291_v37  ;;  %v3290_v44 = vsub.f32 %v6020_v53, %v3287_v60  ;;  %v4889_v59 = vunpack.i.h.bf16 %v4887_v61  ;;  %v4888_v56 = vunpack.i.l.bf16 %v4887_v61  ;;  %2822 = vadd.xlane.f32.xlu0 %v2821_v40  ;;  %4588 = vmatprep.mubr.msk.f32.mxu1 %vm5190_vm2, %v5191_v50 }
0x11c6   : > { %5042 = vpow2.f32 %v3293_v55 }
0x11c7   : > { %v5035_v52 = vpop.eup %5034  ;;  %v3295_v57 = vmul.f32 1.442695, %v3290_v44  ;;  %v4725_v62 = vpack.c.bf16 %v4889_v59, %v4888_v56  ;;  %v4925_v56 = vld [vmem:[%s6269_s9 + $0x18] sm:$0xff]  }
0x11c8   : > { %4589 = vmatmul.mubr.msk.f32.vlgmr.msra.gmra.mrb[58].mxu1 %vm1038_vm6, %v5035_v52  ;;  %v3056_v58 = vsel %vm1038_vm6, %v5035_v52, 0.0  ;;  %v3311_v3 = vpop.permute.xlu1 %3310  ;;  %4629 = vmatprep.subr.bf16.mxu0 %v4925_v56 }
0x11c9   : > { %5044 = vpow2.f32 %v3295_v57  ;;  %3057 = vadd.xlane.f32.xlu0 %v3056_v58  ;;  %4726 = vmatpush3.bf16.msra.mxu1 %v4725_v62 }
0x11ca   : > { %4591 = vmatprep.mubr.msk.f32.mxu1 %vm5190_vm2, %v5191_v50  ;;  %4616 = vmatprep.subr.mxu1 %v5191_v50 }
0x11cb   : > { %v5037_v53 = vpop.eup %5036  ;;  %4630 = vmatpush3.bf16.msra.mxu0 %v4925_v56 }
0x11cc   : > { %v5039_v2 = vpop.eup %5038  ;;  %4592 = vmatmul.mubr.msk.f32.gmra.mrb[60].mxu1 %vm1038_vm6, %v5037_v53  ;;  %v3059_v1 = vsel %vm1038_vm6, %v5037_v53, 0.0 }
0x11cd   : > { %3060 = vadd.xlane.f32.xlu0 %v3059_v1  ;;  %v3062_v0 = vsel %vm1038_vm6, %v5039_v2, 0.0  ;;  %4617 = vmatpush3.msra.mxu1 %v3311_v3 }
0x11ce   : > { %3063 = vadd.xlane.f32.xlu1 %v3062_v0  ;;  %4594 = vmatprep.mubr.msk.f32.mxu1 %vm5190_vm2, %v5191_v50 }
0x11cf   : > { %v5041_v5 = vpop.eup %5040 }
0x11d0   : > { %v5043_v10 = vpop.eup %5042  ;;  %4595 = vmatmul.mubr.msk.f32.gmra.mrb[62].mxu1 %vm1038_vm6, %v5039_v2  ;;  %v3297_v11 = vsel %vm1038_vm6, %v5041_v5, 0.0 }
0x11d1   : > { %3298 = vadd.xlane.f32.xlu0 %v3297_v11  ;;  %v3300_v12 = vsel %vm1038_vm6, %v5043_v10, 0.0  ;;  %4618 = vmatprep.mubr.msk.f32.mxu1 %vm5190_vm2, %v5191_v50 }
0x11d2   : > { %3301 = vadd.xlane.f32.xlu1 %v3300_v12 }
0x11d3   : > { %v5045_v14 = vpop.eup %5044 }
0x11d4   : > { %4619 = vmatmul.mubr.msk.f32.vlgmr.msra.gmra.mrb[64].mxu1 %vm1038_vm6, %v5041_v5  ;;  %v3303_v16 = vsel %vm1038_vm6, %v5045_v14, 0.0 }
0x11d5   : > { %3304 = vadd.xlane.f32.xlu0 %v3303_v16  ;;  %4621 = vmatprep.mubr.msk.f32.mxu1 %vm5190_vm2, %v5191_v50 }
0x11d6   : > { %2575 = vadd.xlane.f32.xlu1 %v2574_v15 }
0x11d8   : > { %4622 = vmatmul.mubr.msk.f32.gmra.mrb[66].mxu1 %vm1038_vm6, %v5043_v10 }
0x11d9   : > { %2578 = vadd.xlane.f32.xlu0 %v2577_v49  ;;  %4624 = vmatprep.mubr.msk.f32.mxu1 %vm5190_vm2, %v5191_v50 }
0x11da   : > { %2581 = vadd.xlane.f32.xlu1 %v2580_v30 }
0x11dc   : > { %4625 = vmatmul.mubr.msk.f32.gmra.mrb[68].mxu1 %vm1038_vm6, %v5045_v14 }
0x121d   : > { %v2817_v43 = vpop.xlane.xlu0 %2816 }
0x121e   : > { %5046 = vrcp.f32 %v2817_v43 }
0x1221   : > { %v2820_v9 = vpop.xlane.xlu1 %2819 }
0x1222   : > { %5048 = vrcp.f32 %v2820_v9 }
0x1228   : > { %v5047_v23 = vpop.eup %5046 }
0x122c   : > { %v5049_v24 = vpop.eup %5048 }
0x1252   : > { %v2823_v47 = vpop.xlane.xlu0 %2822 }
0x1253   : > { %5050 = vrcp.f32 %v2823_v47 }
0x1256   : > { %v3058_v8 = vpop.xlane.xlu0 %3057 }
0x1257   : > { %5052 = vrcp.f32 %v3058_v8 }
0x125a   : > { %v3061_v28 = vpop.xlane.xlu0 %3060 }
0x125b   : > { %5054 = vrcp.f32 %v3061_v28  ;;  %v3064_v6 = vpop.xlane.xlu1 %3063 }
0x125c   : > { %5056 = vrcp.f32 %v3064_v6 }
0x125d   : > { %v5051_v29 = vpop.eup %5050 }
0x125e   : > { %v6103_v17 = vpop.f32.mrb[46].mxu1  ;;  %v3299_v38 = vpop.xlane.xlu0 %3298 }
0x125f   : > { %v4530_v19 = vpop.f32.mrb[47].mxu1  ;;  %v3302_v41 = vpop.xlane.xlu1 %3301  ;;  %5058 = vrcp.f32 %v3299_v38 }
0x1260   : > { %5060 = vrcp.f32 %v3302_v41 }
0x1261   : > { %v5053_v46 = vpop.eup %5052 }
0x1262   : > { %v3305_v60 = vpop.xlane.xlu0 %3304 }
0x1263   : > { %v6105_v63 = vpop.f32.mrb[48].mxu1  ;;  %5062 = vrcp.f32 %v3305_v60  ;;  %v2576_v16 = vpop.xlane.xlu1 %2575 }
0x1264   : > { %v4533_v13 = vpop.f32.mrb[49].mxu1  ;;  %5064 = vrcp.f32 %v2576_v16 }
0x1265   : > { %v5055_v32 = vpop.eup %5054 }
0x1266   : > { %v5057_v59 = vpop.eup %5056  ;;  %v2579_v15 = vpop.xlane.xlu0 %2578 }
0x1267   : > { %v2582_v49 = vpop.xlane.xlu1 %2581  ;;  %5066 = vrcp.f32 %v2579_v15 }
0x1268   : > { %5068 = vrcp.f32 %v2582_v49 }
0x1269   : > { %v5059_v58 = vpop.eup %5058 }
0x126a   : > { %v6107_v7 = vpop.f32.mrb[50].mxu1  ;;  %v5061_v53 = vpop.eup %5060 }
0x126b   : > { %v4536_v20 = vpop.f32.mrb[51].mxu1 }
0x126d   : > { %v5063_v10 = vpop.eup %5062 }
0x126e   : > { %v2908_v22 = vpop.f32.mrb[52].mxu1  ;;  %v5065_v13 = vpop.eup %5064 }
0x126f   : > { %v4560_v39 = vpop.f32.mrb[53].mxu1  ;;  %v2925_v25 = vmul.f32 %v5047_v23, %v2908_v22 }
0x1271   : > { %v5067_v9 = vpop.eup %5066 }
0x1272   : > { %v2913_v45 = vpop.f32.mrb[54].mxu1  ;;  %v5069_v20 = vpop.eup %5068  ;;  %v2685_v23 = vmul.f32 %v5067_v9, %v6105_v63 }
0x1273   : > { %v2926_v26 = vmul.f32 %v5049_v24, %v2913_v45  ;;  %v4563_v51 = vpop.f32.mrb[55].mxu1 }
0x1274   : > { %v2684_v51 = vmul.f32 %v5065_v13, %v6103_v17 }
0x1275   : > { %v4890_v27 = vpack.i.bf16 %v2926_v26, %v2925_v25  ;;  %v2686_v26 = vmul.f32 %v5069_v20, %v6107_v7 }
0x1277   : > { %4891 = vrot.lane.b32.xlu0 %v4890_v27, %s6352_s3 }
0x1297   : > { %v2918_v4 = vpop.f32.mrb[56].mxu1 }
0x1298   : > { %v2927_v31 = vmul.f32 %v5051_v29, %v2918_v4  ;;  %v4566_v33 = vpop.f32.mrb[57].mxu1 }
0x129a   : > { %3417 = vrot.lane.b32.xlu1 %v2927_v31, %s6352_s3 }
0x129b   : > { %v3149_v34 = vpop.f32.mrb[58].mxu1 }
0x129c   : > { %v4590_v42 = vpop.f32.mrb[59].mxu1  ;;  %v3166_v54 = vmul.f32 %v5053_v46, %v3149_v34 }
0x129d   : > { %v4123_v42 = vld [vmem:[%s6270_s10 + $0x1] ss:$0 sm:$0xff] }
0x129f   : > { %v3154_v48 = vpop.f32.mrb[60].mxu1 }
0x12a0   : > { %v3167_v37 = vmul.f32 %v5055_v32, %v3154_v48  ;;  %v4593_v55 = vpop.f32.mrb[61].mxu1 }
0x12a2   : > { %v4895_v61 = vpack.i.bf16 %v3167_v37, %v3166_v54 }
0x12a3   : > { %v3159_v40 = vpop.f32.mrb[62].mxu1 }
0x12a4   : > { %4896 = vrot.lane.b32.xlu1 %v4895_v61, %s6353_s29  ;;  %v4596_v44 = vpop.f32.mrb[63].mxu1  ;;  %v3168_v52 = vmul.f32 %v5057_v59, %v3159_v40 }
0x12a7   : > { %v3390_v57 = vpop.f32.mrb[64].mxu1 }
0x12a8   : > { %3429 = vrot.lane.b32.xlu1 %v3168_v52, %s6353_s29  ;;  %v4620_v62 = vpop.f32.mrb[65].mxu1  ;;  %v3407_v3 = vmul.f32 %v5059_v58, %v3390_v57  ;;  %s5118_s29 = scalar_lea.vmem %s6220_s21, 16 }
0x12a9   : > { %p5119_p5 = scmp.ne.s32.totalorder %s6220_s21, %s5118_s29 }
0x12ab   : > { %v3395_v2 = vpop.f32.mrb[66].mxu1  ;;  %p5120_p10 = pnand %p5119_p5, %p6355_p9 }
0x12ac   : > { %v3408_v1 = vmul.f32 %v5061_v53, %v3395_v2  ;;  %v4623_v0 = vpop.f32.mrb[67].mxu1 }
0x12ad   : > { %p5121_p12 = pneg %p5120_p10 }
0x12ae   : > { %v4900_v5 = vpack.i.bf16 %v3408_v1, %v3407_v3 }
0x12af   : > { %v3400_v11 = vpop.f32.mrb[68].mxu1 }
0x12b0   : > { %v3409_v12 = vmul.f32 %v5063_v10, %v3400_v11  ;;  %4901 = vrot.lane.b32.xlu0 %v4900_v5, %s6354_s0  ;;  %v4626_v14 = vpop.f32.mrb[69].mxu1 }
0x12b1   : > { %v4927_v14 = vld [vmem:[%s6273_s13 + $0x18] sm:$0xff]  }
0x12b2   : > { %3441 = vrot.lane.b32.xlu1 %v3409_v12, %s6354_s0  ;;  %v4926_v12 = vld [vmem:[%s6273_s13 + $0x10] sm:$0xff]   ;;  %s4174_s0 = sshll.u32 %s5331_s2, 4  ;;  %s5204_s2 = smov [#allocation5]  }
0x12b3   : > { %4635 = vmatprep.subr.bf16.mxu1 %v4926_v12  ;;  %s6218_s24 = scalar_lea.hbm %s6280_s20, %s4174_s0  ;;  %s5122_s23 = sshll.u32 %s5204_s2, 4  ;;  %s5123_s23 = int_to_ptr.vmem [resolvable:$false] %s5122_s23 }
0x12b4   : > { %4636 = vmatpush3.bf16.msra.mxu1 %v4926_v12  ;;  %s5124_s0 = scalar_lea.vmem %s5123_s23, 32  ;;  %p5125_p2 = scmp.lt.s32.totalorder %s6220_s21, %s5123_s23 }
0x12b5   : > { %4637 = vmatprep.subr.bf16.mxu1 %v4927_v14  ;;  %p5126_p3 = scmp.lt.s32.totalorder %s5124_s0, %s5118_s29 }
0x12b7   : > { %p5127_p4 = por %p5126_p3, %p5125_p2 }
0x12b8   : > { %4638 = vmatpush3.bf16.msra.mxu1 %v4927_v14  ;;  %v4162_v14 = vld [vmem:[%s6276_s16 + $0x1] ss:$0 sm:$0xff] }
0x12b9   : > { %4663 = vmatprep.subr.bf16.mxu1 %v5191_v50  ;;  %p5128_p7 = pnand %p5127_p4, %p5121_p12 }
0x12e9   : > { %v4892_v43 = vpop.permute.xlu0 %4891 }
0x12ea   : > { %v4894_v22 = vunpack.i.h.bf16 %v4892_v43  ;;  %v4893_v39 = vunpack.i.l.bf16 %v4892_v43 }
0x12ec   : > { %v3447_v27 = vsel %vm939_vm3, %v2685_v23, %v4894_v22  ;;  %v3446_v8 = vsel %vm939_vm3, %v2684_v51, %v4893_v39  ;;  %v4130_v23 = vld [vmem:[%s6271_s11 + $0x1] ss:$0 sm:$0xff] }
0x130c   : > { %v3418_v30 = vpop.permute.xlu1 %3417 }
0x130d   : > { %v3448_v28 = vsel %vm939_vm3, %v2686_v26, %v3418_v30 }
0x1316   : > { %v4897_v19 = vpop.permute.xlu1 %4896 }
0x1317   : > { %v4899_v24 = vunpack.i.h.bf16 %v4897_v19  ;;  %v4898_v45 = vunpack.i.l.bf16 %v4897_v19 }
0x1319   : > { %v3450_v6 = vsel %vm1932_vm7, %v3447_v27, %v4899_v24  ;;  %v3449_v63 = vsel %vm1932_vm7, %v3446_v8, %v4898_v45  ;;  %v4131_v27 = vld [vmem:[%s6272_s12 + $0x1] ss:$0 sm:$0xff] }
0x131a   : > { %v3430_v25 = vpop.permute.xlu1 %3429 }
0x131b   : > { %v3451_v31 = vsel %vm1932_vm7, %v3448_v28, %v3430_v25 }
0x1322   : > { %v4902_v47 = vpop.permute.xlu0 %4901 }
0x1323   : > { %v4904_v29 = vunpack.i.h.bf16 %v4902_v47  ;;  %v4903_v4 = vunpack.i.l.bf16 %v4902_v47 }
0x1324   : > { %v3442_v33 = vpop.permute.xlu1 %3441 }
0x1325   : > { %v3453_v7 = vsel %vm1038_vm6, %v3450_v6, %v4904_v29  ;;  %v3452_v17 = vsel %vm1038_vm6, %v3449_v63, %v4903_v4  ;;  %v3454_v34 = vsel %vm1038_vm6, %v3451_v31, %v3442_v33  ;;  %v4928_v31 = vld [vmem:[%s6275_s15 + $0x40] sm:$0xff]   ;;  %v4929_v33 = vld [vmem:[%s6275_s15 + $0x48] sm:$0xff]  }
0x1326   : > { %v3460_v36 = vpack.c.bf16 %v3453_v7, %v3452_v17  ;;  %v3461_v38 = vpack.c.bf16 %v3454_v34, %v3454_v34  ;;  %4643 = vmatprep.subr.bf16.mxu0 %v4928_v31  ;;  %v4930_v7 = vld [vmem:[%s6275_s15 + $0x50] sm:$0xff]   ;;  %v4931_v17 = vld [vmem:[%s6275_s15 + $0x58] sm:$0xff]   ;;  %v4932_v34 = vld [vmem:[%s6275_s15 + $0x60] sm:$0xff]  }
0x1328   : > { %4631 = vmatprep.mubr.msk.bf16.mxu0 %vm730_vm1, %v3460_v36  ;;  %v4933_v36 = vld [vmem:[%s6275_s15 + $0x68] sm:$0xff]  }
0x1329   : > { %4632 = vmatmul.mubr.msk.bf16.vlgmr.msra.gmra.mrb[52].mxu0 %vm730_vm1, %v3461_v38  ;;  %v4934_v38 = vld [vmem:[%s6275_s15 + $0x70] sm:$0xff]  }
0x132a   : > { %4644 = vmatpush3.bf16.msra.mxu0 %v4928_v31 }
0x132b   : > { %4645 = vmatprep.subr.bf16.mxu0 %v4929_v33 }
0x132e   : > { %4646 = vmatpush3.bf16.msra.mxu0 %v4929_v33 }
0x132f   : > { %4647 = vmatprep.subr.bf16.mxu0 %v4930_v7 }
0x1332   : > { %4648 = vmatpush3.bf16.msra.mxu0 %v4930_v7 }
0x1333   : > { %4649 = vmatprep.subr.bf16.mxu0 %v4931_v17 }
0x1336   : > { %4650 = vmatpush3.bf16.msra.mxu0 %v4931_v17 }
0x1337   : > { %4651 = vmatprep.subr.bf16.mxu0 %v4932_v34 }
0x133a   : > { %4652 = vmatpush3.bf16.msra.mxu0 %v4932_v34 }
0x133b   : > { %4653 = vmatprep.subr.bf16.mxu0 %v4933_v36 }
0x133e   : > { %4654 = vmatpush3.bf16.msra.mxu0 %v4933_v36 }
0x133f   : > { %4655 = vmatprep.subr.bf16.mxu0 %v4934_v38 }
0x1342   : > { %4656 = vmatpush3.bf16.msra.mxu0 %v4934_v38 }
0x13fc   : > { %v4633_v46 = vpop.f32.mrb[52].mxu0 }
0x13fd   : > { %v3522_v41 = vpop.f32.mrb[53].mxu0  ;;  %v3531_v32 = vadd.f32 %v4633_v46, %v4123_v42  ;;  %v4137_v46 = vld [vmem:[%s6274_s14 + $0x1] ss:$0 sm:$0xff] }
0x13fe   : > { %v3523_v48 = vadd.f32 %v4123_v42, %v3522_v41  ;;  %v4634_v54 = vpop.f32.mrb[54].mxu0 }
0x13ff   : > { %v3525_v37 = vpop.f32.mrb[55].mxu0  ;;  %v3538_v61 = vadd.f32 %v3531_v32, %v5815_v21 }
0x1400   : > { %v6139_v55 = vadd.f32 %v3523_v48, %v5812_v18  ;;  %v3526_v60 = vadd.f32 %v4123_v42, %v3525_v37  ;;  %v4935_v42 = vld [vmem:[%s6275_s15 + $0x78] sm:$0xff]  }
0x1401   : > { %v3549_v56 = vsel %vm730_vm1, %v3538_v61, 0.0  ;;  %4657 = vmatprep.subr.bf16.mxu0 %v4935_v42 }
0x1402   : > { %v3537_v40 = vadd.f32 %v3526_v60, %v5818_v35  ;;  %v3543_v44 = vsel %vm730_vm1, %v6139_v55, 0.0  ;;  %4658 = vmatpush3.bf16.msra.mxu0 %v4935_v42 }
0x1403   : > { %3544 = vadd.xlane.f32.xlu0 %v3543_v44 }
0x1404   : > { %v3546_v59 = vsel %vm730_vm1, %v3537_v40, 0.0 }
0x1405   : > { %3547 = vadd.xlane.f32.xlu1 %v3546_v59 }
0x1407   : > { %3550 = vadd.xlane.f32.xlu0 %v3549_v56 }
0x1490   : > { %v3545_v52 = vpop.xlane.xlu0 %3544 }
0x1491   : > { %v3552_v57 = vmul.f32 0.03125, %v3545_v52 }
0x1492   : > { %v3548_v62 = vpop.xlane.xlu1 %3547 }
0x1493   : > { %v3555_v18 = vsub.f32 %v6139_v55, %v3552_v57  ;;  %v3553_v58 = vmul.f32 0.03125, %v3548_v62 }
0x1494   : > { %v3551_v53 = vpop.xlane.xlu0 %3550 }
0x1495   : > { %v3556_v21 = vsub.f32 %v3537_v40, %v3553_v58  ;;  %v3554_v2 = vmul.f32 0.03125, %v3551_v53  ;;  %v3558_v35 = vmul.f32 %v3555_v18, %v3555_v18 }
0x1497   : > { %v3557_v3 = vsub.f32 %v3538_v61, %v3554_v2  ;;  %v3561_v1 = vsel %vm730_vm1, %v3558_v35, 0.0  ;;  %v3559_v0 = vmul.f32 %v3556_v21, %v3556_v21 }
0x1498   : > { %3562 = vadd.xlane.f32.xlu0 %v3561_v1 }
0x1499   : > { %v3560_v5 = vmul.f32 %v3557_v3, %v3557_v3  ;;  %v3564_v10 = vsel %vm730_vm1, %v3559_v0, 0.0 }
0x149b   : > { %v3567_v11 = vsel %vm730_vm1, %v3560_v5, 0.0 }
0x149c   : > { %3565 = vadd.xlane.f32.xlu0 %v3564_v10  ;;  %3568 = vadd.xlane.f32.xlu1 %v3567_v11 }
0x1525   : > { %v3563_v16 = vpop.xlane.xlu0 %3562 }
0x1526   : > { %v3570_v15 = vmul.f32 0.03125, %v3563_v16 }
0x1528   : > { %v3573_v49 = vadd.f32 1e-05, %v3570_v15 }
0x1529   : > { %v3569_v30 = vpop.xlane.xlu1 %3568  ;;  %v3566_v19 = vpop.xlane.xlu0 %3565 }
0x152a   : > { %5070 = vrsqrt.f32 %v3573_v49  ;;  %v3572_v43 = vmul.f32 0.03125, %v3569_v30  ;;  %v3571_v13 = vmul.f32 0.03125, %v3566_v19 }
0x152c   : > { %v3575_v9 = vadd.f32 1e-05, %v3572_v43  ;;  %v3574_v20 = vadd.f32 1e-05, %v3571_v13 }
0x152e   : > { %5072 = vrsqrt.f32 %v3575_v9 }
0x152f   : > { %5074 = vrsqrt.f32 %v3574_v20 }
0x1534   : > { %v5071_v22 = vpop.eup %5070 }
0x1535   : > { %v3579_v39 = vmul.f32 %v5071_v22, %v3555_v18 }
0x1537   : > { %v3588_v51 = vmul.f32 %v4130_v23, %v3579_v39 }
0x1538   : > { %v5073_v24 = vpop.eup %5072 }
0x1539   : > { %v5075_v45 = vpop.eup %5074  ;;  %v3581_v25 = vmul.f32 %v5073_v24, %v3557_v3  ;;  %v3597_v29 = vadd.f32 %v4131_v27, %v3588_v51  ;;  %v4936_v24 = vld [vmem:[%s6279_s19] sm:$0xff]  }
0x153a   : > { %v3580_v26 = vmul.f32 %v5075_v45, %v3556_v21  ;;  %v4937_v45 = vld [vmem:[%s6279_s19 + $0x8] sm:$0xff]  }
0x153b   : > { %v3590_v47 = vmul.f32 %v4130_v23, %v3581_v25 }
0x153c   : > { %v3589_v8 = vmul.f32 %v4130_v23, %v3580_v26 }
0x153d   : > { %v3599_v28 = vadd.f32 %v4131_v27, %v3590_v47 }
0x153e   : > { %v3598_v4 = vadd.f32 %v4131_v27, %v3589_v8  ;;  %v3827_v27 = vld [vmem:[%s6277_s17] sm:$0x1] }
0x153f   : > { %v3606_v6 = vpack.c.bf16 %v3599_v28, %v3599_v28  ;;  %v3828_v8 = vld [vmem:[%s6278_s18] sm:$0x1] }
0x1540   : > { %v3605_v63 = vpack.c.bf16 %v3598_v4, %v3597_v29 }
0x1542   : > { %4639 = vmatprep.mubr.msk.bf16.mxu1 %vm730_vm1, %v3605_v63 }
0x1543   : > { %4640 = vmatmul.mubr.msk.bf16.vlgmr.msra.gmra.mrb[72].mxu1 %vm730_vm1, %v3606_v6 }
0x1544   : > { %4667 = vmatprep.mubr.msk.bf16.mxu1 %vm5190_vm2, %v5191_v50  ;;  %4664 = vmatpush3.bf16.msra.mxu1 %v4936_v24 }
0x1545   : > { %4665 = vmatprep.subr.bf16.mxu1 %v5191_v50 }
0x1548   : > { %4666 = vmatpush3.bf16.msra.mxu1 %v4937_v45 }
0x1616   : > { %v4641_v41 = vpop.f32.mrb[72].mxu1 }
0x1617   : > { %v3676_v32 = vadd.f32 %v4641_v41, %v4137_v46  ;;  %v3667_v48 = vpop.f32.mrb[73].mxu1 }
0x1618   : > { %v3668_v54 = vadd.f32 %v4137_v46, %v3667_v48  ;;  %v4642_v37 = vpop.f32.mrb[74].mxu1 }
0x1619   : > { %v4144_v60 = vmul.f32 -1.702, %v3676_v32  ;;  %v3670_v61 = vpop.f32.mrb[75].mxu1 }
0x161a   : > { %v4142_v40 = vmul.f32 -1.702, %v3668_v54  ;;  %v3671_v44 = vadd.f32 %v4137_v46, %v3670_v61 }
0x161b   : > { %v3691_v59 = vmul.f32 1.442695, %v4144_v60 }
0x161c   : > { %v3687_v56 = vmul.f32 1.442695, %v4142_v40  ;;  %v4143_v52 = vmul.f32 -1.702, %v3671_v44 }
0x161d   : > { %5076 = vpow2.f32 %v3691_v59 }
0x161e   : > { %5078 = vpow2.f32 %v3687_v56  ;;  %v3689_v57 = vmul.f32 1.442695, %v4143_v52 }
0x1620   : > { %5080 = vpow2.f32 %v3689_v57 }
0x1627   : > { %v5077_v62 = vpop.eup %5076 }
0x1628   : > { %v5079_v18 = vpop.eup %5078  ;;  %v3695_v58 = vadd.f32 1.0, %v5077_v62 }
0x1629   : > { %v3693_v53 = vadd.f32 1.0, %v5079_v18 }
0x162a   : > { %v5081_v21 = vpop.eup %5080  ;;  %5082 = vrcp.f32 %v3695_v58 }
0x162b   : > { %5084 = vrcp.f32 %v3693_v53  ;;  %v3694_v2 = vadd.f32 1.0, %v5081_v21 }
0x162d   : > { %5086 = vrcp.f32 %v3694_v2 }
0x1634   : > { %v5083_v35 = vpop.eup %5082 }
0x1635   : > { %v5085_v3 = vpop.eup %5084  ;;  %v3704_v0 = vmul.f32 %v5083_v35, %v3676_v32 }
0x1636   : > { %v3702_v5 = vmul.f32 %v5085_v3, %v3668_v54 }
0x1637   : > { %v5087_v1 = vpop.eup %5086  ;;  %v3723_v12 = vpack.c.bf16 %v3704_v0, %v3704_v0 }
0x1638   : > { %v3703_v10 = vmul.f32 %v5087_v1, %v3671_v44 }
0x163a   : > { %v3722_v11 = vpack.c.bf16 %v3703_v10, %v3702_v5 }
0x163c   : > { %4659 = vmatprep.mubr.bf16.mxu0 %v3722_v11 }
0x163d   : > { %4660 = vmatmul.mubr.bf16.vlgmr.msra.gmra.mrb[56].mxu0 %v3723_v12 }
0x1710   : > { %v4661_v16 = vpop.f32.mrb[56].mxu0 }
0x1711   : > { %v3814_v15 = vpop.f32.mrb[57].mxu0 }
0x1712   : > { %v3815_v49 = vadd.f32 %v4162_v14, %v3814_v15  ;;  %v4662_v30 = vpop.f32.mrb[58].mxu0 }
0x1713   : > { %v3817_v19 = vpop.f32.mrb[59].mxu0 }
0x1714   : > { %v3826_v43 = vadd.f32 %v3815_v49, %v6139_v55 }
0x1716   : > { %v3830_v13 = vsel %vm3829_vm8, %v3826_v43, 0.0 }
0x1717   : > { %3831 = vadd.xlane.f32.xlu0 %v3830_v13 }
0x17a4   : > { %v3832_v9 = vpop.xlane.xlu0 %3831 }
0x17a5   : > { %v3833_v20 = vmul.f32 0.03125, %v3832_v9 }
0x17a7   : > { %v3834_v22 = vsub.f32 %v3826_v43, %v3833_v20 }
0x17a9   : > { %v3835_v39 = vmul.f32 %v3834_v22, %v3834_v22 }
0x17ab   : > { %v3836_v23 = vsel %vm3829_vm8, %v3835_v39, 0.0 }
0x17ac   : > { %3837 = vadd.xlane.f32.xlu1 %v3836_v23 }
0x1839   : > { %v3838_v55 = vpop.xlane.xlu1 %3837 }
0x183a   : > { %v3839_v25 = vmul.f32 0.03125, %v3838_v55 }
0x183c   : > { %v3840_v26 = vadd.f32 1e-05, %v3839_v25 }
0x183e   : > { %5088 = vrsqrt.f32 %v3840_v26 }
0x1848   : > { %v5089_v51 = vpop.eup %5088 }
0x1849   : > { %v3842_v47 = vmul.f32 %v5089_v51, %v3834_v22 }
0x184b   : > { %v3843_v28 = vmul.f32 %v3842_v47, %v3827_v27 }
0x184d   : > { %v3844_v29 = vadd.f32 %v3843_v28, %v3828_v8 }
0x184f   : > { %v3849_v4 = vpack.c.bf16 %v3844_v29, %v3844_v29 }
0x1851   : > { %4668 = vmatmul.mubr.msk.bf16.vlgmr.msra.gmra.mrb[76].mxu1 %vm730_vm1, %v3849_v4 }
0x1924   : > { %v3899_v50 = vpop.f32.mrb[76].mxu1 }
0x1925   : > { %3906 = vst.msk [vmem:[%s634_s30] sm:$0x1] %vm3905_vm9, %v3899_v50  ;;  %v4669_v6 = vpop.f32.mrb[77].mxu1 }
0x1926   : > { %v3902_v63 = vpop.f32.mrb[78].mxu1 }
0x1927   : > { %5131 = shalt.err (!%p5128_p7)
}
0x1928   : > { %s5132_s1 = scalar_lea.hbm %s6218_s24, 16  ;;  %s5136_s3 = scalar_lea.hbm %s6280_s20, 32 }
0x1929   : > { %p5133_p8 = scmp.ne.s32.totalorder %s6218_s24, %s5132_s1  ;;  %p5137_p1 = scmp.lt.u32.totalorder %s6218_s24, %s6280_s20 }
0x192a   : > { %p5138_p0 = scmp.lt.u32.totalorder %s5136_s3, %s5132_s1  ;;  %p5140_p5 = scmp.lt.u32.totalorder %s5132_s1, %s6218_s24 }
0x192b   : > { %p5134_p11 = pnand %p5133_p8, %p6355_p9 }
0x192c   : > { %p5139_p6 = por %p5138_p0, %p5137_p1 }
0x192d   : > { %p5135_p13 = pneg %p5134_p11 }
0x192e   : > { %p5141_p10 = por %p5140_p5, %p5139_p6 }
0x1930   : > { %p5142_p12 = pnand %p5141_p10, %p5135_p13 }
0x1932   : > { %5145 = shalt.err (!%p5142_p12)
}
0x1933   : > { %4732 = dma.vmem_to_hbm [thread:$0]  (%p6355_p9), %s6220_s21, 16, %s6218_s24, %s3908_s26   ;;  %v4670_v31 = vpop.f32.mrb[79].mxu1 }
0x1934 PF: > { %s6356_s29 = sld [smem:[#allocation10_spill]]  ;;  %s6357_s0 = sld [smem:[#allocation8_spill]] }
0x1935   : > { %s6358_s30 = sld [smem:[#allocation13_spill]] }
0x193a   : > { %p4744_p2 = scmp.ge.s32.totalorder %s6356_s29, 2  ;;  %s3932_s28 = sand.u32 1, %s6357_s0  }
0x193b   : > { %p6359_p3 = scmp.ne.s32.totalorder %s6358_s30, 0  ;;  %s3933_s3 = scalar_lea.sflag [#allocation4], %s3932_s28 }
0x193d   : > { %p4739_p4 = pnand %p4744_p2, %p6359_p3 }
0x193f   : > { %5167 = dma.done.wait (!%p4739_p4), %s3933_s3, 16  }
0x1940   : > { %5169 = vsyncadd (!%p4739_p4), %s3933_s3, 4294967280  ;;  %s6360_s24 = sld [smem:[#allocation11_spill]]  ;;  %s6361_s2 = sld [smem:[#allocation9_spill]] }
0x1941   : > { %s6362_s23 = sld [smem:[#allocation12_spill]]  ;;  %s6363_s1 = smov %s5176_s22 }
0x1946   : > { %p31_p7 = scmp.ge.s32.totalorder %s6360_s24, 4   ;;  %s6364_s22 = smov %s6361_s2 }
0x1948   :  { %33 = sbr.rel (!%p31_p7) target bundleno = 10 (0xa), region = 152 }
0x194f   :  { %3937 = vsyncpa [#allocation3], 1 }
0x1950   :  { %3939 = vsyncpa [#allocation3 + $0x1], 1 }
0x1951   :  { %3940 = vsyncpa [#allocation4], 1 }
0x1952   :  { %3942 = vsyncpa [#allocation4 + $0x1], 1 }

</bundles_post_ra>
